<compile_context>
chip_gen: v7x
topology: tpu7x:2x2x1
jax: 0.10.0
libtpu: 0.0.40
codegen_flags: <defaults>
</compile_context>

<pallas_src>
import functools

import jax
import jax.numpy as jnp
import numpy as np
from jax import lax
from jax.experimental import pallas as pl
from jax.experimental.pallas import tpu as pltpu

BN_EPS = 1e-5
MXU_DTYPE = jnp.bfloat16      # MXU inputs; accumulation & VPU math stay f32.


def _round_up(a, b):
    return (a + b - 1) // b * b


# ----------------------------- fused Pallas kernel ---------------------------

def _bottleneck_kernel(*refs, H, W, has_shortcut):
    if has_shortcut:
        (x_ref, w1_ref, w2_ref, w3_ref, wsc_ref,
         bn1_ref, bias_ref, o_ref, s_ref) = refs
    else:
        (x_ref, w1_ref, w2_ref, w3_ref,
         bn1_ref, bias_ref, o_ref, s_ref) = refs
        wsc_ref = None

    HW = H * W
    cmid = w1_ref.shape[1]
    base = _round_up(W + 1, 8)            # aligned offset of h[0] in the scratch

    x = x_ref[0]                                          # (HW, Cin) f32

    # ---- stage 1: BN1 -> ReLU -> conv1x1 (BN2 folded in) -> ReLU -----------
    a = jnp.maximum(x * bn1_ref[0:1, :] + bn1_ref[1:2, :], 0.0)
    h = jnp.dot(a.astype(MXU_DTYPE), w1_ref[...],
                preferred_element_type=jnp.float32)
    h = jnp.maximum(h + bias_ref[0:1, :], 0.0)            # (HW, Cmid)

    # ---- stage 2: 3x3 conv as 9 shifted matmuls (BN3 folded), ReLU ----------
    # Scratch layout (row-flattened NHWC): [base zeros | h | base zeros].
    # Zero pads are rewritten every grid step (no reliance on cross-step or
    # cross-core scratch state).
    zpad = jnp.zeros((base, cmid), dtype=s_ref.dtype)
    s_ref[0:base, :] = zpad
    s_ref[base + HW:base + HW + base, :] = zpad
    s_ref[base:base + HW, :] = h.astype(s_ref.dtype)

    col = lax.broadcasted_iota(jnp.int32, (HW, 1), 0) % W
    mask_l = col != 0          # kills wrap-around contamination for dw == 0
    mask_r = col != (W - 1)    # kills wrap-around contamination for dw == 2

    taps = [(dh, dw) for dh in range(3) for dw in range(3)]
    acc = jnp.zeros((HW, cmid), jnp.float32)
    for tap, (dh, dw) in enumerate(taps):
        start = base + (dh - 1) * W + (dw - 1)
        win = s_ref[start:start + HW, :]                  # (HW, Cmid) bf16
        if dw == 0:
            win = jnp.where(mask_l, win, jnp.zeros_like(win))
        elif dw == 2:
            win = jnp.where(mask_r, win, jnp.zeros_like(win))
        acc = acc + jnp.dot(win, w2_ref[tap * cmid:(tap + 1) * cmid, :],
                            preferred_element_type=jnp.float32)
    z = jnp.maximum(acc + bias_ref[1:2, :], 0.0)          # (HW, Cmid)

    # ---- stage 3: conv1x1 expansion + shortcut + residual add ---------------
    out = jnp.dot(z.astype(MXU_DTYPE), w3_ref[...],
                  preferred_element_type=jnp.float32)
    if has_shortcut:
        res = jnp.dot(x.astype(MXU_DTYPE), wsc_ref[...],
                      preferred_element_type=jnp.float32)
    else:
        res = x                                            # Cin == Cexp here
    o_ref[0] = (out + res).astype(o_ref.dtype)


# ----------------------------- wrapper ---------------------------------------

def _fold_bn(bn):
    g, b, m, v = bn
    s = g * lax.rsqrt(v + BN_EPS)
    return s, b - m * s


def bottleneck_forward(x_nchw, params, stride):
    N, Cin, H, W = x_nchw.shape
    HW = H * W
    x = jnp.transpose(x_nchw, (0, 2, 3, 1)).astype(jnp.float32)
    x = x.reshape(N, HW, Cin)

    cmid = params['w1'].shape[0]
    cexp = params['w3'].shape[0]

    s1, t1 = _fold_bn(params['bn1'])
    s2, t2 = _fold_bn(params['bn2'])
    s3, t3 = _fold_bn(params['bn3'])

    # conv weights (PyTorch OIHW) -> matmul matrices, BN2/BN3 folded in.
    w1m = (params['w1'][:, :, 0, 0].T * s2[None, :]).astype(MXU_DTYPE)  # (Cin,Cmid)
    w2m = jnp.concatenate(
        [params['w2'][:, :, kh, kw].T * s3[None, :]
         for kh in range(3) for kw in range(3)], axis=0).astype(MXU_DTYPE)  # (9*Cmid,Cmid)
    w3m = params['w3'][:, :, 0, 0].T.astype(MXU_DTYPE)                  # (Cmid,Cexp)

    bn1_pack = jnp.stack([s1, t1]).astype(jnp.float32)    # (2, Cin)
    bias_pack = jnp.stack([t2, t3]).astype(jnp.float32)   # (2, Cmid)

    has_shortcut = 'wsc' in params
    if not has_shortcut:
        assert stride == 1 and Cin == cexp, "identity residual needs matching shapes"

    operands = [x, w1m, w2m, w3m]
    in_specs = [
        pl.BlockSpec((1, HW, Cin), lambda n: (n, 0, 0)),
        pl.BlockSpec((Cin, cmid), lambda n: (0, 0)),
        pl.BlockSpec((9 * cmid, cmid), lambda n: (0, 0)),
        pl.BlockSpec((cmid, cexp), lambda n: (0, 0)),
    ]
    if has_shortcut:
        wscm = params['wsc'][:, :, 0, 0].T.astype(MXU_DTYPE)            # (Cin,Cexp)
        operands.append(wscm)
        in_specs.append(pl.BlockSpec((Cin, cexp), lambda n: (0, 0)))
    operands += [bn1_pack, bias_pack]
    in_specs += [pl.BlockSpec((2, Cin), lambda n: (0, 0)),
                 pl.BlockSpec((2, cmid), lambda n: (0, 0))]

    base = _round_up(W + 1, 8)
    s_rows = 2 * base + HW

    # VMEM budget: double-buffered per-batch blocks + weights + scratch +
    # intermediates, with headroom; capped below v7x's 64 MiB physical VMEM.
    block_b = 2 * HW * (Cin + cexp) * 4
    weight_b = (Cin * cmid + 9 * cmid * cmid + cmid * cexp + Cin * cexp) * 2
    scratch_b = s_rows * cmid * 2 + 3 * HW * cmid * 4
    vmem_limit = int(min(max(4 * (block_b + weight_b + scratch_b), 16 * 2 ** 20),
                         32 * 2 ** 20))

    kernel = functools.partial(_bottleneck_kernel, H=H, W=W,
                               has_shortcut=has_shortcut)
    out = pl.pallas_call(
        kernel,
        out_shape=jax.ShapeDtypeStruct((N, HW, cexp), jnp.float32),
        grid=(N,),
        in_specs=in_specs,
        out_specs=pl.BlockSpec((1, HW, cexp), lambda n: (n, 0, 0)),
        scratch_shapes=[pltpu.VMEM((s_rows, cmid), MXU_DTYPE)],
        compiler_params=pltpu.CompilerParams(
            dimension_semantics=("parallel",),
            vmem_limit_bytes=vmem_limit),
    )(*operands)

    out = out.reshape(N, H, W, cexp)
    if stride != 1:
        # 1x1 convs / BN / ReLU / add are pointwise and the 3x3-stride-s output
        # equals the stride-1 output at positions (s*i, s*j), so subsampling the
        # full-resolution result is exact.
        out = out[:, ::stride, ::stride, :]
    return jnp.transpose(out, (0, 3, 1, 2))               # back to NCHW


# ----------------------------- reference & params ----------------------------

def _ref_forward(x, p, stride):
    def bn(h, prm):
        g, b, m, v = (a[None, :, None, None] for a in prm)
        return (h - m) * lax.rsqrt(v + BN_EPS) * g + b
    dn = ('NCHW', 'OIHW', 'NCHW')
    h = jax.nn.relu(bn(x, p['bn1']))
    h = lax.conv_general_dilated(h, p['w1'], (1, 1), 'VALID', dimension_numbers=dn)
    h = jax.nn.relu(bn(h, p['bn2']))
    h = lax.conv_general_dilated(h, p['w2'], (stride, stride), ((1, 1), (1, 1)),
                                 dimension_numbers=dn)
    h = jax.nn.relu(bn(h, p['bn3']))
    h = lax.conv_general_dilated(h, p['w3'], (1, 1), 'VALID', dimension_numbers=dn)
    if 'wsc' in p:
        res = lax.conv_general_dilated(x, p['wsc'], (stride, stride), 'VALID',
                                       dimension_numbers=dn)
    else:
        res = x
    return h + res


def init_params(key, in_c, out_c, stride, expansion=4):
    ks = jax.random.split(key, 8)

    def bn_params(k, c):
        k1, k2, k3, k4 = jax.random.split(k, 4)
        return (jax.random.normal(k1, (c,)) * 0.1 + 1.0,
                jax.random.normal(k2, (c,)) * 0.1,
                jax.random.normal(k3, (c,)) * 0.1,
                jax.random.uniform(k4, (c,), minval=0.5, maxval=1.5))

    p = {
        'bn1': bn_params(ks[0], in_c),
        'w1': jax.random.normal(ks[1], (out_c, in_c, 1, 1)) * 0.1,
        'bn2': bn_params(ks[2], out_c),
        'w2': jax.random.normal(ks[3], (out_c, out_c, 3, 3)) * 0.1,
        'bn3': bn_params(ks[4], out_c),
        'w3': jax.random.normal(ks[5], (out_c * expansion, out_c, 1, 1)) * 0.1,
    }
    if stride != 1 or in_c != out_c * expansion:
        p['wsc'] = jax.random.normal(ks[6], (out_c * expansion, in_c, 1, 1)) * 0.1
    return jax.tree_util.tree_map(lambda a: a.astype(jnp.float32), p)


# ----------------------------- main -------------------------------------------

if __name__ == "__main__":
    key = jax.random.PRNGKey(0)

    # bf16 MXU inputs vs an f32 reference -> tolerance reflects bf16 rounding,
    # still far below any structural-error magnitude.
    TOL = 5e-2

    # case 1: strided block with projection shortcut.
    kx, kp, key = jax.random.split(key, 3)
    N, in_c, H, W = 2, 16, 16, 16
    out_c, stride = 8, 2
    x = jax.random.normal(kx, (N, in_c, H, W), dtype=jnp.float32)
    params = init_params(kp, in_c, out_c, stride)
    out = jax.block_until_ready(bottleneck_forward(x, params, stride))
    ref = jax.block_until_ready(_ref_forward(x, params, stride))
    assert out.shape == ref.shape, (out.shape, ref.shape)
    np.testing.assert_allclose(np.asarray(out), np.asarray(ref), rtol=TOL, atol=TOL)

    # case 2: stride-1 block with identity residual (no shortcut conv).
    kx, kp = jax.random.split(key)
    N, in_c, H, W = 2, 32, 8, 8
    out_c, stride = 8, 1
    x = jax.random.normal(kx, (N, in_c, H, W), dtype=jnp.float32)
    params = init_params(kp, in_c, out_c, stride)
    out = jax.block_until_ready(bottleneck_forward(x, params, stride))
    ref = jax.block_until_ready(_ref_forward(x, params, stride))
    assert out.shape == ref.shape, (out.shape, ref.shape)
    np.testing.assert_allclose(np.asarray(out), np.asarray(ref), rtol=TOL, atol=TOL)

    print("KERNEL_OK")
</pallas_src>

<mosaic_0001>
module attributes {stable_mosaic.version = 11 : i64} {
  func.func @_bottleneck_kernel(%arg0: i32, %arg1: memref<1x256x16xf32, #tpu.memory_space<vmem>>, %arg2: memref<16x8xbf16, #tpu.memory_space<vmem>>, %arg3: memref<72x8xbf16, #tpu.memory_space<vmem>>, %arg4: memref<8x32xbf16, #tpu.memory_space<vmem>>, %arg5: memref<16x32xbf16, #tpu.memory_space<vmem>>, %arg6: memref<2x16xf32, #tpu.memory_space<vmem>>, %arg7: memref<2x8xf32, #tpu.memory_space<vmem>>, %arg8: memref<1x256x32xf32, #tpu.memory_space<vmem>>, %arg9: memref<304x8xbf16, #tpu.memory_space<vmem>>) attributes {dimension_semantics = [#tpu.dimension_semantics<parallel>], iteration_bounds = array<i64: 2>, scalar_prefetch = 0 : i64, scratch_operands = 1 : i64, tpu.core_type = #tpu.core_type<tc>, window_params = [{transform_indices = @transform_0, window_bounds = array<i64: 1, 256, 16>}, {pipeline_mode = #tpu.pipeline_mode<synchronous>, transform_indices = @transform_1, window_bounds = array<i64: 16, 8>}, {pipeline_mode = #tpu.pipeline_mode<synchronous>, transform_indices = @transform_2, window_bounds = array<i64: 72, 8>}, {pipeline_mode = #tpu.pipeline_mode<synchronous>, transform_indices = @transform_3, window_bounds = array<i64: 8, 32>}, {pipeline_mode = #tpu.pipeline_mode<synchronous>, transform_indices = @transform_4, window_bounds = array<i64: 16, 32>}, {pipeline_mode = #tpu.pipeline_mode<synchronous>, transform_indices = @transform_5, window_bounds = array<i64: 2, 16>}, {pipeline_mode = #tpu.pipeline_mode<synchronous>, transform_indices = @transform_6, window_bounds = array<i64: 2, 8>}, {transform_indices = @transform_7, window_bounds = array<i64: 1, 256, 32>}]} {
    %c0 = arith.constant 0 : index
    %c0_0 = arith.constant 0 : index
    %c0_1 = arith.constant 0 : index
    %0 = vector.load %arg1[%c0, %c0_0, %c0_1] : memref<1x256x16xf32, #tpu.memory_space<vmem>>, vector<1x256x16xf32>
    %1 = vector.shape_cast %0 : vector<1x256x16xf32> to vector<256x16xf32>
    %c0_2 = arith.constant 0 : index
    %c0_3 = arith.constant 0 : index
    %2 = vector.load %arg6[%c0_2, %c0_3] : memref<2x16xf32, #tpu.memory_space<vmem>>, vector<1x16xf32>
    %3 = vector.broadcast %2 : vector<1x16xf32> to vector<256x16xf32>
    %4 = arith.mulf %1, %3 : vector<256x16xf32>
    %c1 = arith.constant 1 : index
    %c0_4 = arith.constant 0 : index
    %5 = vector.load %arg6[%c1, %c0_4] : memref<2x16xf32, #tpu.memory_space<vmem>>, vector<1x16xf32>
    %6 = vector.broadcast %5 : vector<1x16xf32> to vector<256x16xf32>
    %7 = arith.addf %4, %6 : vector<256x16xf32>
    %cst = arith.constant 0.000000e+00 : f32
    %8 = vector.broadcast %cst : f32 to vector<256x16xf32>
    %9 = arith.maximumf %7, %8 : vector<256x16xf32>
    %10 = arith.truncf %9 : vector<256x16xf32> to vector<256x16xbf16>
    %c0_5 = arith.constant 0 : index
    %c0_6 = arith.constant 0 : index
    %11 = vector.load %arg2[%c0_5, %c0_6] : memref<16x8xbf16, #tpu.memory_space<vmem>>, vector<16x8xbf16>
    %cst_7 = arith.constant dense<0.000000e+00> : vector<256x8xf32>
    %12 = tpu.matmul %10, %11, %cst_7 {dimension_numbers = #tpu.dot_dimension_numbers<[1], [0], [0], [1], [0, 0, 1, 1], [], []>} : vector<256x16xbf16>, vector<16x8xbf16>, vector<256x8xf32> -> vector<256x8xf32>
    %c0_8 = arith.constant 0 : index
    %c0_9 = arith.constant 0 : index
    %13 = vector.load %arg7[%c0_8, %c0_9] : memref<2x8xf32, #tpu.memory_space<vmem>>, vector<1x8xf32>
    %14 = vector.broadcast %13 : vector<1x8xf32> to vector<256x8xf32>
    %15 = arith.addf %12, %14 : vector<256x8xf32>
    %cst_10 = arith.constant 0.000000e+00 : f32
    %16 = vector.broadcast %cst_10 : f32 to vector<256x8xf32>
    %17 = arith.maximumf %15, %16 : vector<256x8xf32>
    %cst_11 = arith.constant 0.000000e+00 : bf16
    %18 = vector.broadcast %cst_11 : bf16 to vector<24x8xbf16>
    %c0_12 = arith.constant 0 : index
    %c0_13 = arith.constant 0 : index
    %19 = vector.load %arg9[%c0_12, %c0_13] : memref<304x8xbf16, #tpu.memory_space<vmem>>, vector<24x8xbf16>
    tpu.vector_store %arg9[%c0_12, %c0_13], %18 {strides = array<i32>} : memref<304x8xbf16, #tpu.memory_space<vmem>>, vector<24x8xbf16>,
    %c280 = arith.constant 280 : index
    %c0_14 = arith.constant 0 : index
    %20 = vector.load %arg9[%c280, %c0_14] : memref<304x8xbf16, #tpu.memory_space<vmem>>, vector<24x8xbf16>
    tpu.vector_store %arg9[%c280, %c0_14], %18 {strides = array<i32>} : memref<304x8xbf16, #tpu.memory_space<vmem>>, vector<24x8xbf16>,
    %21 = arith.truncf %17 : vector<256x8xf32> to vector<256x8xbf16>
    %c24 = arith.constant 24 : index
    %c0_15 = arith.constant 0 : index
    %22 = vector.load %arg9[%c24, %c0_15] : memref<304x8xbf16, #tpu.memory_space<vmem>>, vector<256x8xbf16>
    tpu.vector_store %arg9[%c24, %c0_15], %21 {strides = array<i32>} : memref<304x8xbf16, #tpu.memory_space<vmem>>, vector<256x8xbf16>,
    %23 = tpu.iota {dimensions = array<i32: 0>} : vector<256x1xi32>
    %c16_i32 = arith.constant 16 : i32
    %c0_i32 = arith.constant 0 : i32
    %24 = arith.cmpi eq, %c16_i32, %c0_i32 : i32
    %c1_i32 = arith.constant 1 : i32
    %25 = arith.select %24, %c1_i32, %c16_i32 : i32
    %26 = vector.broadcast %25 : i32 to vector<256x1xi32>
    %27 = arith.remsi %23, %26 : vector<256x1xi32>
    %c0_i32_16 = arith.constant 0 : i32
    %28 = vector.broadcast %c0_i32_16 : i32 to vector<256x1xi32>
    %29 = arith.cmpi ne, %27, %28 : vector<256x1xi32>
    %c0_i32_17 = arith.constant 0 : i32
    %30 = vector.broadcast %c0_i32_17 : i32 to vector<256x1xi32>
    %31 = arith.cmpi slt, %27, %30 : vector<256x1xi32>
    %c0_i32_18 = arith.constant 0 : i32
    %32 = arith.cmpi slt, %25, %c0_i32_18 : i32
    %33 = vector.broadcast %32 : i1 to vector<256x1xi1>
    %34 = vector.broadcast %33 : vector<256x1xi1> to vector<256x1xi1>
    %35 = arith.xori %31, %34 : vector<256x1xi1>
    %36 = arith.andi %35, %29 : vector<256x1xi1>
    %37 = vector.broadcast %25 : i32 to vector<256x1xi32>
    %38 = arith.addi %27, %37 : vector<256x1xi32>
    %39 = arith.select %36, %38, %27 : vector<256x1xi1>, vector<256x1xi32>
    %c0_i32_19 = arith.constant 0 : i32
    %40 = vector.broadcast %c0_i32_19 : i32 to vector<256x1xi32>
    %41 = arith.cmpi ne, %39, %40 : vector<256x1xi32>
    %c15_i32 = arith.constant 15 : i32
    %42 = vector.broadcast %c15_i32 : i32 to vector<256x1xi32>
    %43 = arith.cmpi ne, %39, %42 : vector<256x1xi32>
    %cst_20 = arith.constant 0.000000e+00 : f32
    %44 = vector.broadcast %cst_20 : f32 to vector<256x8xf32>
    %c7 = arith.constant 7 : index
    %c0_21 = arith.constant 0 : index
    %45 = vector.load %arg9[%c7, %c0_21] : memref<304x8xbf16, #tpu.memory_space<vmem>>, vector<256x8xbf16>
    %cst_22 = arith.constant 0.000000e+00 : bf16
    %46 = vector.broadcast %cst_22 : bf16 to vector<256x8xbf16>
    %47 = vector.shape_cast %41 : vector<256x1xi1> to vector<256x1xi1>
    %48 = vector.broadcast %47 : vector<256x1xi1> to vector<256x8xi1>
    %49 = arith.select %48, %45, %46 : vector<256x8xi1>, vector<256x8xbf16>
    %c0_23 = arith.constant 0 : index
    %c0_24 = arith.constant 0 : index
    %50 = vector.load %arg3[%c0_23, %c0_24] : memref<72x8xbf16, #tpu.memory_space<vmem>>, vector<8x8xbf16>
    %cst_25 = arith.constant dense<0.000000e+00> : vector<256x8xf32>
    %51 = tpu.matmul %49, %50, %cst_25 {dimension_numbers = #tpu.dot_dimension_numbers<[1], [0], [0], [1], [0, 0, 1, 1], [], []>} : vector<256x8xbf16>, vector<8x8xbf16>, vector<256x8xf32> -> vector<256x8xf32>
    %52 = arith.addf %44, %51 : vector<256x8xf32>
    %c8 = arith.constant 8 : index
    %c0_26 = arith.constant 0 : index
    %53 = vector.load %arg9[%c8, %c0_26] : memref<304x8xbf16, #tpu.memory_space<vmem>>, vector<256x8xbf16>
    %c8_27 = arith.constant 8 : index
    %c0_28 = arith.constant 0 : index
    %54 = vector.load %arg3[%c8_27, %c0_28] : memref<72x8xbf16, #tpu.memory_space<vmem>>, vector<8x8xbf16>
    %cst_29 = arith.constant dense<0.000000e+00> : vector<256x8xf32>
    %55 = tpu.matmul %53, %54, %cst_29 {dimension_numbers = #tpu.dot_dimension_numbers<[1], [0], [0], [1], [0, 0, 1, 1], [], []>} : vector<256x8xbf16>, vector<8x8xbf16>, vector<256x8xf32> -> vector<256x8xf32>
    %56 = arith.addf %52, %55 : vector<256x8xf32>
    %c9 = arith.constant 9 : index
    %c0_30 = arith.constant 0 : index
    %57 = vector.load %arg9[%c9, %c0_30] : memref<304x8xbf16, #tpu.memory_space<vmem>>, vector<256x8xbf16>
    %cst_31 = arith.constant 0.000000e+00 : bf16
    %58 = vector.broadcast %cst_31 : bf16 to vector<256x8xbf16>
    %59 = vector.shape_cast %43 : vector<256x1xi1> to vector<256x1xi1>
    %60 = vector.broadcast %59 : vector<256x1xi1> to vector<256x8xi1>
    %61 = arith.select %60, %57, %58 : vector<256x8xi1>, vector<256x8xbf16>
    %c16 = arith.constant 16 : index
    %c0_32 = arith.constant 0 : index
    %62 = vector.load %arg3[%c16, %c0_32] : memref<72x8xbf16, #tpu.memory_space<vmem>>, vector<8x8xbf16>
    %cst_33 = arith.constant dense<0.000000e+00> : vector<256x8xf32>
    %63 = tpu.matmul %61, %62, %cst_33 {dimension_numbers = #tpu.dot_dimension_numbers<[1], [0], [0], [1], [0, 0, 1, 1], [], []>} : vector<256x8xbf16>, vector<8x8xbf16>, vector<256x8xf32> -> vector<256x8xf32>
    %64 = arith.addf %56, %63 : vector<256x8xf32>
    %c23 = arith.constant 23 : index
    %c0_34 = arith.constant 0 : index
    %65 = vector.load %arg9[%c23, %c0_34] : memref<304x8xbf16, #tpu.memory_space<vmem>>, vector<256x8xbf16>
    %cst_35 = arith.constant 0.000000e+00 : bf16
    %66 = vector.broadcast %cst_35 : bf16 to vector<256x8xbf16>
    %67 = vector.shape_cast %41 : vector<256x1xi1> to vector<256x1xi1>
    %68 = vector.broadcast %67 : vector<256x1xi1> to vector<256x8xi1>
    %69 = arith.select %68, %65, %66 : vector<256x8xi1>, vector<256x8xbf16>
    %c24_36 = arith.constant 24 : index
    %c0_37 = arith.constant 0 : index
    %70 = vector.load %arg3[%c24_36, %c0_37] : memref<72x8xbf16, #tpu.memory_space<vmem>>, vector<8x8xbf16>
    %cst_38 = arith.constant dense<0.000000e+00> : vector<256x8xf32>
    %71 = tpu.matmul %69, %70, %cst_38 {dimension_numbers = #tpu.dot_dimension_numbers<[1], [0], [0], [1], [0, 0, 1, 1], [], []>} : vector<256x8xbf16>, vector<8x8xbf16>, vector<256x8xf32> -> vector<256x8xf32>
    %72 = arith.addf %64, %71 : vector<256x8xf32>
    %c24_39 = arith.constant 24 : index
    %c0_40 = arith.constant 0 : index
    %73 = vector.load %arg9[%c24_39, %c0_40] : memref<304x8xbf16, #tpu.memory_space<vmem>>, vector<256x8xbf16>
    %c32 = arith.constant 32 : index
    %c0_41 = arith.constant 0 : index
    %74 = vector.load %arg3[%c32, %c0_41] : memref<72x8xbf16, #tpu.memory_space<vmem>>, vector<8x8xbf16>
    %cst_42 = arith.constant dense<0.000000e+00> : vector<256x8xf32>
    %75 = tpu.matmul %73, %74, %cst_42 {dimension_numbers = #tpu.dot_dimension_numbers<[1], [0], [0], [1], [0, 0, 1, 1], [], []>} : vector<256x8xbf16>, vector<8x8xbf16>, vector<256x8xf32> -> vector<256x8xf32>
    %76 = arith.addf %72, %75 : vector<256x8xf32>
    %c25 = arith.constant 25 : index
    %c0_43 = arith.constant 0 : index
    %77 = vector.load %arg9[%c25, %c0_43] : memref<304x8xbf16, #tpu.memory_space<vmem>>, vector<256x8xbf16>
    %cst_44 = arith.constant 0.000000e+00 : bf16
    %78 = vector.broadcast %cst_44 : bf16 to vector<256x8xbf16>
    %79 = vector.shape_cast %43 : vector<256x1xi1> to vector<256x1xi1>
    %80 = vector.broadcast %79 : vector<256x1xi1> to vector<256x8xi1>
    %81 = arith.select %80, %77, %78 : vector<256x8xi1>, vector<256x8xbf16>
    %c40 = arith.constant 40 : index
    %c0_45 = arith.constant 0 : index
    %82 = vector.load %arg3[%c40, %c0_45] : memref<72x8xbf16, #tpu.memory_space<vmem>>, vector<8x8xbf16>
    %cst_46 = arith.constant dense<0.000000e+00> : vector<256x8xf32>
    %83 = tpu.matmul %81, %82, %cst_46 {dimension_numbers = #tpu.dot_dimension_numbers<[1], [0], [0], [1], [0, 0, 1, 1], [], []>} : vector<256x8xbf16>, vector<8x8xbf16>, vector<256x8xf32> -> vector<256x8xf32>
    %84 = arith.addf %76, %83 : vector<256x8xf32>
    %c39 = arith.constant 39 : index
    %c0_47 = arith.constant 0 : index
    %85 = vector.load %arg9[%c39, %c0_47] : memref<304x8xbf16, #tpu.memory_space<vmem>>, vector<256x8xbf16>
    %cst_48 = arith.constant 0.000000e+00 : bf16
    %86 = vector.broadcast %cst_48 : bf16 to vector<256x8xbf16>
    %87 = vector.shape_cast %41 : vector<256x1xi1> to vector<256x1xi1>
    %88 = vector.broadcast %87 : vector<256x1xi1> to vector<256x8xi1>
    %89 = arith.select %88, %85, %86 : vector<256x8xi1>, vector<256x8xbf16>
    %c48 = arith.constant 48 : index
    %c0_49 = arith.constant 0 : index
    %90 = vector.load %arg3[%c48, %c0_49] : memref<72x8xbf16, #tpu.memory_space<vmem>>, vector<8x8xbf16>
    %cst_50 = arith.constant dense<0.000000e+00> : vector<256x8xf32>
    %91 = tpu.matmul %89, %90, %cst_50 {dimension_numbers = #tpu.dot_dimension_numbers<[1], [0], [0], [1], [0, 0, 1, 1], [], []>} : vector<256x8xbf16>, vector<8x8xbf16>, vector<256x8xf32> -> vector<256x8xf32>
    %92 = arith.addf %84, %91 : vector<256x8xf32>
    %c40_51 = arith.constant 40 : index
    %c0_52 = arith.constant 0 : index
    %93 = vector.load %arg9[%c40_51, %c0_52] : memref<304x8xbf16, #tpu.memory_space<vmem>>, vector<256x8xbf16>
    %c56 = arith.constant 56 : index
    %c0_53 = arith.constant 0 : index
    %94 = vector.load %arg3[%c56, %c0_53] : memref<72x8xbf16, #tpu.memory_space<vmem>>, vector<8x8xbf16>
    %cst_54 = arith.constant dense<0.000000e+00> : vector<256x8xf32>
    %95 = tpu.matmul %93, %94, %cst_54 {dimension_numbers = #tpu.dot_dimension_numbers<[1], [0], [0], [1], [0, 0, 1, 1], [], []>} : vector<256x8xbf16>, vector<8x8xbf16>, vector<256x8xf32> -> vector<256x8xf32>
    %96 = arith.addf %92, %95 : vector<256x8xf32>
    %c41 = arith.constant 41 : index
    %c0_55 = arith.constant 0 : index
    %97 = vector.load %arg9[%c41, %c0_55] : memref<304x8xbf16, #tpu.memory_space<vmem>>, vector<256x8xbf16>
    %cst_56 = arith.constant 0.000000e+00 : bf16
    %98 = vector.broadcast %cst_56 : bf16 to vector<256x8xbf16>
    %99 = vector.shape_cast %43 : vector<256x1xi1> to vector<256x1xi1>
    %100 = vector.broadcast %99 : vector<256x1xi1> to vector<256x8xi1>
    %101 = arith.select %100, %97, %98 : vector<256x8xi1>, vector<256x8xbf16>
    %c64 = arith.constant 64 : index
    %c0_57 = arith.constant 0 : index
    %102 = vector.load %arg3[%c64, %c0_57] : memref<72x8xbf16, #tpu.memory_space<vmem>>, vector<8x8xbf16>
    %cst_58 = arith.constant dense<0.000000e+00> : vector<256x8xf32>
    %103 = tpu.matmul %101, %102, %cst_58 {dimension_numbers = #tpu.dot_dimension_numbers<[1], [0], [0], [1], [0, 0, 1, 1], [], []>} : vector<256x8xbf16>, vector<8x8xbf16>, vector<256x8xf32> -> vector<256x8xf32>
    %104 = arith.addf %96, %103 : vector<256x8xf32>
    %c1_59 = arith.constant 1 : index
    %c0_60 = arith.constant 0 : index
    %105 = vector.load %arg7[%c1_59, %c0_60] : memref<2x8xf32, #tpu.memory_space<vmem>>, vector<1x8xf32>
    %106 = vector.broadcast %105 : vector<1x8xf32> to vector<256x8xf32>
    %107 = arith.addf %104, %106 : vector<256x8xf32>
    %cst_61 = arith.constant 0.000000e+00 : f32
    %108 = vector.broadcast %cst_61 : f32 to vector<256x8xf32>
    %109 = arith.maximumf %107, %108 : vector<256x8xf32>
    %110 = arith.truncf %109 : vector<256x8xf32> to vector<256x8xbf16>
    %c0_62 = arith.constant 0 : index
    %c0_63 = arith.constant 0 : index
    %111 = vector.load %arg4[%c0_62, %c0_63] : memref<8x32xbf16, #tpu.memory_space<vmem>>, vector<8x32xbf16>
    %cst_64 = arith.constant dense<0.000000e+00> : vector<256x32xf32>
    %112 = tpu.matmul %110, %111, %cst_64 {dimension_numbers = #tpu.dot_dimension_numbers<[1], [0], [0], [1], [0, 0, 1, 1], [], []>} : vector<256x8xbf16>, vector<8x32xbf16>, vector<256x32xf32> -> vector<256x32xf32>
    %113 = arith.truncf %1 : vector<256x16xf32> to vector<256x16xbf16>
    %c0_65 = arith.constant 0 : index
    %c0_66 = arith.constant 0 : index
    %114 = vector.load %arg5[%c0_65, %c0_66] : memref<16x32xbf16, #tpu.memory_space<vmem>>, vector<16x32xbf16>
    %cst_67 = arith.constant dense<0.000000e+00> : vector<256x32xf32>
    %115 = tpu.matmul %113, %114, %cst_67 {dimension_numbers = #tpu.dot_dimension_numbers<[1], [0], [0], [1], [0, 0, 1, 1], [], []>} : vector<256x16xbf16>, vector<16x32xbf16>, vector<256x32xf32> -> vector<256x32xf32>
    %116 = arith.addf %112, %115 : vector<256x32xf32>
    %c0_68 = arith.constant 0 : index
    %c0_69 = arith.constant 0 : index
    %c0_70 = arith.constant 0 : index
    %117 = vector.load %arg8[%c0_68, %c0_69, %c0_70] : memref<1x256x32xf32, #tpu.memory_space<vmem>>, vector<1x256x32xf32>
    %118 = vector.shape_cast %117 : vector<1x256x32xf32> to vector<256x32xf32>
    %119 = vector.shape_cast %116 : vector<256x32xf32> to vector<1x256x32xf32>
    tpu.vector_store %arg8[%c0_68, %c0_69, %c0_70], %119 {strides = array<i32>} : memref<1x256x32xf32, #tpu.memory_space<vmem>>, vector<1x256x32xf32>,
    return
  }
  func.func @transform_0(%arg0: i32) -> (i32, i32, i32) {
    %c0_i32 = arith.constant 0 : i32
    %c0_i32_0 = arith.constant 0 : i32
    %c0_i32_1 = arith.constant 0 : i32
    return %arg0, %c0_i32, %c0_i32_0 : i32, i32, i32
  }
  func.func @transform_1(%arg0: i32) -> (i32, i32) {
    %c0_i32 = arith.constant 0 : i32
    %c0_i32_0 = arith.constant 0 : i32
    %c0_i32_1 = arith.constant 0 : i32
    return %c0_i32, %c0_i32_0 : i32, i32
  }
  func.func @transform_2(%arg0: i32) -> (i32, i32) {
    %c0_i32 = arith.constant 0 : i32
    %c0_i32_0 = arith.constant 0 : i32
    %c0_i32_1 = arith.constant 0 : i32
    return %c0_i32, %c0_i32_0 : i32, i32
  }
  func.func @transform_3(%arg0: i32) -> (i32, i32) {
    %c0_i32 = arith.constant 0 : i32
    %c0_i32_0 = arith.constant 0 : i32
    %c0_i32_1 = arith.constant 0 : i32
    return %c0_i32, %c0_i32_0 : i32, i32
  }
  func.func @transform_4(%arg0: i32) -> (i32, i32) {
    %c0_i32 = arith.constant 0 : i32
    %c0_i32_0 = arith.constant 0 : i32
    %c0_i32_1 = arith.constant 0 : i32
    return %c0_i32, %c0_i32_0 : i32, i32
  }
  func.func @transform_5(%arg0: i32) -> (i32, i32) {
    %c0_i32 = arith.constant 0 : i32
    %c0_i32_0 = arith.constant 0 : i32
    %c0_i32_1 = arith.constant 0 : i32
    return %c0_i32, %c0_i32_0 : i32, i32
  }
  func.func @transform_6(%arg0: i32) -> (i32, i32) {
    %c0_i32 = arith.constant 0 : i32
    %c0_i32_0 = arith.constant 0 : i32
    %c0_i32_1 = arith.constant 0 : i32
    return %c0_i32, %c0_i32_0 : i32, i32
  }
  func.func @transform_7(%arg0: i32) -> (i32, i32, i32) {
    %c0_i32 = arith.constant 0 : i32
    %c0_i32_0 = arith.constant 0 : i32
    %c0_i32_1 = arith.constant 0 : i32
    return %arg0, %c0_i32, %c0_i32_0 : i32, i32, i32
  }
}

</mosaic_0001>

<bundles_post_ra>
// kernel: tpu_custom_call.1
= control target key start
LH: loop header
LB: loop body
LE: loop exit
PB: predicated region body
PF: predicated region fallthrough
CT: control target
= control target key end

     0   :  { %s7195_s24 = smov 0   ;;  %s9305_s0 = inlined_call_operand.vmem [shape: f32[2,256,16], index: 0, kind: input, shape index: {}]   ;;  %s9306_s1 = inlined_call_operand.vmem [shape: bf16[16,8], index: 1, kind: input, shape index: {}]   ;;  %s9307_s2 = inlined_call_operand.vmem [shape: bf16[72,8], index: 2, kind: input, shape index: {}]   ;;  %s9308_s3 = inlined_call_operand.vmem [shape: bf16[8,32], index: 3, kind: input, shape index: {}]   ;;  %s9309_s4 = inlined_call_operand.vmem [shape: bf16[16,32], index: 4, kind: input, shape index: {}]   ;;  %s9310_s5 = inlined_call_operand.vmem [shape: f32[2,16], index: 5, kind: input, shape index: {}]   ;;  %s9311_s6 = inlined_call_operand.vmem [shape: f32[2,8], index: 6, kind: input, shape index: {}]   ;;  %s9312_s7 = inlined_call_operand.vmem [shape: f32[2,256,32], index: 7, kind: output, shape index: {}]  }
   0x1 LB: > { %s5933_s25 = sadd.s32 4294967295, %s7151_s24   ;;  %p5937_p0 = scmp.ge.s32.totalorder %s7151_s24, 1  ;;  %s7151_s24 = sphi %s7195_s24, %s17_s24  }
   0x2   : > { %p237_p1 = scmp.lt.s32.totalorder %s7151_s24, 3 }
   0x4   : > { %p238_p2 = pnand %p5937_p0, %p237_p1 }
   0x6   : > { %241 = sbr.rel (%p238_p2) target bundleno = 1104 (0x450), region = 48 }
   0xd   : > { %v7096_v0 = vld [vmem:[%s9306_s1] sm:$0xff]   ;;  %p269_p3 = scmp.lt.s32.totalorder %s5933_s25, 1  ;;  %vm9324_vm0 = vcmask 130048   ;;  %vm691_vm1 = vcmask 64512   ;;  %vm695_vm2 = vcmask 64516   ;;  %vm693_vm3 = vcmask 60416  }
   0xe   : > { %6380 = vmatprep.subr.bf16.mxu0 %v7096_v0  ;;  %v7212_v1 = vld [vmem:[%s9310_s5] ss:$0 sm:$0xff]  ;;  %v7224_v2 = vld [vmem:[%s9310_s5 + $0x1] ss:$0 sm:$0xff]  ;;  %vm730_vm4 = vcmask 1043456   ;;  %vm7154_vm7 = vmmov 1  }
   0xf   : > { %s9613_s25 = smov (!%p269_p3, %s5933_s25), 1  ;;  %6381 = vmatpush3.bf16.msra.mxu0 %v7096_v0  ;;  %vm1359_vm8 = vmpackc.low %vm7154_vm7, %vm7154_vm7 }
  0x10   : > { %s6174_s28 = sshll.u32 %s9613_s25, 8 }
  0x11   : > { %s7219_s10 = scalar_lea.vmem %s9305_s0, %s6174_s28  ;;  %s9236_s21 = scalar_lea.vmem %s9312_s7, %s6174_s28 }
  0x12   : > { %v282_v3 = vld [vmem:[%s7219_s10] sm:$0xff]  ;;  %v283_v4 = vld [vmem:[%s7219_s10 + $0x8] sm:$0xff]  ;;  %v7229_v5 = vld [vmem:[%s7219_s10 + $0x10] sm:$0xff] }
  0x13   : > { %9380 = vst [vmem:[#allocation3_spill] sm:$0xff] %v7229_v5  ;;  %v319_v6 = vmul.f32 %v7212_v1, %v282_v3  ;;  %v320_v7 = vmul.f32 %v7212_v1, %v283_v4  ;;  %v7234_v8 = vld [vmem:[%s7219_s10 + $0x18] sm:$0xff]  ;;  %v321_v9 = vmul.f32 %v7212_v1, %v7229_v5  ;;  %v286_v10 = vld [vmem:[%s7219_s10 + $0x20] sm:$0xff]  ;;  %v287_v11 = vld [vmem:[%s7219_s10 + $0x28] sm:$0xff] }
  0x14   : > { %9381 = vst [vmem:[#allocation4_spill] sm:$0xff] %v7234_v8  ;;  %v322_v12 = vmul.f32 %v7212_v1, %v7234_v8  ;;  %v323_v14 = vmul.f32 %v7212_v1, %v286_v10  ;;  %v324_v15 = vmul.f32 %v7212_v1, %v287_v11  ;;  %v288_v16 = vld [vmem:[%s7219_s10 + $0x30] sm:$0xff]  ;;  %v289_v17 = vld [vmem:[%s7219_s10 + $0x38] sm:$0xff]  ;;  %v290_v26 = vld [vmem:[%s7219_s10 + $0x40] sm:$0xff] }
  0x15   : > { %v356_v18 = vadd.f32 %v7224_v2, %v319_v6  ;;  %v357_v19 = vadd.f32 %v7224_v2, %v320_v7  ;;  %v358_v20 = vadd.f32 %v7224_v2, %v321_v9  ;;  %v325_v21 = vmul.f32 %v7212_v1, %v288_v16  ;;  %v291_v27 = vld [vmem:[%s7219_s10 + $0x48] sm:$0xff]  ;;  %v292_v39 = vld [vmem:[%s7219_s10 + $0x50] sm:$0xff]  ;;  %v293_v40 = vld [vmem:[%s7219_s10 + $0x58] sm:$0xff] }
  0x16   : > { %v359_v22 = vadd.f32 %v7224_v2, %v322_v12  ;;  %v360_v23 = vadd.f32 %v7224_v2, %v323_v14  ;;  %v361_v24 = vadd.f32 %v7224_v2, %v324_v15  ;;  %v326_v25 = vmul.f32 %v7212_v1, %v289_v17  ;;  %v294_v43 = vld [vmem:[%s7219_s10 + $0x60] sm:$0xff]  ;;  %v295_v44 = vld [vmem:[%s7219_s10 + $0x68] sm:$0xff]  ;;  %v296_v61 = vld [vmem:[%s7219_s10 + $0x70] sm:$0xff] }
  0x17   : > { %v388_v28 = vmax.f32 %v356_v18, 0.0  ;;  %v389_v29 = vmax.f32 %v357_v19, 0.0  ;;  %v390_v30 = vmax.f32 %v358_v20, 0.0  ;;  %v362_v31 = vadd.f32 %v7224_v2, %v325_v21  ;;  %v297_v62 = vld [vmem:[%s7219_s10 + $0x78] sm:$0xff]  ;;  %v298_v63 = vld [vmem:[%s7219_s10 + $0x80] sm:$0xff]  ;;  %v299_v0 = vld [vmem:[%s7219_s10 + $0x88] sm:$0xff] }
  0x18   : > { %v391_v32 = vmax.f32 %v359_v22, 0.0  ;;  %v392_v33 = vmax.f32 %v360_v23, 0.0  ;;  %v393_v34 = vmax.f32 %v361_v24, 0.0  ;;  %v363_v35 = vadd.f32 %v7224_v2, %v326_v25  ;;  %v300_v20 = vld [vmem:[%s7219_s10 + $0x90] sm:$0xff]  ;;  %v301_v21 = vld [vmem:[%s7219_s10 + $0x98] sm:$0xff]  ;;  %v302_v22 = vld [vmem:[%s7219_s10 + $0xa0] sm:$0xff] }
  0x19   : > { %v420_v36 = vpack.c.bf16 %v389_v29, %v388_v28  ;;  %v327_v37 = vmul.f32 %v7212_v1, %v290_v26  ;;  %v328_v38 = vmul.f32 %v7212_v1, %v291_v27  ;;  %v394_v47 = vmax.f32 %v362_v31, 0.0  ;;  %v303_v23 = vld [vmem:[%s7219_s10 + $0xa8] sm:$0xff] }
  0x1a   : > { %v421_v41 = vpack.c.bf16 %v391_v32, %v390_v30  ;;  %v422_v42 = vpack.c.bf16 %v393_v34, %v392_v33  ;;  %v395_v48 = vmax.f32 %v363_v35, 0.0  ;;  %v329_v49 = vmul.f32 %v7212_v1, %v292_v39  ;;  %v305_v39 = vld [vmem:[%s7219_s10 + $0xb8] sm:$0xff] }
  0x1b   : > { %6382 = vmatprep.mubr.msk.bf16.mxu0 %vm9324_vm0, %v420_v36  ;;  %v364_v45 = vadd.f32 %v7224_v2, %v327_v37  ;;  %v365_v46 = vadd.f32 %v7224_v2, %v328_v38  ;;  %v330_v50 = vmul.f32 %v7212_v1, %v293_v40  ;;  %v331_v53 = vmul.f32 %v7212_v1, %v294_v43  ;;  %v304_v38 = vld [vmem:[%s7219_s10 + $0xb0] sm:$0xff]  ;;  %v306_v40 = vld [vmem:[%s7219_s10 + $0xc0] sm:$0xff] }
  0x1c   : > { %6383 = vmatmul.mubr.msk.bf16.vlgmr.msra.gmra.mrb[0].mxu0 %vm9324_vm0, %v421_v41  ;;  %v332_v54 = vmul.f32 %v7212_v1, %v295_v44  ;;  %v423_v55 = vpack.c.bf16 %v395_v48, %v394_v47  ;;  %v366_v56 = vadd.f32 %v7224_v2, %v329_v49  ;;  %v333_v6 = vmul.f32 %v7212_v1, %v296_v61  ;;  %v307_v41 = vld [vmem:[%s7219_s10 + $0xc8] sm:$0xff] }
  0x1d   : > { %6386 = vmatprep.mubr.msk.bf16.mxu0 %vm9324_vm0, %v422_v42  ;;  %v396_v51 = vmax.f32 %v364_v45, 0.0  ;;  %v397_v52 = vmax.f32 %v365_v46, 0.0  ;;  %v367_v57 = vadd.f32 %v7224_v2, %v330_v50  ;;  %v368_v59 = vadd.f32 %v7224_v2, %v331_v53 }
  0x1e   : > { %v369_v60 = vadd.f32 %v7224_v2, %v332_v54  ;;  %v398_v3 = vmax.f32 %v366_v56, 0.0  ;;  %v334_v7 = vmul.f32 %v7212_v1, %v297_v62  ;;  %v335_v11 = vmul.f32 %v7212_v1, %v298_v63  ;;  %v308_v56 = vld [vmem:[%s7219_s10 + $0xd0] sm:$0xff] }
  0x1f   : > { %v424_v58 = vpack.c.bf16 %v397_v52, %v396_v51  ;;  %v399_v4 = vmax.f32 %v367_v57, 0.0  ;;  %v400_v9 = vmax.f32 %v368_v59, 0.0  ;;  %v336_v12 = vmul.f32 %v7212_v1, %v299_v0  ;;  %v309_v57 = vld [vmem:[%s7219_s10 + $0xd8] sm:$0xff]  ;;  %v311_v59 = vld [vmem:[%s7219_s10 + $0xe8] sm:$0xff] }
  0x20   : > { %v401_v10 = vmax.f32 %v369_v60, 0.0  ;;  %v370_v15 = vadd.f32 %v7224_v2, %v333_v6  ;;  %v371_v16 = vadd.f32 %v7224_v2, %v334_v7  ;;  %v372_v18 = vadd.f32 %v7224_v2, %v335_v11 }
  0x21   : > { %v425_v14 = vpack.c.bf16 %v399_v4, %v398_v3  ;;  %v373_v19 = vadd.f32 %v7224_v2, %v336_v12  ;;  %v337_v26 = vmul.f32 %v7212_v1, %v300_v20  ;;  %v338_v27 = vmul.f32 %v7212_v1, %v301_v21 }
  0x22   : > { %v426_v17 = vpack.c.bf16 %v401_v10, %v400_v9  ;;  %v402_v24 = vmax.f32 %v370_v15, 0.0  ;;  %v403_v25 = vmax.f32 %v371_v16, 0.0  ;;  %v404_v28 = vmax.f32 %v372_v18, 0.0  ;;  %v312_v15 = vld [vmem:[%s7219_s10 + $0xf0] sm:$0xff]  ;;  %v313_v16 = vld [vmem:[%s7219_s10 + $0xf8] sm:$0xff] }
  0x23   : > { %v405_v29 = vmax.f32 %v373_v19, 0.0  ;;  %v339_v30 = vmul.f32 %v7212_v1, %v302_v22  ;;  %v340_v31 = vmul.f32 %v7212_v1, %v303_v23  ;;  %v374_v33 = vadd.f32 %v7224_v2, %v337_v26 }
  0x24   : > { %6387 = vmatmul.mubr.msk.bf16.gmra.mrb[4].mxu0 %vm9324_vm0, %v423_v55  ;;  %v427_v32 = vpack.c.bf16 %v403_v25, %v402_v24  ;;  %v375_v34 = vadd.f32 %v7224_v2, %v338_v27  ;;  %v341_v44 = vmul.f32 %v7212_v1, %v304_v38  ;;  %v342_v45 = vmul.f32 %v7212_v1, %v305_v39 }
  0x25   : > { %6390 = vmatprep.mubr.msk.bf16.mxu0 %vm9324_vm0, %v424_v58  ;;  %v428_v35 = vpack.c.bf16 %v405_v29, %v404_v28  ;;  %v376_v36 = vadd.f32 %v7224_v2, %v339_v30  ;;  %v377_v37 = vadd.f32 %v7224_v2, %v340_v31  ;;  %v406_v42 = vmax.f32 %v374_v33, 0.0  ;;  %v310_v58 = vld [vmem:[%s7219_s10 + $0xe0] sm:$0xff]  ;;  %v3064_v31 = vld [vmem:[%s9307_s2 + $0xc] sm:$0xf]  ;;  %v7367_v33 = vld [vmem:[%s9307_s2 + $0x10] sm:$0xf] }
  0x26   : > { %v407_v43 = vmax.f32 %v375_v34, 0.0  ;;  %v343_v48 = vmul.f32 %v7212_v1, %v306_v40  ;;  %v344_v49 = vmul.f32 %v7212_v1, %v307_v41  ;;  %v378_v51 = vadd.f32 %v7224_v2, %v341_v44  ;;  %7079 = vmatprep.subr.msk.bf16.mxu1 %vm730_vm4, %v3064_v31 }
  0x27   : > { %v408_v46 = vmax.f32 %v376_v36, 0.0  ;;  %v409_v47 = vmax.f32 %v377_v37, 0.0  ;;  %v379_v52 = vadd.f32 %v7224_v2, %v342_v45  ;;  %v345_v62 = vmul.f32 %v7212_v1, %v308_v56 }
  0x28   : > { %v429_v50 = vpack.c.bf16 %v407_v43, %v406_v42  ;;  %v380_v54 = vadd.f32 %v7224_v2, %v343_v48  ;;  %v381_v55 = vadd.f32 %v7224_v2, %v344_v49  ;;  %v410_v60 = vmax.f32 %v378_v51, 0.0 }
  0x29   : > { %v430_v53 = vpack.c.bf16 %v409_v47, %v408_v46  ;;  %v411_v61 = vmax.f32 %v379_v52, 0.0  ;;  %v346_v63 = vmul.f32 %v7212_v1, %v309_v57  ;;  %v347_v4 = vmul.f32 %v7212_v1, %v310_v58 }
  0x2a   : > { %v412_v0 = vmax.f32 %v380_v54, 0.0  ;;  %v413_v3 = vmax.f32 %v381_v55, 0.0  ;;  %v348_v6 = vmul.f32 %v7212_v1, %v311_v59  ;;  %v382_v9 = vadd.f32 %v7224_v2, %v345_v62  ;;  %v7400_v54 = vld [vmem:[%s9307_s2] sm:$0xf] }
  0x2b   : > { %v431_v7 = vpack.c.bf16 %v411_v61, %v410_v60  ;;  %v383_v10 = vadd.f32 %v7224_v2, %v346_v63  ;;  %v384_v12 = vadd.f32 %v7224_v2, %v347_v4  ;;  %v349_v19 = vmul.f32 %v7212_v1, %v312_v15 }
  0x2c   : > { %6391 = vmatmul.mubr.msk.bf16.gmra.mrb[8].mxu0 %vm9324_vm0, %v425_v14  ;;  %v432_v11 = vpack.c.bf16 %v413_v3, %v412_v0  ;;  %v385_v14 = vadd.f32 %v7224_v2, %v348_v6  ;;  %v350_v20 = vmul.f32 %v7212_v1, %v313_v16  ;;  %v9313_v1 = vmov 0  }
  0x2d   : > { %6394 = vmatprep.mubr.msk.bf16.mxu0 %vm9324_vm0, %v426_v17  ;;  %v414_v17 = vmax.f32 %v382_v9, 0.0  ;;  %v415_v18 = vmax.f32 %v383_v10, 0.0  ;;  %v416_v21 = vmax.f32 %v384_v12, 0.0  ;;  %v386_v24 = vadd.f32 %v7224_v2, %v349_v19  ;;  %696 = vst.msk [vmem:[#allocation2 + $0x88] sm:$0xf0] %vm695_vm2, %v9313_v1 }
  0x2e   : > { %v417_v22 = vmax.f32 %v385_v14, 0.0  ;;  %v387_v25 = vadd.f32 %v7224_v2, %v350_v20  ;;  %692 = vst.msk [vmem:[#allocation2] sm:$0xff] %vm691_vm1, %v9313_v1  ;;  %697 = vst.msk [vmem:[#allocation2 + $0x90] sm:$0xff] %vm691_vm1, %v9313_v1  ;;  %v1650_v2 = vld [vmem:[%s9307_s2 + $0x4] sm:$0xf]  ;;  %v796_v34 = vlaneseq  ;;  %v7380_v45 = vsel %vm1359_vm8, 65537, %v9313_v1 }
  0x2f   : > { %v433_v23 = vpack.c.bf16 %v415_v18, %v414_v17  ;;  %v418_v27 = vmax.f32 %v386_v24, 0.0  ;;  %694 = vst.msk [vmem:[#allocation2 + $0x8] sm:$0xf] %vm693_vm3, %v9313_v1  ;;  %7076 = vmatprep.subr.msk.bf16.mxu0 %vm730_vm4, %v1650_v2  ;;  %v1751_v30 = vsel %vm730_vm4, %v1650_v2, 0 }
  0x30   : > { %v434_v26 = vpack.c.bf16 %v417_v22, %v416_v21  ;;  %v419_v28 = vmax.f32 %v387_v25, 0.0  ;;  %6415 = vmatpush3.bf16.msra.mxu0 %v1751_v30 }
  0x31   : > { %7077 = vmatprep.subr.msk.bf16.mxu0 %vm730_vm4, %v7400_v54 }
  0x32   : > { %v435_v29 = vpack.c.bf16 %v419_v28, %v418_v27 }
  0x34   : > { %6395 = vmatmul.mubr.msk.bf16.gmra.mrb[12].mxu0 %vm9324_vm0, %v427_v32  ;;  %v3266_v32 = vsel %vm730_vm4, %v3064_v31, 0 }
  0x35   : > { %6398 = vmatprep.mubr.msk.bf16.mxu0 %vm9324_vm0, %v428_v35  ;;  %6517 = vmatpush3.bf16.msra.mxu1 %v3266_v32  ;;  %v7371_v35 = vshrl.u32 %v796_v34, 7 }
  0x36   : > { %7080 = vmatprep.subr.msk.bf16.mxu1 %vm730_vm4, %v7367_v33 }
  0x37   : > { %v798_v36 = vadd.s32 8, %v7371_v35  ;;  %v799_v37 = vadd.s32 16, %v7371_v35  ;;  %v833_v38 = vand.u32 15, %v7371_v35  ;;  %v801_v40 = vadd.s32 32, %v7371_v35 }
  0x38   : > { %v800_v42 = vadd.s32 24, %v7371_v35  ;;  %v802_v44 = vadd.s32 40, %v7371_v35  ;;  %v803_v57 = vadd.s32 48, %v7371_v35  ;;  %v805_v62 = vadd.s32 64, %v7371_v35 }
  0x39   : > { %v840_v39 = vand.u32 15, %v798_v36  ;;  %v847_v41 = vand.u32 15, %v799_v37  ;;  %vm1213_vm5 = vcmp.ne.s32.totalorder %v833_v38, 0  ;;  %v861_v43 = vand.u32 15, %v801_v40  ;;  %v7443_v37 = vld [vmem:[#allocation2] sm:$0xf0] }
  0x3a   : > { %vm1358_vm9 = vmpackc.low %vm1213_vm5, %vm1213_vm5  ;;  %v854_v47 = vand.u32 15, %v800_v42  ;;  %v875_v6 = vand.u32 15, %v803_v57  ;;  %v889_v12 = vand.u32 15, %v805_v62  ;;  %v807_v14 = vadd.s32 80, %v7371_v35 }
  0x3b   : > { %vm1246_vm6 = vcmp.ne.s32.totalorder %v840_v39, 15  ;;  %vm1215_vm10 = vcmp.ne.s32.totalorder %v847_v41, 0  ;;  %v1390_v46 = vsel %vm1358_vm9, 65537, %v9313_v1  ;;  %vm7383_vm13 = vcmp.ne.s32.totalorder %v861_v43, 0 }
  0x3c   : > { %6399 = vmatmul.mubr.msk.bf16.gmra.mrb[16].mxu0 %vm9324_vm0, %v429_v50  ;;  %vm2345_vm11 = vmpackc.low %vm1246_vm6, %vm1246_vm6  ;;  %v868_v50 = vand.u32 15, %v802_v44  ;;  %v5962_v51 = vcombine.low %v1390_v46, %v7380_v45  ;;  %vm7390_vm14 = vcmp.ne.s32.totalorder %v854_v47, 15  ;;  %v809_v18 = vadd.s32 96, %v7371_v35  ;;  %v1277_v46 = vld [vmem:[#allocation2] sm:$0xf8] }
  0x3d   : > { %6402 = vmatprep.mubr.msk.bf16.mxu0 %vm9324_vm0, %v430_v53  ;;  %vm1360_vm12 = vmpackc.low %vm1215_vm10, %vm1215_vm10  ;;  %v2377_v49 = vsel %vm2345_vm11, 65537, %v9313_v1  ;;  %vm7425_vm8 = vcmp.ne.s32.totalorder %v875_v6, 0  ;;  %vm7433_vm9 = vcmp.ne.s32.totalorder %v889_v12, 0  ;;  %v813_v31 = vadd.s32 128, %v7371_v35 }
  0x3e   : > { %v1392_v52 = vsel %vm1360_vm12, 65537, %v9313_v1  ;;  %vm1362_vm15 = vmpackc.low %vm7383_vm13, %vm7383_vm13  ;;  %v6010_v55 = vcombine.low %v7380_v45, %v2377_v49  ;;  %vm7405_vm5 = vcmp.ne.s32.totalorder %v868_v50, 15  ;;  %v1472_v59 = vshrl.u32 %v5962_v51, 16 }
  0x3f   : > { %v5963_v58 = vcombine.low %v1392_v52, %v7380_v45  ;;  %v1475_v60 = vshll.u32 %v5962_v51, 16  ;;  %v1394_v61 = vsel %vm1362_vm15, 65537, %v9313_v1  ;;  %vm2347_vm6 = vmpackc.low %vm7390_vm14, %vm7390_vm14  ;;  %v917_v30 = vand.u32 15, %v809_v18 }
  0x40   : > { %v2457_v63 = vshrl.u32 %v6010_v55, 16  ;;  %v2460_v0 = vshll.u32 %v6010_v55, 16  ;;  %v5964_v3 = vcombine.low %v1394_v61, %v7380_v45  ;;  %vm2349_vm7 = vmpackc.low %vm7405_vm5, %vm7405_vm5  ;;  %v2379_v4 = vsel %vm2347_vm6, 65537, %v9313_v1 }
  0x41   : > { %v1477_v9 = vrot.slane %v1475_v60, 5  ;;  %v1480_v10 = vshrl.u32 %v5963_v58, 16  ;;  %v2381_v17 = vsel %vm2349_vm7, 65537, %v9313_v1  ;;  %v6011_v21 = vcombine.low %v7380_v45, %v2379_v4  ;;  %vm1364_vm10 = vmpackc.low %vm7425_vm8, %vm7425_vm8 }
  0x42   : > { %v2459_v15 = vrot.slane %v2457_v63, 3  ;;  %v2462_v16 = vrot.slane %v2460_v0, 4  ;;  %v1489_v19 = vshrl.u32 %v5964_v3, 16  ;;  %v1492_v20 = vshll.u32 %v5964_v3, 16  ;;  %vm1366_vm13 = vmpackc.low %vm7433_vm9, %vm7433_vm9 }
  0x43   : > { %v1482_v24 = vrot.slane %v1480_v10, 4  ;;  %v6012_v27 = vcombine.low %v7380_v45, %v2381_v17  ;;  %vm9334_vm11 = vsmask.f32 3328  ;;  %v2465_v36 = vshrl.u32 %v6011_v21, 16 }
  0x44   : > { %6403 = vmatmul.mubr.msk.bf16.gmra.mrb[20].mxu0 %vm9324_vm0, %v431_v7  ;;  %v1474_v7 = vrot.slane %v1472_v59, 4  ;;  %v7437_v2 = vor.u32 %v2462_v16, %v2459_v15  ;;  %v1491_v32 = vrot.slane %v1489_v19, 4  ;;  %v1494_v34 = vrot.slane %v1492_v20, 5 }
  0x45   : > { %6406 = vmatprep.mubr.msk.bf16.mxu0 %vm9324_vm0, %v432_v11  ;;  %v1483_v11 = vshll.u32 %v5963_v58, 16  ;;  %v2468_v39 = vshll.u32 %v6011_v21, 16  ;;  %v2474_v41 = vshrl.u32 %v6012_v27, 16  ;;  %v2477_v42 = vshll.u32 %v6012_v27, 16 }
  0x46   : > { %9393 = vst [vmem:[#allocation6_spill] sm:$0xff] %v7437_v2  ;;  %v1396_v43 = vsel %vm1364_vm10, 65537, %v9313_v1  ;;  %vm9337_vm15 = vcmp.ne.s16.totalorder %v7437_v2, 0  ;;  %vm7455_vm5 = vcmp.ne.s32.totalorder %v917_v30, 0  ;;  %v945_v48 = vand.u32 15, %v813_v31 }
  0x47   : > { %v1485_v25 = vrot.slane %v1483_v11, 5  ;;  %v815_v49 = vadd.s32 144, %v7371_v35  ;;  %v1668_v50 = vrot.slane %v7443_v37, 4  ;;  %v7461_v51 = vor.u32 %v1494_v34, %v1491_v32  ;;  %vm1370_vm8 = vmpackc.low %vm7455_vm5, %vm7455_vm5 }
  0x48   : > { %v2467_v52 = vrot.slane %v2465_v36, 3  ;;  %v1398_v53 = vsel %vm1366_vm13, 65537, %v9313_v1  ;;  %v2470_v55 = vrot.slane %v2468_v39, 4  ;;  %v5965_v56 = vcombine.low %v1396_v43, %v7380_v45 }
  0x49   : > { %v1486_v38 = vor.u32 %v1485_v25, %v1482_v24  ;;  %v7477_v59 = vsel %vm9337_vm15, %v7443_v37, 0  ;;  %v2476_v60 = vrot.slane %v2474_v41, 3  ;;  %v2479_v61 = vrot.slane %v2477_v42, 4  ;;  %v7745_v37 = vld [vmem:[%s9307_s2 + $0x8] sm:$0xf] }
  0x4a   : > { %v817_v62 = vadd.s32 160, %v7371_v35  ;;  %v5966_v0 = vcombine.low %v1398_v53, %v7380_v45  ;;  %vm7488_vm9 = vcmp.ne.s32.totalorder %v945_v48, 0  ;;  %v959_v4 = vand.u32 15, %v815_v49  ;;  %v7604_v53 = vld [vmem:[%s9311_s6] ss:$0 sm:$0xff]  ;;  %9432 = vst [vmem:[#allocation19_spill] sm:$0xff] %v7745_v37 }
  0x4b   : > { %v7494_v6 = vsel %vm9334_vm11, %v1486_v38, %v7461_v51  ;;  %v7501_v11 = vor.u32 %v2470_v55, %v2467_v52  ;;  %v1498_v12 = vshrl.u32 %v5965_v56, 16  ;;  %v821_v15 = vadd.s32 192, %v7371_v35  ;;  %vm1374_vm13 = vmpackc.low %vm7488_vm9, %vm7488_vm9 }
  0x4c   : > { %6407 = vmatmul.mubr.msk.bf16.gmra.mrb[24].mxu0 %vm9324_vm0, %v433_v23  ;;  %v7429_v23 = vor.u32 %v1477_v9, %v1474_v7  ;;  %9403 = vst [vmem:[#allocation8_spill] sm:$0xff] %v7494_v6  ;;  %v819_v9 = vadd.s32 176, %v7371_v35  ;;  %v7505_v16 = vor.u32 %v2479_v61, %v2476_v60  ;;  %v1501_v17 = vshll.u32 %v5965_v56, 16 }
  0x4d   : > { %6410 = vmatprep.mubr.msk.bf16.mxu0 %vm9324_vm0, %v434_v26  ;;  %v811_v26 = vadd.s32 112, %v7371_v35  ;;  %v973_v18 = vand.u32 15, %v817_v62  ;;  %v1507_v20 = vshrl.u32 %v5966_v0, 16  ;;  %v1510_v25 = vshll.u32 %v5966_v0, 16 }
  0x4e   : > { %9390 = vst [vmem:[#allocation5_spill] sm:$0xff] %v7429_v23  ;;  %vm9330_vm12 = vcmp.ne.s16.totalorder %v7429_v23, 0  ;;  %v7485_v63 = vsel %vm9334_vm11, %v7429_v23, %v1486_v38  ;;  %v987_v27 = vand.u32 15, %v819_v9  ;;  %v1406_v30 = vsel %vm1374_vm13, 65537, %v9313_v1 }
  0x4f   : > { %v931_v40 = vand.u32 15, %v811_v26  ;;  %v1631_v58 = vsel %vm9330_vm12, %v1277_v46, 0  ;;  %9400 = vst [vmem:[#allocation7_spill] sm:$0xff] %v7485_v63  ;;  %v1001_v31 = vand.u32 15, %v821_v15  ;;  %v823_v32 = vadd.s32 208, %v7371_v35 }
  0x50   : > { %v1916_v10 = vshrl.u32 %v1631_v58, 16  ;;  %v1919_v19 = vshll.u32 %v1631_v58, 16  ;;  %vm1914_vm5 = vsmask.f32 4352  ;;  %v1503_v34 = vrot.slane %v1501_v17, 5 }
  0x51   : > { %vm7468_vm7 = vcmp.ne.s32.totalorder %v931_v40, 0  ;;  %v825_v39 = vadd.s32 224, %v7371_v35  ;;  %v1509_v40 = vrot.slane %v1507_v20, 4  ;;  %v827_v43 = vadd.s32 240, %v7371_v35 }
  0x52   : > { %vm1372_vm10 = vmpackc.low %vm7468_vm7, %vm7468_vm7  ;;  %v7517_v28 = vrot.slane %v1916_v10, 3  ;;  %vm7525_vm7 = vcmp.ne.s32.totalorder %v973_v18, 0  ;;  %v1512_v44 = vrot.slane %v1510_v25, 5  ;;  %v5970_v47 = vcombine.low %v1406_v30, %v7380_v45 }
  0x53   : > { %v1404_v22 = vsel %vm1372_vm10, 65537, %v9313_v1  ;;  %vm1378_vm9 = vmpackc.low %vm7525_vm7, %vm7525_vm7  ;;  %vm7540_vm10 = vcmp.ne.s32.totalorder %v1001_v31, 0  ;;  %v1015_v55 = vand.u32 15, %v823_v32  ;;  %v7544_v58 = vrot.slane %v1919_v19, 4 }
  0x54   : > { %6411 = vmatmul.mubr.msk.bf16.gmra.mrb[28].mxu0 %vm9324_vm0, %v435_v29  ;;  %v903_v29 = vand.u32 15, %v807_v14  ;;  %v1402_v14 = vsel %vm1370_vm8, 65537, %v9313_v1  ;;  %v5969_v36 = vcombine.low %v1404_v22, %v7380_v45  ;;  %vm7532_vm8 = vcmp.ne.s32.totalorder %v987_v27, 0 }
  0x55   : > { %v5968_v26 = vcombine.low %v1402_v14, %v7380_v45  ;;  %v1029_v60 = vand.u32 15, %v825_v39  ;;  %vm1380_vm13 = vmpackc.low %vm7532_vm8, %vm7532_vm8  ;;  %v1043_v3 = vand.u32 15, %v827_v43  ;;  %v1410_v10 = vsel %vm1378_vm9, 65537, %v9313_v1 }
  0x56   : > { %vm7450_vm14 = vcmp.ne.s32.totalorder %v903_v29, 0  ;;  %v1500_v29 = vrot.slane %v1498_v12, 4  ;;  %v1534_v56 = vshrl.u32 %v5969_v36, 16  ;;  %v1537_v57 = vshll.u32 %v5969_v36, 16 }
  0x57   : > { %vm1368_vm6 = vmpackc.low %vm7450_vm14, %vm7450_vm14  ;;  %vm7512_vm14 = vcmp.ne.s32.totalorder %v959_v4, 0  ;;  %v1525_v46 = vshrl.u32 %v5968_v26, 16  ;;  %v1528_v49 = vshll.u32 %v5968_v26, 16  ;;  %v1543_v4 = vshrl.u32 %v5970_v47, 16 }
  0x58   : > { %v1400_v7 = vsel %vm1368_vm6, 65537, %v9313_v1  ;;  %vm1376_vm6 = vmpackc.low %vm7512_vm14, %vm7512_vm14  ;;  %v1504_v61 = vor.u32 %v1503_v34, %v1500_v29  ;;  %v1513_v12 = vor.u32 %v1512_v44, %v1509_v40  ;;  %v1536_v18 = vrot.slane %v1534_v56, 4 }
  0x59   : > { %v5967_v21 = vcombine.low %v1400_v7, %v7380_v45  ;;  %v1408_v52 = vsel %vm1376_vm6, 65537, %v9313_v1  ;;  %v1546_v7 = vshll.u32 %v5970_v47, 16  ;;  %vm1382_vm14 = vmpackc.low %vm7540_vm10, %vm7540_vm10  ;;  %v1527_v14 = vrot.slane %v1525_v46, 4 }
  0x5a   : > { %v5971_v9 = vcombine.low %v1408_v52, %v7380_v45  ;;  %v1530_v15 = vrot.slane %v1528_v49, 5  ;;  %vm7554_vm6 = vcmp.ne.s32.totalorder %v1015_v55, 0  ;;  %v1539_v19 = vrot.slane %v1537_v57, 5 }
  0x5b   : > { %v1516_v41 = vshrl.u32 %v5967_v21, 16  ;;  %v1519_v42 = vshll.u32 %v5967_v21, 16  ;;  %v1412_v20 = vsel %vm1380_vm13, 65537, %v9313_v1  ;;  %vm7559_vm7 = vcmp.ne.s32.totalorder %v1029_v60, 0  ;;  %vm1384_vm9 = vmpackc.low %vm7554_vm6, %vm7554_vm6 }
  0x5c   : > { %v5972_v24 = vcombine.low %v1410_v10, %v7380_v45  ;;  %v1414_v25 = vsel %vm1382_vm14, 65537, %v9313_v1  ;;  %vm7565_vm8 = vcmp.ne.s32.totalorder %v1043_v3, 0  ;;  %v1545_v27 = vrot.slane %v1543_v4, 4  ;;  %vm1386_vm10 = vmpackc.low %vm7559_vm7, %vm7559_vm7 }
  0x5d   : > { %v1518_v62 = vrot.slane %v1516_v41, 4  ;;  %v1521_v0 = vrot.slane %v1519_v42, 5  ;;  %v1548_v29 = vrot.slane %v1546_v7, 5  ;;  %v1552_v30 = vshrl.u32 %v5971_v9, 16  ;;  %vm1388_vm13 = vmpackc.low %vm7565_vm8, %vm7565_vm8 }
  0x5e   : > { %v1555_v31 = vshll.u32 %v5971_v9, 16  ;;  %v7575_v32 = vsel %vm1914_vm5, %v7501_v11, %v7505_v16  ;;  %v7579_v34 = vsel %vm9334_vm11, %v7461_v51, %v1504_v61  ;;  %v1531_v36 = vor.u32 %v1530_v15, %v1527_v14 }
  0x5f   : > { %v1522_v22 = vor.u32 %v1521_v0, %v1518_v62  ;;  %9418 = vst [vmem:[#allocation9_spill] sm:$0xff] %v7575_v32  ;;  %9419 = vst [vmem:[#allocation10_spill] sm:$0xff] %v7579_v34  ;;  %v5973_v38 = vcombine.low %v1412_v20, %v7380_v45  ;;  %v7586_v39 = vsel %vm9334_vm11, %v1504_v61, %v1513_v12  ;;  %v1561_v43 = vshrl.u32 %v5972_v24, 16 }
  0x60   : > { %v1540_v40 = vor.u32 %v1539_v19, %v1536_v18  ;;  %v5974_v41 = vcombine.low %v1414_v25, %v7380_v45  ;;  %v1564_v44 = vshll.u32 %v5972_v24, 16  ;;  %v1416_v46 = vsel %vm1384_vm9, 65537, %v9313_v1 }
  0x61   : > { %v7595_v42 = vsel %vm9334_vm11, %v1513_v12, %v1522_v22  ;;  %v7598_v47 = vor.u32 %v1548_v29, %v1545_v27  ;;  %v1554_v48 = vrot.slane %v1552_v30, 4  ;;  %v1557_v49 = vrot.slane %v1555_v31, 5 }
  0x62   : > { %v1418_v52 = vsel %vm1386_vm10, 65537, %v9313_v1  ;;  %v7607_v55 = vsel %vm9334_vm11, %v1522_v22, %v1531_v36  ;;  %v1570_v56 = vshrl.u32 %v5973_v38, 16  ;;  %v1573_v57 = vshll.u32 %v5973_v38, 16 }
  0x63   : > { %v1420_v60 = vsel %vm1388_vm13, 65537, %v9313_v1  ;;  %v7612_v61 = vsel %vm730_vm4, %v7367_v33, 0  ;;  %v7615_v62 = vsel %vm9334_vm11, %v1531_v36, %v1540_v40  ;;  %v1579_v0 = vshrl.u32 %v5974_v41, 16 }
  0x64   : > { %v5975_v3 = vcombine.low %v1416_v46, %v7380_v45  ;;  %v1563_v7 = vrot.slane %v1561_v43, 4  ;;  %v1566_v9 = vrot.slane %v1564_v44, 5  ;;  %v1582_v10 = vshll.u32 %v5974_v41, 16 }
  0x65   : > { %v5976_v12 = vcombine.low %v1418_v52, %v7380_v45  ;;  %v7622_v17 = vsel %vm9334_vm11, %v1540_v40, %v7598_v47  ;;  %v1558_v33 = vor.u32 %v1557_v49, %v1554_v48  ;;  %v5977_v18 = vcombine.low %v1420_v60, %v7380_v45 }
  0x66   : > { %v1572_v21 = vrot.slane %v1570_v56, 4  ;;  %v1575_v22 = vrot.slane %v1573_v57, 5  ;;  %v804_v24 = vadd.s32 56, %v7371_v35  ;;  %v1581_v27 = vrot.slane %v1579_v0, 4 }
  0x67   : > { %v1588_v29 = vshrl.u32 %v5975_v3, 16  ;;  %v1591_v30 = vshll.u32 %v5975_v3, 16  ;;  %v1584_v36 = vrot.slane %v1582_v10, 5  ;;  %v1597_v38 = vshrl.u32 %v5976_v12, 16 }
  0x68   : > { %v1600_v40 = vshll.u32 %v5976_v12, 16  ;;  %v1606_v44 = vshrl.u32 %v5977_v18, 16  ;;  %v1609_v46 = vshll.u32 %v5977_v18, 16  ;;  %v1567_v52 = vor.u32 %v1566_v9, %v1563_v7 }
  0x69   : > { %v882_v56 = vand.u32 15, %v804_v24  ;;  %v1576_v60 = vor.u32 %v1575_v22, %v1572_v21  ;;  %v1593_v0 = vrot.slane %v1591_v30, 5  ;;  %v7636_v21 = vsel %vm9334_vm11, %v7598_v47, %v1558_v33 }
  0x6a   : > { %v1602_v10 = vrot.slane %v1600_v40, 5  ;;  %v1608_v18 = vrot.slane %v1606_v44, 4  ;;  %vm9328_vm6 = vcmp.ne.s16.totalorder %v7485_v63, 0  ;;  %vm9339_vm8 = vcmp.ne.s16.totalorder %v7494_v6, 0 }
  0x6b   : > { %vm7638_vm14 = vcmp.ne.s32.totalorder %v882_v56, 15  ;;  %v7652_v40 = vsel %vm9334_vm11, %v1567_v52, %v1576_v60  ;;  %v2635_v56 = vshrl.u32 %v7477_v59, 16  ;;  %vm9340_vm9 = vcmp.ne.s16.totalorder %v7579_v34, 0 }
  0x6c   : > { %vm2351_vm7 = vmpackc.low %vm7638_vm14, %vm7638_vm14  ;;  %vm1619_vm13 = vcmp.ne.s16.totalorder %v7595_v42, 0  ;;  %vm9354_vm14 = vcmp.ne.s16.totalorder %v7586_v39, 0  ;;  %vm9361_vm0 = vcmp.ne.s16.totalorder %v7622_v17, 0 }
  0xef   : > { %v6384_v4 = vpop.f32.mrb[0].mxu0 }
  0xf0   : > { %v541_v14 = vadd.f32 %v6384_v4, %v7604_v53  ;;  %v532_v15 = vpop.f32.mrb[1].mxu0  ;;  %v1590_v4 = vrot.slane %v1588_v29, 4  ;;  %v7645_v29 = vsel %vm9334_vm11, %v1558_v33, %v1567_v52  ;;  %v7666_v52 = vld [vmem:[%s9307_s2 + $0x14] sm:$0xf] }
  0xf1   : > { %v533_v19 = vadd.f32 %v7604_v53, %v532_v15  ;;  %v6385_v20 = vpop.f32.mrb[2].mxu0 }
  0xf2   : > { %v544_v25 = vadd.f32 %v6385_v20, %v7604_v53  ;;  %v535_v26 = vpop.f32.mrb[3].mxu0  ;;  %v661_v41 = vmax.f32 %v541_v14, 0.0  ;;  %v1585_v20 = vor.u32 %v1584_v36, %v1581_v27  ;;  %v1594_v30 = vor.u32 %v1593_v0, %v1590_v4 }
  0xf3   : > { %v536_v31 = vadd.f32 %v7604_v53, %v535_v26  ;;  %v659_v48 = vmax.f32 %v533_v19, 0.0  ;;  %v1599_v26 = vrot.slane %v1597_v38, 4  ;;  %v1611_v19 = vrot.slane %v1609_v46, 5 }
  0xf4   : > { %v662_v43 = vmax.f32 %v544_v25, 0.0  ;;  %v806_v36 = vadd.s32 72, %v7371_v35  ;;  %v7656_v33 = vsel %vm9334_vm11, %v1576_v60, %v1585_v20  ;;  %v7673_v60 = vsel %vm9334_vm11, %v1585_v20, %v1594_v30 }
  0xf5   : > { %v660_v49 = vmax.f32 %v536_v31, 0.0  ;;  %9422 = vst [vmem:[#allocation11_spill] sm:$0xff] %v7656_v33  ;;  %v7658_v46 = vor.u32 %v1611_v19, %v1608_v18  ;;  %9424 = vst [vmem:[#allocation13_spill] sm:$0xff] %v7673_v60  ;;  %v7678_v0 = vsel %vm1914_vm5, %v7437_v2, %v7501_v11  ;;  %v7694_v19 = vsel %vm730_vm4, %v7666_v52, 0 }
  0xf6   : > { %v7629_v57 = vpack.c.bf16 %v662_v43, %v661_v41  ;;  %v1603_v41 = vor.u32 %v1602_v10, %v1599_v26  ;;  %9425 = vst [vmem:[#allocation14_spill] sm:$0xff] %v7678_v0  ;;  %vm9358_vm15 = vcmp.ne.s16.totalorder %v7656_v33, 0 }
  0xf7   : > { %v698_v15 = vpack.c.bf16 %v660_v49, %v659_v48  ;;  %v6388_v3 = vpop.f32.mrb[4].mxu0  ;;  %9423 = vst [vmem:[#allocation12_spill] sm:$0xff] %v7658_v46 }
  0xf8   : > { %v732_v12 = vrot.slane %v7629_v57, 4  ;;  %v557_v14 = vadd.f32 %v6388_v3, %v7604_v53  ;;  %v548_v25 = vpop.f32.mrb[5].mxu0  ;;  %v2638_v57 = vshll.u32 %v7477_v59, 16  ;;  %v7681_v10 = vsel %vm9334_vm11, %v1594_v30, %v1603_v41 }
  0xf9   : > { %v731_v31 = vrot.slane %v698_v15, 4  ;;  %v549_v7 = vadd.f32 %v7604_v53, %v548_v25  ;;  %v6389_v9 = vpop.f32.mrb[6].mxu0  ;;  %v896_v15 = vand.u32 15, %v806_v36  ;;  %9426 = vst [vmem:[#allocation15_spill] sm:$0xff] %v7681_v10  ;;  %v2383_v59 = vsel %vm2351_vm7, 65537, %v9313_v1 }
  0xfa   : > { %v560_v24 = vadd.f32 %v6389_v9, %v7604_v53  ;;  %v551_v27 = vpop.f32.mrb[7].mxu0  ;;  %v665_v43 = vmax.f32 %v557_v14, 0.0  ;;  %v2116_v14 = vsel %vm730_vm4, %v7400_v54, 0  ;;  %v7690_v11 = vsel %vm9334_vm11, %v1603_v41, %v7658_v46 }
  0xfb   : > { %v733_v38 = vsel %vm730_vm4, %v731_v31, %v732_v12  ;;  %779 = vst.msk [vmem:[#allocation2 + $0x8] sm:$0xf0] %vm695_vm2, %v731_v31  ;;  %v552_v47 = vadd.f32 %v7604_v53, %v551_v27  ;;  %v663_v48 = vmax.f32 %v549_v7, 0.0  ;;  %9427 = vst [vmem:[#allocation16_spill] sm:$0xff] %v7690_v11  ;;  %v7697_v54 = vrot.slane %v2635_v56, 4 }
  0xfc   : > { %780 = vst.msk [vmem:[#allocation2 + $0x10] sm:$0xff] %vm691_vm1, %v733_v38  ;;  %v666_v44 = vmax.f32 %v560_v24, 0.0  ;;  %v7699_v22 = vrot.slane %v2638_v57, 5  ;;  %vm7707_vm2 = vcmp.ne.s32.totalorder %v896_v15, 15  ;;  %vm1621_vm7 = vcmp.ne.s16.totalorder %v7615_v62, 0 }
  0xfd   : > { %v664_v49 = vmax.f32 %v552_v47, 0.0  ;;  %9428 = vst [vmem:[#allocation17_spill] sm:$0xff] %v7697_v54  ;;  %v7705_v47 = vcombine.low %v7380_v45, %v2383_v59  ;;  %vm2353_vm10 = vmpackc.low %vm7707_vm2, %vm7707_vm2  ;;  %vm1620_vm2 = vcmp.ne.s16.totalorder %v7607_v55, 0  ;;  %vm9355_vm11 = vcmp.ne.s16.totalorder %v7673_v60, 0 }
  0xfe   : > { %v7670_v4 = vpack.c.bf16 %v666_v44, %v665_v43  ;;  %9429 = vst [vmem:[#allocation18_spill] sm:$0xff] %v7699_v22 }
  0xff   : > { %v700_v3 = vpack.c.bf16 %v664_v49, %v663_v48  ;;  %v6392_v26 = vpop.f32.mrb[8].mxu0 }
 0x100   : > { %v736_v25 = vrot.slane %v7670_v4, 4  ;;  %v573_v20 = vadd.f32 %v6392_v26, %v7604_v53  ;;  %v564_v18 = vpop.f32.mrb[9].mxu0 }
 0x101   : > { %v734_v31 = vrot.slane %v700_v3, 4  ;;  %v565_v7 = vadd.f32 %v7604_v53, %v564_v18  ;;  %v6393_v9 = vpop.f32.mrb[10].mxu0 }
 0x102   : > { %v669_v24 = vmax.f32 %v573_v20, 0.0  ;;  %v576_v27 = vadd.f32 %v6393_v9, %v7604_v53  ;;  %v567_v30 = vpop.f32.mrb[11].mxu0  ;;  %v7702_v36 = vld [vmem:[#allocation2 + $0x8] sm:$0xff] }
 0x103   : > { %v3030_v38 = vld [vmem:[#allocation2 + $0x8] sm:$0xf8]  ;;  %v735_v43 = vsel %vm730_vm4, %v732_v12, %v734_v31  ;;  %v737_v44 = vsel %vm730_vm4, %v734_v31, %v736_v25  ;;  %v667_v48 = vmax.f32 %v565_v7, 0.0  ;;  %v568_v49 = vadd.f32 %v7604_v53, %v567_v30  ;;  %v7716_v56 = vld [vmem:[#allocation2 + $0x10] sm:$0xff] }
 0x104   : > { %781 = vst.msk [vmem:[#allocation2 + $0x18] sm:$0xff] %vm691_vm1, %v735_v43  ;;  %782 = vst.msk [vmem:[#allocation2 + $0x20] sm:$0xff] %vm691_vm1, %v737_v44  ;;  %v670_v57 = vmax.f32 %v576_v27, 0.0  ;;  %v1669_v15 = vrot.slane %v7702_v36, 4  ;;  %v7722_v3 = vrot.slane %v7716_v56, 4  ;;  %v3047_v12 = vsel %vm9330_vm12, %v3030_v38, 0 }
 0x105   : > { %v668_v26 = vmax.f32 %v568_v49, 0.0  ;;  %v3048_v59 = vsel %vm9328_vm6, %v7716_v56, 0  ;;  %v3066_v20 = vshrl.u32 %v3047_v12, 16  ;;  %v3069_v18 = vshll.u32 %v3047_v12, 16 }
 0x106   : > { %v7731_v31 = vpack.c.bf16 %v670_v57, %v669_v24  ;;  %v1670_v7 = vsel %vm730_vm4, %v1668_v50, %v1669_v15  ;;  %v1672_v9 = vsel %vm730_vm4, %v1669_v15, %v7722_v3  ;;  %v3074_v27 = vshrl.u32 %v3048_v59, 16 }
 0x107   : > { %v702_v30 = vpack.c.bf16 %v668_v26, %v667_v48  ;;  %6416 = vmatprep.mubr.msk.bf16.mxu0 %vm691_vm1, %v1670_v7  ;;  %v6396_v38 = vpop.f32.mrb[12].mxu0  ;;  %v3068_v43 = vrot.slane %v3066_v20, 3  ;;  %v3071_v44 = vrot.slane %v3069_v18, 4  ;;  %v3077_v24 = vshll.u32 %v3048_v59, 16 }
 0x108   : > { %v9315_v50 = vrot.slane %v7731_v31, 4  ;;  %v589_v49 = vadd.f32 %v6396_v38, %v7604_v53  ;;  %6417 = vmatmul.mubr.msk.bf16.vlgmr.msra.gmra.mrb[32].mxu0 %vm691_vm1, %v1672_v9  ;;  %v580_v57 = vpop.f32.mrb[13].mxu0  ;;  %v3076_v15 = vrot.slane %v3074_v27, 3  ;;  %v7759_v18 = vsel %vm2353_vm10, 65537, %v9313_v1 }
 0x109   : > { %v738_v12 = vrot.slane %v702_v30, 4  ;;  %v581_v26 = vadd.f32 %v7604_v53, %v580_v57  ;;  %v6397_v59 = vpop.f32.mrb[14].mxu0  ;;  %v3079_v20 = vrot.slane %v3077_v24, 4  ;;  %6449 = vmatpush3.bf16.msra.mxu0 %v2116_v14  ;;  %v3072_v27 = vor.u32 %v3071_v44, %v3068_v43 }
 0x10a   : > { %v592_v7 = vadd.f32 %v6397_v59, %v7604_v53  ;;  %v583_v9 = vpop.f32.mrb[15].mxu0  ;;  %7078 = vmatprep.subr.msk.bf16.mxu0 %vm730_vm4, %v7745_v37  ;;  %v7766_v30 = vadd.s32 88, %v7371_v35  ;;  %v7769_v14 = vadd.s32 104, %v7371_v35  ;;  %v673_v43 = vmax.f32 %v589_v49, 0.0 }
 0x10b   : > { %v739_v41 = vsel %vm730_vm4, %v736_v25, %v738_v12  ;;  %v741_v38 = vsel %vm730_vm4, %v738_v12, %v9315_v50  ;;  %v584_v44 = vadd.f32 %v7604_v53, %v583_v9  ;;  %v7778_v24 = vld [vmem:[#allocation2 + $0x18] sm:$0xff]  ;;  %v7780_v57 = vld [vmem:[#allocation2 + $0x20] sm:$0xff]  ;;  %v3080_v13 = vor.u32 %v3079_v20, %v3076_v15 }
 0x10c   : > { %783 = vst.msk [vmem:[#allocation2 + $0x28] sm:$0xff] %vm691_vm1, %v739_v41  ;;  %784 = vst.msk [vmem:[#allocation2 + $0x30] sm:$0xff] %vm691_vm1, %v741_v38  ;;  %v674_v59 = vmax.f32 %v592_v7, 0.0  ;;  %v1673_v4 = vrot.slane %v7778_v24, 4  ;;  %v1675_v25 = vrot.slane %v7780_v57, 4  ;;  %v671_v12 = vmax.f32 %v581_v26, 0.0 }
 0x10d   : > { %v672_v49 = vmax.f32 %v584_v44, 0.0  ;;  %v3049_v9 = vsel %vm9339_vm8, %v7778_v24, 0  ;;  %v7793_v41 = vsel %vm9328_vm6, %v7702_v36, 0  ;;  %v3081_v15 = vsel %vm1914_vm5, %v3072_v27, %v3080_v13 }
 0x10e   : > { %v7795_v38 = vpack.c.bf16 %v674_v59, %v673_v43  ;;  %v7800_v20 = vsel %vm730_vm4, %v7722_v3, %v1673_v4  ;;  %v7803_v26 = vsel %vm730_vm4, %v1673_v4, %v1675_v25  ;;  %6518 = vmatprep.mubr.msk.bf16.mxu1 %vm691_vm1, %v3081_v15  ;;  %v3083_v36 = vshrl.u32 %v3049_v9, 16 }
 0x10f   : > { %v704_v7 = vpack.c.bf16 %v672_v49, %v671_v12  ;;  %v6400_v44 = vpop.f32.mrb[16].mxu0  ;;  %6420 = vmatprep.mubr.msk.bf16.mxu0 %vm691_vm1, %v7800_v20  ;;  %v3086_v48 = vshll.u32 %v3049_v9, 16  ;;  %v3050_v27 = vsel %vm9340_vm9, %v7780_v57, 0  ;;  %vm9360_vm10 = vcmp.ne.s16.totalorder %v7636_v21, 0 }
 0x110   : > { %v605_v59 = vadd.f32 %v6400_v44, %v7604_v53  ;;  %v596_v1 = vpop.f32.mrb[17].mxu0  ;;  %6421 = vmatmul.mubr.msk.bf16.gmra.mrb[36].mxu0 %vm691_vm1, %v7803_v26  ;;  %v3092_v4 = vshrl.u32 %v3050_v27, 16  ;;  %v3095_v12 = vshll.u32 %v3050_v27, 16  ;;  %v3085_v50 = vrot.slane %v3083_v36, 3 }
 0x111   : > { %v742_v49 = vrot.slane %v704_v7, 4  ;;  %v597_v15 = vadd.f32 %v7604_v53, %v596_v1  ;;  %v6401_v51 = vpop.f32.mrb[18].mxu0  ;;  %v3088_v9 = vrot.slane %v3086_v48, 4  ;;  %v9433_v44 = vrot.slane %v7731_v31, 4 }
 0x112   : > { %v677_v5 = vmax.f32 %v605_v59, 0.0  ;;  %v608_v8 = vadd.f32 %v6401_v51, %v7604_v53  ;;  %v599_v63 = vpop.f32.mrb[19].mxu0  ;;  %v3094_v23 = vrot.slane %v3092_v4, 3  ;;  %v3097_v43 = vrot.slane %v3095_v12, 4 }
 0x113   : > { %v743_v54 = vsel %vm730_vm4, %v9433_v44, %v742_v49  ;;  %v9434_v27 = vrot.slane %v7795_v38, 4  ;;  %v675_v1 = vmax.f32 %v597_v15, 0.0  ;;  %v600_v36 = vadd.f32 %v7604_v53, %v599_v63  ;;  %v7825_v48 = vld [vmem:[#allocation2 + $0x28] sm:$0xff]  ;;  %v7827_v59 = vld [vmem:[#allocation2 + $0x30] sm:$0xff] }
 0x114   : > { %785 = vst.msk [vmem:[#allocation2 + $0x38] sm:$0xff] %vm691_vm1, %v743_v54  ;;  %v678_v51 = vmax.f32 %v608_v8, 0.0  ;;  %v3089_v4 = vor.u32 %v3088_v9, %v3085_v50  ;;  %v3098_v31 = vor.u32 %v3097_v43, %v3094_v23  ;;  %v1677_v12 = vrot.slane %v7825_v48, 4 }
 0x115   : > { %v745_v7 = vsel %vm730_vm4, %v742_v49, %v9434_v27  ;;  %v676_v44 = vmax.f32 %v600_v36, 0.0  ;;  %v1679_v49 = vrot.slane %v7827_v59, 4  ;;  %v3051_v63 = vsel %vm9354_vm14, %v7825_v48, 0 }
 0x116   : > { %786 = vst.msk [vmem:[#allocation2 + $0x40] sm:$0xff] %vm691_vm1, %v745_v7  ;;  %v3052_v54 = vsel %vm1619_vm13, %v7827_v59, 0  ;;  %v7840_v15 = vpack.c.bf16 %v678_v51, %v677_v5  ;;  %v3090_v8 = vsel %vm1914_vm5, %v3080_v13, %v3089_v4  ;;  %v3099_v23 = vsel %vm1914_vm5, %v3089_v4, %v3098_v31 }
 0x117   : > { %v7845_v50 = vsel %vm730_vm4, %v1675_v25, %v1677_v12  ;;  %v706_v43 = vpack.c.bf16 %v676_v44, %v675_v1  ;;  %6519 = vmatmul.mubr.msk.bf16.vlgmr.msra.gmra.mrb[0].mxu1 %vm691_vm1, %v3090_v8  ;;  %v6404_v9 = vpop.f32.mrb[20].mxu0  ;;  %v7851_v27 = vsel %vm730_vm4, %v1677_v12, %v1679_v49  ;;  %v3101_v7 = vshrl.u32 %v3051_v63, 16 }
 0x118   : > { %9435 = vst [vmem:[#allocation20_spill] sm:$0xff] %v7845_v50  ;;  %6424 = vmatprep.mubr.msk.bf16.mxu0 %vm691_vm1, %v7845_v50  ;;  %9436 = vst [vmem:[#allocation21_spill] sm:$0xff] %v7851_v27  ;;  %v3104_v5 = vshll.u32 %v3051_v63, 16  ;;  %6551 = vmatpush3.bf16.msra.mxu1 %v7612_v61  ;;  %v621_v13 = vadd.f32 %v6404_v9, %v7604_v53  ;;  %v612_v25 = vpop.f32.mrb[21].mxu0  ;;  %v3110_v1 = vshrl.u32 %v3052_v54, 16  ;;  %v3113_v51 = vshll.u32 %v3052_v54, 16 }
 0x119   : > { %6522 = vmatprep.mubr.msk.bf16.mxu1 %vm691_vm1, %v3099_v23  ;;  %v746_v4 = vrot.slane %v706_v43, 4  ;;  %v613_v44 = vadd.f32 %v7604_v53, %v612_v25  ;;  %6425 = vmatmul.mubr.msk.bf16.gmra.mrb[40].mxu0 %vm691_vm1, %v7851_v27  ;;  %v6405_v12 = vpop.f32.mrb[22].mxu0  ;;  %v3103_v8 = vrot.slane %v3101_v7, 3  ;;  %v9437_v54 = vrot.slane %v7795_v38, 4 }
 0x11a   : > { %v3106_v63 = vrot.slane %v3104_v5, 4  ;;  %7081 = vmatprep.subr.msk.bf16.mxu1 %vm730_vm4, %v7666_v52  ;;  %v681_v61 = vmax.f32 %v621_v13, 0.0  ;;  %v624_v23 = vadd.f32 %v6405_v12, %v7604_v53  ;;  %v615_v36 = vpop.f32.mrb[23].mxu0  ;;  %v3112_v9 = vrot.slane %v3110_v1, 3 }
 0x11b   : > { %v3115_v22 = vrot.slane %v3113_v51, 4  ;;  %v747_v43 = vsel %vm730_vm4, %v9437_v54, %v746_v4  ;;  %v9438_v25 = vrot.slane %v7840_v15, 4  ;;  %v679_v5 = vmax.f32 %v613_v44, 0.0  ;;  %v7871_v52 = vld [vmem:[#allocation2 + $0x38] sm:$0xff] }
 0x11c   : > { %v616_v2 = vadd.f32 %v7604_v53, %v615_v36  ;;  %787 = vst.msk [vmem:[#allocation2 + $0x48] sm:$0xff] %vm691_vm1, %v747_v43  ;;  %v682_v1 = vmax.f32 %v624_v23, 0.0  ;;  %v3107_v51 = vor.u32 %v3106_v63, %v3103_v8  ;;  %v1681_v12 = vrot.slane %v7871_v52, 4 }
 0x11d   : > { %v749_v7 = vsel %vm730_vm4, %v746_v4, %v9438_v25  ;;  %v7873_v13 = vld [vmem:[#allocation2 + $0x40] sm:$0xff]  ;;  %v3116_v38 = vor.u32 %v3115_v22, %v3112_v9  ;;  %v3053_v36 = vsel %vm1620_vm2, %v7871_v52, 0  ;;  %vm9338_vm6 = vcmp.ne.s16.totalorder %v7652_v40, 0 }
 0x11e   : > { %788 = vst.msk [vmem:[#allocation2 + $0x50] sm:$0xff] %vm691_vm1, %v749_v7  ;;  %v680_v54 = vmax.f32 %v616_v2, 0.0  ;;  %v1683_v4 = vrot.slane %v7873_v13, 4  ;;  %v3054_v44 = vsel %vm1621_vm7, %v7873_v13, 0  ;;  %v7886_v43 = vpack.c.bf16 %v682_v1, %v681_v61 }
 0x11f   : > { %v3108_v8 = vsel %vm1914_vm5, %v3098_v31, %v3107_v51  ;;  %v3117_v22 = vsel %vm1914_vm5, %v3107_v51, %v3116_v38  ;;  %v7891_v63 = vsel %vm730_vm4, %v1679_v49, %v1681_v12  ;;  %v6408_v23 = vpop.f32.mrb[24].mxu0  ;;  %v3119_v25 = vshrl.u32 %v3053_v36, 16 }
 0x120   : > { %9439 = vst [vmem:[#allocation22_spill] sm:$0xff] %v7891_v63  ;;  %v708_v2 = vpack.c.bf16 %v680_v54, %v679_v5  ;;  %6523 = vmatmul.mubr.msk.bf16.gmra.mrb[4].mxu1 %vm691_vm1, %v3108_v8  ;;  %6428 = vmatprep.mubr.msk.bf16.mxu0 %vm691_vm1, %v7891_v63  ;;  %v7897_v9 = vsel %vm730_vm4, %v1681_v12, %v1683_v4  ;;  %v3122_v61 = vshll.u32 %v3053_v36, 16  ;;  %v628_v49 = vpop.f32.mrb[25].mxu0  ;;  %v3128_v1 = vshrl.u32 %v3054_v44, 16 }
 0x121   : > { %9440 = vst [vmem:[#allocation23_spill] sm:$0xff] %v7897_v9  ;;  %6526 = vmatprep.mubr.msk.bf16.mxu1 %vm691_vm1, %v3117_v22  ;;  %v637_v31 = vadd.f32 %v6408_v23, %v7604_v53  ;;  %v3131_v5 = vshll.u32 %v3054_v44, 16  ;;  %v629_v54 = vadd.f32 %v7604_v53, %v628_v49  ;;  %6429 = vmatmul.mubr.msk.bf16.gmra.mrb[44].mxu0 %vm691_vm1, %v7897_v9  ;;  %v6409_v8 = vpop.f32.mrb[26].mxu0  ;;  %v3121_v12 = vrot.slane %v3119_v25, 3 }
 0x122   : > { %v750_v51 = vrot.slane %v708_v2, 4  ;;  %v3124_v63 = vrot.slane %v3122_v61, 4  ;;  %v640_v36 = vadd.f32 %v6409_v8, %v7604_v53  ;;  %v631_v7 = vpop.f32.mrb[27].mxu0  ;;  %v3130_v27 = vrot.slane %v3128_v1, 3 }
 0x123   : > { %v685_v32 = vmax.f32 %v637_v31, 0.0  ;;  %v3133_v22 = vrot.slane %v3131_v5, 4  ;;  %v9441_v23 = vrot.slane %v7840_v15, 4  ;;  %v9442_v2 = vrot.slane %v7886_v43, 4  ;;  %v7914_v61 = vld [vmem:[#allocation2 + $0x48] sm:$0xff] }
 0x124   : > { %v683_v9 = vmax.f32 %v629_v54, 0.0  ;;  %v632_v25 = vadd.f32 %v7604_v53, %v631_v7  ;;  %v686_v1 = vmax.f32 %v640_v36, 0.0  ;;  %v3125_v5 = vor.u32 %v3124_v63, %v3121_v12 }
 0x125   : > { %v751_v44 = vsel %vm730_vm4, %v9441_v23, %v750_v51  ;;  %v753_v49 = vsel %vm730_vm4, %v750_v51, %v9442_v2  ;;  %v7916_v31 = vld [vmem:[#allocation2 + $0x50] sm:$0xff]  ;;  %v3134_v15 = vor.u32 %v3133_v22, %v3130_v27  ;;  %v1685_v8 = vrot.slane %v7914_v61, 4 }
 0x126   : > { %789 = vst.msk [vmem:[#allocation2 + $0x58] sm:$0xff] %vm691_vm1, %v751_v44  ;;  %790 = vst.msk [vmem:[#allocation2 + $0x60] sm:$0xff] %vm691_vm1, %v753_v49  ;;  %vm9359_vm12 = vcmp.ne.s16.totalorder %v7645_v29, 0  ;;  %v684_v23 = vmax.f32 %v632_v25, 0.0  ;;  %v1687_v51 = vrot.slane %v7916_v31, 4  ;;  %v3055_v7 = vsel %vm9361_vm0, %v7914_v61, 0 }
 0x127   : > { %v3056_v54 = vsel %vm9360_vm10, %v7916_v31, 0  ;;  %v7929_v44 = vpack.c.bf16 %v686_v1, %v685_v32  ;;  %v3126_v63 = vsel %vm1914_vm5, %v3116_v38, %v3125_v5  ;;  %v3135_v27 = vsel %vm1914_vm5, %v3125_v5, %v3134_v15  ;;  %v6412_v22 = vpop.f32.mrb[28].mxu0 }
 0x128   : > { %v7934_v12 = vsel %vm730_vm4, %v1683_v4, %v1685_v8  ;;  %v710_v36 = vpack.c.bf16 %v684_v23, %v683_v9  ;;  %6527 = vmatmul.mubr.msk.bf16.gmra.mrb[8].mxu1 %vm691_vm1, %v3126_v63  ;;  %v7940_v2 = vsel %vm730_vm4, %v1685_v8, %v1687_v51  ;;  %v3137_v49 = vshrl.u32 %v3055_v7, 16  ;;  %v644_v4 = vpop.f32.mrb[29].mxu0 }
 0x129   : > { %9443 = vst [vmem:[#allocation24_spill] sm:$0xff] %v7934_v12  ;;  %6432 = vmatprep.mubr.msk.bf16.mxu0 %vm691_vm1, %v7934_v12  ;;  %9444 = vst [vmem:[#allocation25_spill] sm:$0xff] %v7940_v2  ;;  %v3140_v32 = vshll.u32 %v3055_v7, 16  ;;  %v756_v25 = vrot.slane %v7929_v44, 4  ;;  %6530 = vmatprep.mubr.msk.bf16.mxu1 %vm691_vm1, %v3135_v27  ;;  %v653_v38 = vadd.f32 %v6412_v22, %v7604_v53  ;;  %v3146_v1 = vshrl.u32 %v3056_v54, 16  ;;  %v6413_v63 = vpop.f32.mrb[30].mxu0 }
 0x12a   : > { %v3149_v9 = vshll.u32 %v3056_v54, 16  ;;  %v754_v5 = vrot.slane %v710_v36, 4  ;;  %v645_v23 = vadd.f32 %v7604_v53, %v644_v4  ;;  %6433 = vmatmul.mubr.msk.bf16.gmra.mrb[48].mxu0 %vm691_vm1, %v7940_v2  ;;  %v3139_v8 = vrot.slane %v3137_v49, 3  ;;  %v647_v44 = vpop.f32.mrb[31].mxu0 }
 0x12b   : > { %v3142_v12 = vrot.slane %v3140_v32, 4  ;;  %v689_v50 = vmax.f32 %v653_v38, 0.0  ;;  %v656_v7 = vadd.f32 %v6413_v63, %v7604_v53  ;;  %v3148_v0 = vrot.slane %v3146_v1, 3 }
 0x12c   : > { %v3151_v27 = vrot.slane %v3149_v9, 4  ;;  %v9445_v22 = vrot.slane %v7886_v43, 4  ;;  %v757_v36 = vsel %vm730_vm4, %v754_v5, %v756_v25  ;;  %v687_v4 = vmax.f32 %v645_v23, 0.0 }
 0x12d   : > { %v648_v2 = vadd.f32 %v7604_v53, %v647_v44  ;;  %v7955_v37 = vld [vmem:[#allocation2 + $0x58] sm:$0xff]  ;;  %v7957_v49 = vld [vmem:[#allocation2 + $0x60] sm:$0xff]  ;;  %792 = vst.msk [vmem:[#allocation2 + $0x70] sm:$0xff] %vm691_vm1, %v757_v36  ;;  %v690_v32 = vmax.f32 %v656_v7, 0.0  ;;  %v3143_v38 = vor.u32 %v3142_v12, %v3139_v8 }
 0x12e   : > { %v755_v54 = vsel %vm730_vm4, %v9445_v22, %v754_v5  ;;  %v3152_v43 = vor.u32 %v3151_v27, %v3148_v0  ;;  %v1689_v1 = vrot.slane %v7955_v37, 4  ;;  %v1691_v5 = vrot.slane %v7957_v49, 4 }
 0x12f   : > { %791 = vst.msk [vmem:[#allocation2 + $0x68] sm:$0xff] %vm691_vm1, %v755_v54  ;;  %v688_v9 = vmax.f32 %v648_v2, 0.0  ;;  %v3057_v53 = vsel %vm9359_vm12, %v7955_v37, 0  ;;  %v3058_v23 = vsel %vm9338_vm6, %v7957_v49, 0  ;;  %v713_v63 = vpack.c.bf16 %v690_v32, %v689_v50 }
 0x130   : > { %v3144_v44 = vsel %vm1914_vm5, %v3134_v15, %v3143_v38  ;;  %v3153_v7 = vsel %vm1914_vm5, %v3143_v38, %v3152_v43  ;;  %v7973_v0 = vsel %vm730_vm4, %v1687_v51, %v1689_v1  ;;  %v7979_v2 = vsel %vm730_vm4, %v1689_v1, %v1691_v5 }
 0x131   : > { %9446 = vst [vmem:[#allocation26_spill] sm:$0xff] %v7973_v0  ;;  %v712_v12 = vpack.c.bf16 %v688_v9, %v687_v4  ;;  %6531 = vmatmul.mubr.msk.bf16.gmra.mrb[12].mxu1 %vm691_vm1, %v3144_v44  ;;  %6436 = vmatprep.mubr.msk.bf16.mxu0 %vm691_vm1, %v7973_v0  ;;  %9447 = vst [vmem:[#allocation27_spill] sm:$0xff] %v7979_v2  ;;  %v3155_v8 = vshrl.u32 %v3057_v53, 16  ;;  %v3158_v27 = vshll.u32 %v3057_v53, 16  ;;  %v760_v22 = vrot.slane %v713_v63, 4 }
 0x132   : > { %6534 = vmatprep.mubr.msk.bf16.mxu1 %vm691_vm1, %v3153_v7  ;;  %v3164_v50 = vshrl.u32 %v3058_v23, 16  ;;  %v3167_v15 = vshll.u32 %v3058_v23, 16  ;;  %v1924_v54 = vshrl.u32 %v7793_v41, 16  ;;  %6437 = vmatmul.mubr.msk.bf16.gmra.mrb[52].mxu0 %vm691_vm1, %v7979_v2  ;;  %v910_v32 = vand.u32 15, %v7766_v30 }
 0x133   : > { %v758_v51 = vrot.slane %v712_v12, 4  ;;  %v3157_v36 = vrot.slane %v3155_v8, 3  ;;  %v3160_v4 = vrot.slane %v3158_v27, 4  ;;  %v7989_v38 = vsel %vm9339_vm8, %v7716_v56, 0  ;;  %795 = vst.msk [vmem:[#allocation2 + $0x88] sm:$0xf] %vm693_vm3, %v760_v22 }
 0x134   : > { %v3166_v1 = vrot.slane %v3164_v50, 3  ;;  %v3169_v9 = vrot.slane %v3167_v15, 4  ;;  %v1927_v53 = vshll.u32 %v7793_v41, 16  ;;  %v7997_v12 = vld [vmem:[#allocation2 + $0x70] sm:$0xff]  ;;  %v1926_v30 = vrot.slane %v1924_v54, 3 }
 0x135   : > { %v759_v23 = vsel %vm730_vm4, %v756_v25, %v758_v51  ;;  %v761_v63 = vsel %vm730_vm4, %v758_v51, %v760_v22  ;;  %v3161_v44 = vor.u32 %v3160_v4, %v3157_v36  ;;  %vm9356_vm6 = vcmp.ne.s16.totalorder %v7681_v10, 0 }
 0x136   : > { %v7995_v7 = vld [vmem:[#allocation2 + $0x68] sm:$0xff]  ;;  %793 = vst.msk [vmem:[#allocation2 + $0x78] sm:$0xff] %vm691_vm1, %v759_v23  ;;  %794 = vst.msk [vmem:[#allocation2 + $0x80] sm:$0xff] %vm691_vm1, %v761_v63  ;;  %v3170_v56 = vor.u32 %v3169_v9, %v3166_v1  ;;  %v1695_v41 = vrot.slane %v7997_v12, 4  ;;  %vm9351_vm3 = vcmp.ne.s16.totalorder %v7690_v11, 0  ;;  %v3060_v15 = vsel %vm9355_vm11, %v7997_v12, 0 }
 0x137   : > { %v1693_v8 = vrot.slane %v7995_v7, 4  ;;  %v3059_v25 = vsel %vm9358_vm15, %v7995_v7, 0  ;;  %v3162_v27 = vsel %vm1914_vm5, %v3152_v43, %v3161_v44  ;;  %vm9353_vm8 = vcmp.ne.s16.totalorder %v7658_v46, 0 }
 0x138   : > { %v3173_v22 = vshrl.u32 %v3059_v25, 16  ;;  %v3176_v50 = vshll.u32 %v3059_v25, 16  ;;  %v3171_v54 = vsel %vm1914_vm5, %v3161_v44, %v3170_v56  ;;  %v3182_v4 = vshrl.u32 %v3060_v15, 16 }
 0x139   : > { %v8015_v51 = vsel %vm730_vm4, %v1691_v5, %v1693_v8  ;;  %v8018_v36 = vsel %vm730_vm4, %v1693_v8, %v1695_v41  ;;  %6535 = vmatmul.mubr.msk.bf16.gmra.mrb[16].mxu1 %vm691_vm1, %v3162_v27  ;;  %v3185_v9 = vshll.u32 %v3060_v15, 16  ;;  %v1929_v23 = vrot.slane %v1927_v53, 4 }
 0x13a   : > { %9448 = vst [vmem:[#allocation28_spill] sm:$0xff] %v8015_v51  ;;  %9449 = vst [vmem:[#allocation29_spill] sm:$0xff] %v8018_v36  ;;  %6440 = vmatprep.mubr.msk.bf16.mxu0 %vm691_vm1, %v8015_v51  ;;  %v3175_v43 = vrot.slane %v3173_v22, 3  ;;  %v3178_v1 = vrot.slane %v3176_v50, 4  ;;  %6538 = vmatprep.mubr.msk.bf16.mxu1 %vm691_vm1, %v3171_v54  ;;  %v3184_v63 = vrot.slane %v3182_v4, 3  ;;  %v1634_v5 = vsel %vm9340_vm9, %v7778_v24, 0 }
 0x13b   : > { %v2483_v44 = vshrl.u32 %v7705_v47, 16  ;;  %6441 = vmatmul.mubr.msk.bf16.gmra.mrb[56].mxu0 %vm691_vm1, %v8018_v36  ;;  %v3187_v27 = vrot.slane %v3185_v9, 4  ;;  %v8033_v22 = vcombine.low %v7380_v45, %v7759_v18  ;;  %v924_v53 = vand.u32 15, %v7769_v14 }
 0x13c   : > { %v3179_v25 = vor.u32 %v3178_v1, %v3175_v43  ;;  %v1933_v50 = vshrl.u32 %v7989_v38, 16  ;;  %v1936_v15 = vshll.u32 %v7989_v38, 16  ;;  %vm8038_vm9 = vcmp.ne.s32.totalorder %v910_v32, 15 }
 0x13d   : > { %v8043_v54 = vadd.s32 120, %v7371_v35  ;;  %v3188_v4 = vor.u32 %v3187_v27, %v3184_v63  ;;  %v8045_v43 = vld [vmem:[#allocation2 + $0x78] sm:$0xff]  ;;  %v8047_v1 = vld [vmem:[#allocation2 + $0x80] sm:$0xf]  ;;  %v8049_v18 = vor.u32 %v1929_v23, %v1926_v30  ;;  %v1942_v14 = vshrl.u32 %v1634_v5, 16 }
 0x13e   : > { %9452 = vst [vmem:[#allocation30_spill] sm:$0xff] %v8047_v1  ;;  %v8051_v9 = vld [vmem:[#allocation2 + $0x80] sm:$0xff]  ;;  %v1945_v8 = vshll.u32 %v1634_v5, 16  ;;  %v3180_v38 = vsel %vm1914_vm5, %v3170_v56, %v3179_v25  ;;  %v8055_v32 = vrot.slane %v8045_v43, 4  ;;  %v1699_v34 = vrot.slane %v8047_v1, 4 }
 0x13f   : > { %9453 = vst [vmem:[#allocation31_spill] sm:$0xff] %v8051_v9  ;;  %v3061_v63 = vsel %vm9356_vm6, %v8045_v43, 0  ;;  %v3189_v27 = vsel %vm1914_vm5, %v3179_v25, %v3188_v4  ;;  %v3062_v23 = vsel %vm9351_vm3, %v8051_v9, 0  ;;  %v8065_v5 = vld [vmem:[#allocation2 + $0x88] sm:$0xf]  ;;  %v1935_v0 = vrot.slane %v1933_v50, 3 }
 0x140   : > { %v3191_v6 = vshrl.u32 %v3061_v63, 16  ;;  %v3194_v30 = vshll.u32 %v3061_v63, 16  ;;  %v8069_v56 = vsel %vm730_vm4, %v1695_v41, %v8055_v32  ;;  %v1700_v36 = vsel %vm730_vm4, %v8055_v32, %v1699_v34 }
 0x141   : > { %9454 = vst [vmem:[#allocation32_spill] sm:$0xff] %v8069_v56  ;;  %v3200_v51 = vshrl.u32 %v3062_v23, 16  ;;  %v3203_v2 = vshll.u32 %v3062_v23, 16  ;;  %6539 = vmatmul.mubr.msk.bf16.gmra.mrb[20].mxu1 %vm691_vm1, %v3180_v38  ;;  %6444 = vmatprep.mubr.msk.bf16.mxu0 %vm691_vm1, %v8069_v56  ;;  %v1938_v9 = vrot.slane %v1936_v15, 4  ;;  %v3063_v41 = vsel %vm9353_vm8, %v8065_v5, 0  ;;  %vm2355_vm8 = vmpackc.low %vm8038_vm9, %vm8038_vm9  ;;  %v9493_v33 = vld [vmem:[#allocation28_spill] sm:$0xff] }
 0x142   : > { %v3193_v25 = vrot.slane %v3191_v6, 3  ;;  %v3196_v63 = vrot.slane %v3194_v30, 4  ;;  %6542 = vmatprep.mubr.msk.bf16.mxu1 %vm691_vm1, %v3189_v27  ;;  %vm8080_vm3 = vcmp.ne.s32.totalorder %v924_v53, 15  ;;  %v9457_v6 = vor.u32 %v7544_v58, %v7517_v28 }
 0x143   : > { %v3202_v1 = vrot.slane %v3200_v51, 3  ;;  %v3205_v11 = vrot.slane %v3203_v2, 4  ;;  %6445 = vmatmul.mubr.msk.bf16.gmra.mrb[60].mxu0 %vm691_vm1, %v1700_v36  ;;  %v1944_v38 = vrot.slane %v1942_v14, 3  ;;  %v1947_v51 = vrot.slane %v1945_v8, 4 }
 0x144   : > { %v1931_v50 = vsel %vm1914_vm5, %v9457_v6, %v8049_v18  ;;  %v3197_v15 = vor.u32 %v3196_v63, %v3193_v25  ;;  %v1635_v53 = vsel %vm9354_vm14, %v7780_v57, 0  ;;  %v2485_v27 = vrot.slane %v2483_v44, 3  ;;  %vm2357_vm14 = vmpackc.low %vm8080_vm3, %vm8080_vm3 }
 0x145   : > { %6450 = vmatprep.mubr.msk.bf16.mxu0 %vm691_vm1, %v1931_v50  ;;  %v3206_v2 = vor.u32 %v3205_v11, %v3202_v1  ;;  %v814_v30 = vadd.s32 136, %v7371_v35  ;;  %v1939_v36 = vor.u32 %v1938_v9, %v1935_v0  ;;  %v3209_v23 = vshrl.u32 %v3063_v41, 16 }
 0x146   : > { %v3212_v56 = vshll.u32 %v3063_v41, 16  ;;  %v938_v28 = vand.u32 15, %v8043_v54  ;;  %v3198_v58 = vsel %vm1914_vm5, %v3188_v4, %v3197_v15  ;;  %v1951_v8 = vshrl.u32 %v1635_v53, 16 }
 0x147   : > { %v1954_v11 = vshll.u32 %v1635_v53, 16  ;;  %v1636_v57 = vsel %vm1619_vm13, %v7825_v48, 0  ;;  %v3207_v0 = vsel %vm1914_vm5, %v3197_v15, %v3206_v2  ;;  %v1948_v44 = vor.u32 %v1947_v51, %v1944_v38  ;;  %v8121_v38 = vld [vmem:[#allocation2 + $0x8] sm:$0xf0] }
 0x148   : > { %v1960_v24 = vshrl.u32 %v1636_v57, 16  ;;  %v1963_v1 = vshll.u32 %v1636_v57, 16  ;;  %v9458_v9 = vshll.u32 %v7705_v47, 16  ;;  %v2492_v4 = vshrl.u32 %v8033_v22, 16 }
 0x149   : > { %v2495_v14 = vshll.u32 %v8033_v22, 16  ;;  %v9459_v25 = vmov 0   ;;  %6543 = vmatmul.mubr.msk.bf16.gmra.mrb[24].mxu1 %vm691_vm1, %v3198_v58  ;;  %v3211_v41 = vrot.slane %v3209_v23, 3  ;;  %vm8114_vm9 = vcmp.ne.s32.totalorder %v938_v28, 15 }
 0x14a   : > { %v2488_v54 = vrot.slane %v9458_v9, 4  ;;  %v2387_v63 = vsel %vm2355_vm8, 65537, %v9459_v25  ;;  %v2389_v34 = vsel %vm2357_vm14, 65537, %v9459_v25  ;;  %v952_v50 = vand.u32 15, %v814_v30  ;;  %6546 = vmatprep.mubr.msk.bf16.mxu1 %vm691_vm1, %v3207_v0  ;;  %vm2359_vm8 = vmpackc.low %vm8114_vm9, %vm8114_vm9 }
 0x14b   : > { %v1940_v47 = vsel %vm1914_vm5, %v8049_v18, %v1939_v36  ;;  %v3214_v15 = vrot.slane %v3212_v56, 4  ;;  %v1953_v22 = vrot.slane %v1951_v8, 3  ;;  %v1956_v51 = vrot.slane %v1954_v11, 4 }
 0x14c   : > { %6451 = vmatmul.mubr.msk.bf16.vlgmr.msra.gmra.mrb[32].mxu0 %vm691_vm1, %v1940_v47  ;;  %v1949_v53 = vsel %vm1914_vm5, %v1939_v36, %v1948_v44  ;;  %v1962_v23 = vrot.slane %v1960_v24, 3  ;;  %v1965_v28 = vrot.slane %v1963_v1, 4  ;;  %v1637_v30 = vsel %vm1620_vm2, %v7827_v59, 0 }
 0x14d   : > { %6454 = vmatprep.mubr.msk.bf16.mxu0 %vm691_vm1, %v1949_v53  ;;  %v1638_v18 = vsel %vm1621_vm7, %v7871_v52, 0  ;;  %v8132_v56 = vor.u32 %v2488_v54, %v2485_v27  ;;  %v8134_v58 = vrot.slane %v2492_v4, 3  ;;  %v6015_v8 = vcombine.low %v7380_v45, %v2387_v63 }
 0x14e   : > { %v3480_v36 = vrot.slane %v8121_v38, 4  ;;  %v8138_v11 = vrot.slane %v2495_v14, 4  ;;  %v6016_v57 = vcombine.low %v7380_v45, %v2389_v34  ;;  %v3215_v0 = vor.u32 %v3214_v15, %v3211_v41 }
 0x14f   : > { %v1957_v59 = vor.u32 %v1956_v51, %v1953_v22  ;;  %v1969_v24 = vshrl.u32 %v1637_v30, 16  ;;  %v1972_v1 = vshll.u32 %v1637_v30, 16  ;;  %v1966_v27 = vor.u32 %v1965_v28, %v1962_v23 }
 0x150   : > { %v1978_v9 = vshrl.u32 %v1638_v18, 16  ;;  %v1981_v54 = vshll.u32 %v1638_v18, 16  ;;  %vm8144_vm14 = vcmp.ne.s32.totalorder %v952_v50, 15  ;;  %v3216_v14 = vsel %vm1914_vm5, %v3206_v2, %v3215_v0 }
 0x151   : > { %v8152_v63 = vsel %vm1914_vm5, %v7505_v16, %v8132_v56  ;;  %v2501_v41 = vshrl.u32 %v6015_v8, 16  ;;  %v816_v34 = vadd.s32 152, %v7371_v35  ;;  %6547 = vmatmul.mubr.msk.bf16.gmra.mrb[28].mxu1 %vm691_vm1, %v3216_v14  ;;  %v3482_v6 = vsel %vm730_vm4, %v3480_v36, %v7722_v3  ;;  %vm2361_vm3 = vmpackc.low %vm8144_vm14, %vm8144_vm14 }
 0x152   : > { %v2504_v47 = vshll.u32 %v6015_v8, 16  ;;  %v2510_v50 = vshrl.u32 %v6016_v57, 16  ;;  %v2391_v15 = vsel %vm2359_vm8, 65537, %v9459_v25  ;;  %6552 = vmatprep.mubr.msk.bf16.mxu1 %vm691_vm1, %v3482_v6  ;;  %v1958_v2 = vsel %vm1914_vm5, %v1948_v44, %v1957_v59  ;;  %v8179_v6 = vld [vmem:[%s9307_s2 + $0x18] sm:$0xf] }
 0x153   : > { %v1971_v22 = vrot.slane %v1969_v24, 3  ;;  %v1974_v51 = vrot.slane %v1972_v1, 4  ;;  %v818_v16 = vadd.s32 168, %v7371_v35  ;;  %v1967_v3 = vsel %vm1914_vm5, %v1957_v59, %v1966_v27 }
 0x154   : > { %6455 = vmatmul.mubr.msk.bf16.gmra.mrb[36].mxu0 %vm691_vm1, %v1958_v2  ;;  %v1980_v53 = vrot.slane %v1978_v9, 3  ;;  %v1983_v23 = vrot.slane %v1981_v54, 4  ;;  %v1639_v28 = vsel %vm9361_vm0, %v7873_v13, 0  ;;  %v1640_v44 = vsel %vm9360_vm10, %v7914_v61, 0 }
 0x155   : > { %6458 = vmatprep.mubr.msk.bf16.mxu0 %vm691_vm1, %v1967_v3  ;;  %v2513_v30 = vshll.u32 %v6016_v57, 16  ;;  %v966_v18 = vand.u32 15, %v816_v34  ;;  %v2503_v8 = vrot.slane %v2501_v41, 3  ;;  %v6017_v36 = vcombine.low %v7380_v45, %v2391_v15 }
 0x156   : > { %v2393_v0 = vsel %vm2361_vm3, 65537, %v9459_v25  ;;  %v1975_v59 = vor.u32 %v1974_v51, %v1971_v22  ;;  %v1987_v24 = vshrl.u32 %v1639_v28, 16  ;;  %v1990_v1 = vshll.u32 %v1639_v28, 16  ;;  %v9469_v28 = vld [vmem:[#allocation19_spill] sm:$0xff] }
 0x157   : > { %v980_v9 = vand.u32 15, %v818_v16  ;;  %v1984_v54 = vor.u32 %v1983_v23, %v1980_v53  ;;  %v1996_v4 = vshrl.u32 %v1640_v44, 16  ;;  %v1999_v13 = vshll.u32 %v1640_v44, 16 }
 0x158   : > { %v2506_v14 = vrot.slane %v2504_v47, 4  ;;  %v2512_v61 = vrot.slane %v2510_v50, 3  ;;  %v6018_v57 = vcombine.low %v7380_v45, %v2393_v0  ;;  %vm8182_vm9 = vcmp.ne.s32.totalorder %v966_v18, 15 }
 0x159   : > { %6553 = vmatmul.mubr.msk.bf16.vlgmr.msra.gmra.mrb[0].mxu1 %vm691_vm1, %v7800_v20  ;;  %v2515_v34 = vrot.slane %v2513_v30, 4  ;;  %v2519_v15 = vshrl.u32 %v6017_v36, 16  ;;  %v2522_v2 = vshll.u32 %v6017_v36, 16  ;;  %v1976_v47 = vsel %vm1914_vm5, %v1966_v27, %v1975_v59  ;;  %vm2363_vm14 = vmpackc.low %vm8182_vm9, %vm8182_vm9 }
 0x15a   : > { %6585 = vmatpush3.bf16.msra.mxu1 %v7694_v19  ;;  %6556 = vmatprep.mubr.msk.bf16.mxu1 %vm691_vm1, %v7803_v26  ;;  %v1989_v50 = vrot.slane %v1987_v24, 3  ;;  %v1992_v22 = vrot.slane %v1990_v1, 4  ;;  %vm8192_vm8 = vcmp.ne.s32.totalorder %v980_v9, 15  ;;  %v1985_v20 = vsel %vm1914_vm5, %v1975_v59, %v1984_v54  ;;  %v9470_v9 = vld [vmem:[#allocation14_spill] sm:$0xff] }
 0x15b   : > { %v1998_v16 = vrot.slane %v1996_v4, 3  ;;  %v2001_v3 = vrot.slane %v1999_v13, 4  ;;  %v1641_v19 = vsel %vm9359_vm12, %v7916_v31, 0  ;;  %7082 = vmatprep.subr.msk.bf16.mxu1 %vm730_vm4, %v8179_v6  ;;  %vm9468_vm3 = vcmp.ne.s16.totalorder %v7652_v40, 0  ;;  %vm2365_vm9 = vmpackc.low %vm8192_vm8, %vm8192_vm8 }
 0x15c   : > { %6459 = vmatmul.mubr.msk.bf16.gmra.mrb[40].mxu0 %vm691_vm1, %v1976_v47  ;;  %v1642_v26 = vsel %vm9468_vm3, %v7955_v37, 0  ;;  %v2498_v27 = vor.u32 %v8138_v11, %v8134_v58  ;;  %v2528_v53 = vshrl.u32 %v6018_v57, 16  ;;  %v2531_v23 = vshll.u32 %v6018_v57, 16 }
 0x15d   : > { %6462 = vmatprep.mubr.msk.bf16.mxu0 %vm691_vm1, %v1985_v20  ;;  %v2835_v31 = vsel %vm730_vm4, %v9469_v28, 0  ;;  %v2507_v44 = vor.u32 %v2506_v14, %v2503_v8  ;;  %v8214_v30 = vor.u32 %v2515_v34, %v2512_v61  ;;  %v2521_v18 = vrot.slane %v2519_v15, 3  ;;  %v9471_v14 = vld [vmem:[#allocation20_spill] sm:$0xff]  ;;  %v9472_v15 = vld [vmem:[#allocation21_spill] sm:$0xff] }
 0x15e   : > { %v1993_v36 = vor.u32 %v1992_v22, %v1989_v50  ;;  %v2005_v0 = vshrl.u32 %v1641_v19, 16  ;;  %v2008_v59 = vshll.u32 %v1641_v19, 16  ;;  %6483 = vmatpush3.bf16.msra.mxu0 %v2835_v31  ;;  %v2395_v24 = vsel %vm2363_vm14, 65537, %v9459_v25 }
 0x15f   : > { %v2002_v37 = vor.u32 %v2001_v3, %v1998_v16  ;;  %v2014_v58 = vshrl.u32 %v1642_v26, 16  ;;  %v2017_v11 = vshll.u32 %v1642_v26, 16  ;;  %v2524_v1 = vrot.slane %v2522_v2, 4  ;;  %v9473_v3 = vld [vmem:[#allocation9_spill] sm:$0xff] }
 0x160   : > { %vm9368_vm3 = vcmp.ne.s16.totalorder %v9470_v9, 0  ;;  %v2530_v8 = vrot.slane %v2528_v53, 3  ;;  %v2533_v4 = vrot.slane %v2531_v23, 4  ;;  %v820_v13 = vadd.s32 184, %v7371_v35  ;;  %v7102_v9 = vld [vmem:[#allocation2 + $0x30] sm:$0xff] }
 0x161   : > { %6557 = vmatmul.mubr.msk.bf16.gmra.mrb[4].mxu1 %vm691_vm1, %v9471_v14  ;;  %v8226_v61 = vsel %vm1914_vm5, %v8132_v56, %v2498_v27  ;;  %v8229_v57 = vsel %vm1914_vm5, %v2498_v27, %v2507_v44  ;;  %v6019_v41 = vcombine.low %v7380_v45, %v2395_v24  ;;  %v2397_v34 = vsel %vm2365_vm9, 65537, %v9459_v25 }
 0x162   : > { %6560 = vmatprep.mubr.msk.bf16.mxu1 %vm691_vm1, %v9472_v15  ;;  %v1994_v2 = vsel %vm1914_vm5, %v1984_v54, %v1993_v36  ;;  %v2007_v47 = vrot.slane %v2005_v0, 3  ;;  %v2010_v50 = vrot.slane %v2008_v59, 4  ;;  %v1643_v22 = vsel %vm9358_vm15, %v7957_v49, 0  ;;  %v9476_v0 = vld [vmem:[#allocation30_spill] sm:$0xff] }
 0x163   : > { %v2003_v56 = vsel %vm1914_vm5, %v1993_v36, %v2002_v37  ;;  %v2016_v51 = vrot.slane %v2014_v58, 3  ;;  %v2019_v20 = vrot.slane %v2017_v11, 4  ;;  %v8243_v16 = vsel %vm1914_vm5, %v2507_v44, %v8214_v30  ;;  %v9474_v44 = vld [vmem:[#allocation16_spill] sm:$0xff] }
 0x164   : > { %6463 = vmatmul.mubr.msk.bf16.gmra.mrb[44].mxu0 %vm691_vm1, %v1994_v2  ;;  %vm9367_vm8 = vcmp.ne.s16.totalorder %v9473_v3, 0  ;;  %v1644_v54 = vsel %vm9355_vm11, %v7995_v7, 0  ;;  %v2525_v19 = vor.u32 %v2524_v1, %v2521_v18  ;;  %v8250_v49 = vor.u32 %v2533_v4, %v2530_v8  ;;  %v9481_v2 = vld [vmem:[#allocation23_spill] sm:$0xff] }
 0x165   : > { %6466 = vmatprep.mubr.msk.bf16.mxu0 %vm691_vm1, %v2003_v56  ;;  %v994_v26 = vand.u32 15, %v820_v13  ;;  %v2023_v27 = vshrl.u32 %v1643_v22, 16  ;;  %v2026_v53 = vshll.u32 %v1643_v22, 16  ;;  %v1645_v23 = vsel %vm9356_vm6, %v7997_v12, 0  ;;  %v9480_v13 = vld [vmem:[#allocation22_spill] sm:$0xff] }
 0x166   : > { %vm2602_vm14 = vcmp.ne.s16.totalorder %v8152_v63, 0  ;;  %v6020_v28 = vcombine.low %v7380_v45, %v2397_v34  ;;  %v2011_v31 = vor.u32 %v2010_v50, %v2007_v47  ;;  %vm9475_vm9 = vcmp.ne.s16.totalorder %v9474_v44, 0  ;;  %v9490_v44 = vld [vmem:[#allocation17_spill] sm:$0xff] }
 0x167   : > { %v1646_v36 = vsel %vm9475_vm9, %v8045_v43, 0  ;;  %v2537_v7 = vshrl.u32 %v6019_v41, 16  ;;  %v8261_v18 = vadd.s32 200, %v7371_v35  ;;  %vm9477_vm11 = vcmp.ne.s16.totalorder %v7658_v46, 0 }
 0x168   : > { %v1647_v59 = vsel %vm9477_vm11, %v9476_v0, 0  ;;  %v2020_v24 = vor.u32 %v2019_v20, %v2016_v51  ;;  %v2032_v58 = vshrl.u32 %v1644_v54, 16  ;;  %v2035_v12 = vshll.u32 %v1644_v54, 16  ;;  %v7098_v54 = vld [vmem:[#allocation2 + $0x8] sm:$0xff] }
 0x169   : > { %v2041_v11 = vshrl.u32 %v1645_v23, 16  ;;  %v2044_v1 = vshll.u32 %v1645_v23, 16  ;;  %v2540_v8 = vshll.u32 %v6019_v41, 16  ;;  %vm8266_vm6 = vcmp.ne.s32.totalorder %v994_v26, 15  ;;  %6561 = vmatmul.mubr.msk.bf16.gmra.mrb[8].mxu1 %vm691_vm1, %v9480_v13 }
 0x16a   : > { %v2025_v43 = vrot.slane %v2023_v27, 3  ;;  %v2028_v14 = vrot.slane %v2026_v53, 4  ;;  %v2050_v34 = vshrl.u32 %v1646_v36, 16  ;;  %v2053_v15 = vshll.u32 %v1646_v36, 16  ;;  %6564 = vmatprep.mubr.msk.bf16.mxu1 %vm691_vm1, %v9481_v2  ;;  %vm2367_vm15 = vmpackc.low %vm8266_vm6, %vm8266_vm6 }
 0x16b   : > { %v2012_v47 = vsel %vm1914_vm5, %v2002_v37, %v2011_v31  ;;  %v2059_v50 = vshrl.u32 %v1647_v59, 16  ;;  %v2062_v22 = vshll.u32 %v1647_v59, 16  ;;  %v2546_v56 = vshrl.u32 %v6020_v28, 16 }
 0x16c   : > { %6467 = vmatmul.mubr.msk.bf16.gmra.mrb[48].mxu0 %vm691_vm1, %v2012_v47  ;;  %v2021_v41 = vsel %vm1914_vm5, %v2011_v31, %v2020_v24  ;;  %v2034_v51 = vrot.slane %v2032_v58, 3  ;;  %v2037_v20 = vrot.slane %v2035_v12, 4  ;;  %v2617_v26 = vsel %vm9368_vm3, %v7098_v54, 0  ;;  %v7099_v54 = vld [vmem:[#allocation2 + $0x10] sm:$0xff] }
 0x16d   : > { %vm9369_vm11 = vcmp.ne.s16.totalorder %v8226_v61, 0  ;;  %6470 = vmatprep.mubr.msk.bf16.mxu0 %vm691_vm1, %v2021_v41  ;;  %v2043_v27 = vrot.slane %v2041_v11, 3  ;;  %v2046_v53 = vrot.slane %v2044_v1, 4  ;;  %vm2604_vm9 = vcmp.ne.s16.totalorder %v8229_v57, 0  ;;  %v7100_v1 = vld [vmem:[#allocation2 + $0x18] sm:$0xff] }
 0x16e   : > { %v2539_v37 = vrot.slane %v2537_v7, 3  ;;  %v2549_v23 = vshll.u32 %v6020_v28, 16  ;;  %v2029_v36 = vor.u32 %v2028_v14, %v2025_v43  ;;  %v2052_v0 = vrot.slane %v2050_v34, 3  ;;  %v9482_v34 = vld [vmem:[#allocation24_spill] sm:$0xff] }
 0x16f   : > { %v2055_v59 = vrot.slane %v2053_v15, 4  ;;  %v2542_v31 = vrot.slane %v2540_v8, 4  ;;  %v2061_v58 = vrot.slane %v2059_v50, 3  ;;  %v2064_v12 = vrot.slane %v2062_v22, 4  ;;  %v9483_v22 = vld [vmem:[#allocation25_spill] sm:$0xff] }
 0x170   : > { %v2643_v13 = vshrl.u32 %v2617_v26, 16  ;;  %v2646_v2 = vshll.u32 %v2617_v26, 16  ;;  %v2038_v47 = vor.u32 %v2037_v20, %v2034_v51  ;;  %v2618_v46 = vsel %vm9367_vm8, %v7099_v54, 0 }
 0x171   : > { %v8286_v11 = vsel %vm1914_vm5, %v8214_v30, %v2525_v19  ;;  %v8290_v28 = vsel %vm1914_vm5, %v2525_v19, %v8250_v49  ;;  %v2047_v7 = vor.u32 %v2046_v53, %v2043_v27  ;;  %v2619_v8 = vsel %vm2602_vm14, %v7100_v1, 0  ;;  %6565 = vmatmul.mubr.msk.bf16.gmra.mrb[12].mxu1 %vm691_vm1, %v9482_v34  ;;  %v8334_v34 = vld [vmem:[#allocation2 + $0x20] sm:$0xff] }
 0x172   : > { %v8294_v43 = vrot.slane %v2546_v56, 3  ;;  %v2030_v30 = vsel %vm1914_vm5, %v2020_v24, %v2029_v36  ;;  %v2056_v19 = vor.u32 %v2055_v59, %v2052_v0  ;;  %vm2605_vm12 = vcmp.ne.s16.totalorder %v8243_v16, 0  ;;  %6568 = vmatprep.mubr.msk.bf16.mxu1 %vm691_vm1, %v9483_v22 }
 0x173   : > { %v8304_v15 = vor.u32 %v2542_v31, %v2539_v37  ;;  %v8306_v50 = vrot.slane %v2549_v23, 4  ;;  %v2065_v56 = vor.u32 %v2064_v12, %v2061_v58  ;;  %v2645_v41 = vrot.slane %v2643_v13, 4  ;;  %v9484_v23 = vld [vmem:[#allocation6_spill] sm:$0xff]  ;;  %v9486_v31 = vld [vmem:[#allocation31_spill] sm:$0xff] }
 0x174   : > { %v2648_v51 = vrot.slane %v2646_v2, 5  ;;  %v2652_v20 = vshrl.u32 %v2618_v46, 16  ;;  %vm9373_vm10 = vcmp.ne.s16.totalorder %v8286_v11, 0  ;;  %6471 = vmatmul.mubr.msk.bf16.gmra.mrb[52].mxu0 %vm691_vm1, %v2030_v30  ;;  %v2039_v24 = vsel %vm1914_vm5, %v2029_v36, %v2038_v47 }
 0x175   : > { %v2655_v26 = vshll.u32 %v2618_v46, 16  ;;  %v2661_v27 = vshrl.u32 %v2619_v8, 16  ;;  %v8319_v53 = vsel %vm2367_vm15, 65537, %v9459_v25  ;;  %v3760_v37 = vsel %vm9367_vm8, %v7100_v1, 0  ;;  %6474 = vmatprep.mubr.msk.bf16.mxu0 %vm691_vm1, %v2039_v24 }
 0x176   : > { %vm9485_vm0 = vcmp.ne.s16.totalorder %v9484_v23, 0  ;;  %v2048_v46 = vsel %vm1914_vm5, %v2038_v47, %v2047_v7  ;;  %v2664_v36 = vshll.u32 %v2619_v8, 16  ;;  %v2057_v59 = vsel %vm1914_vm5, %v2047_v7, %v2056_v19 }
 0x177   : > { %v3758_v0 = vsel %vm9485_vm0, %v8121_v38, 0  ;;  %v3509_v58 = vrot.slane %v9486_v31, 4  ;;  %v3511_v4 = vrot.slane %v8065_v5, 4  ;;  %v3759_v12 = vsel %vm9368_vm3, %v7099_v54, 0 }
 0x178   : > { %v2066_v13 = vsel %vm1914_vm5, %v2056_v19, %v2065_v56  ;;  %v2649_v2 = vor.u32 %v2648_v51, %v2645_v41  ;;  %v2654_v1 = vrot.slane %v2652_v20, 4  ;;  %v2620_v38 = vsel %vm9369_vm11, %v8334_v34, 0  ;;  %v9487_v56 = vld [vmem:[#allocation26_spill] sm:$0xff] }
 0x179   : > { %v2657_v47 = vrot.slane %v2655_v26, 5  ;;  %v2663_v8 = vrot.slane %v2661_v27, 4  ;;  %v3777_v7 = vshrl.u32 %v3758_v0, 16  ;;  %v2621_v5 = vsel %vm2604_vm9, %v7825_v48, 0  ;;  %6569 = vmatmul.mubr.msk.bf16.gmra.mrb[16].mxu1 %vm691_vm1, %v9487_v56  ;;  %v9488_v26 = vld [vmem:[#allocation27_spill] sm:$0xff] }
 0x17a   : > { %v2666_v30 = vrot.slane %v2664_v36, 5  ;;  %v3780_v22 = vshll.u32 %v3758_v0, 16  ;;  %v3785_v54 = vshrl.u32 %v3759_v12, 16  ;;  %v3761_v19 = vsel %vm2602_vm14, %v8334_v34, 0  ;;  %6572 = vmatprep.mubr.msk.bf16.mxu1 %vm691_vm1, %v9488_v26 }
 0x17b   : > { %v8349_v41 = vsel %vm730_vm4, %v8055_v32, %v3509_v58  ;;  %v3788_v51 = vshll.u32 %v3759_v12, 16  ;;  %v2670_v20 = vshrl.u32 %v2620_v38, 16  ;;  %v2673_v24 = vshll.u32 %v2620_v38, 16 }
 0x17c   : > { %v2679_v48 = vshrl.u32 %v2621_v5, 16  ;;  %v2682_v27 = vshll.u32 %v2621_v5, 16  ;;  %v3794_v0 = vshrl.u32 %v3760_v37, 16  ;;  %v3797_v36 = vshll.u32 %v3760_v37, 16  ;;  %6475 = vmatmul.mubr.msk.bf16.gmra.mrb[56].mxu0 %vm691_vm1, %v2048_v46 }
 0x17d   : > { %v2658_v31 = vor.u32 %v2657_v47, %v2654_v1  ;;  %v3779_v14 = vrot.slane %v3777_v7, 4  ;;  %v3803_v3 = vshrl.u32 %v3761_v19, 16  ;;  %v3806_v56 = vshll.u32 %v3761_v19, 16  ;;  %6478 = vmatprep.mubr.msk.bf16.mxu0 %vm691_vm1, %v2057_v59  ;;  %v9489_v19 = vld [vmem:[#allocation18_spill] sm:$0xff] }
 0x17e   : > { %v2667_v32 = vor.u32 %v2666_v30, %v2663_v8  ;;  %v3782_v23 = vrot.slane %v3780_v22, 5  ;;  %v3787_v12 = vrot.slane %v3785_v54, 4  ;;  %v2622_v38 = vsel %vm2605_vm12, %v7102_v9, 0 }
 0x17f   : > { %vm9371_vm0 = vcmp.ne.s16.totalorder %v8290_v28, 0  ;;  %v3790_v5 = vrot.slane %v3788_v51, 5  ;;  %v2672_v26 = vrot.slane %v2670_v20, 4  ;;  %v2675_v37 = vrot.slane %v2673_v24, 5 }
 0x180   : > { %v2623_v46 = vsel %vm9373_vm10, %v7871_v52, 0  ;;  %v2681_v1 = vrot.slane %v2679_v48, 4  ;;  %v2684_v47 = vrot.slane %v2682_v27, 5  ;;  %v3796_v7 = vrot.slane %v3794_v0, 4  ;;  %v9496_v0 = vld [vmem:[#allocation29_spill] sm:$0xff] }
 0x181   : > { %v3799_v59 = vrot.slane %v3797_v36, 5  ;;  %v3805_v8 = vrot.slane %v3803_v3, 4  ;;  %v3808_v30 = vrot.slane %v3806_v56, 5  ;;  %v2688_v22 = vshrl.u32 %v2622_v38, 16  ;;  %6573 = vmatmul.mubr.msk.bf16.gmra.mrb[20].mxu1 %vm691_vm1, %v9493_v33 }
 0x182   : > { %v2691_v54 = vshll.u32 %v2622_v38, 16  ;;  %v9491_v10 = vor.u32 %v9489_v19, %v9490_v44  ;;  %vm9492_vm15 = vsmask.f32 3328  ;;  %v8366_v51 = vsel %vm730_vm4, %v3509_v58, %v3511_v4  ;;  %6576 = vmatprep.mubr.msk.bf16.mxu1 %vm691_vm1, %v9496_v0 }
 0x183   : > { %v2697_v20 = vshrl.u32 %v2623_v46, 16  ;;  %v2700_v24 = vshll.u32 %v2623_v46, 16  ;;  %vm9494_vm6 = vmmov %vm9492_vm15  ;;  %v3783_v48 = vor.u32 %v3782_v23, %v3779_v14  ;;  %v3791_v27 = vor.u32 %v3790_v5, %v3787_v12 }
 0x184   : > { %v2650_v60 = vsel %vm9492_vm15, %v9491_v10, %v2649_v2  ;;  %v2659_v52 = vsel %vm9494_vm6, %v2649_v2, %v2658_v31  ;;  %vm9495_vm8 = vmmov %vm9494_vm6  ;;  %v2676_v44 = vor.u32 %v2675_v37, %v2672_v26  ;;  %v2685_v36 = vor.u32 %v2684_v47, %v2681_v1  ;;  %v7103_v10 = vld [vmem:[#allocation2 + $0x28] sm:$0xff]  ;;  %6479 = vmatmul.mubr.msk.bf16.gmra.mrb[60].mxu0 %vm691_vm1, %v2066_v13 }
 0x185   : > { %v2668_v3 = vsel %vm9495_vm8, %v2658_v31, %v2667_v32  ;;  %v3762_v58 = vsel %vm9369_vm11, %v7103_v10, 0  ;;  %v824_v4 = vadd.s32 216, %v7371_v35  ;;  %v3800_v33 = vor.u32 %v3799_v59, %v3796_v7  ;;  %6484 = vmatprep.mubr.msk.bf16.mxu0 %vm691_vm1, %v2650_v60  ;;  %vm9500_vm15 = vmmov %vm9494_vm6 }
 0x186   : > { %v8378_v56 = vor.u32 %v3808_v30, %v3805_v8  ;;  %v2690_v2 = vrot.slane %v2688_v22, 4  ;;  %v2693_v31 = vrot.slane %v2691_v54, 5  ;;  %v2699_v14 = vrot.slane %v2697_v20, 4  ;;  %vm9501_vm3 = vmmov %vm9494_vm6  ;;  %v9505_v54 = vld [vmem:[#allocation32_spill] sm:$0xff] }
 0x187   : > { %v2702_v23 = vrot.slane %v2700_v24, 5  ;;  %v6021_v12 = vcombine.low %v7380_v45, %v8319_v53  ;;  %v9497_v38 = vand.u32 15, %v8261_v18  ;;  %v8391_v13 = vsel %vm730_vm4, %v8179_v6, 0  ;;  %vm9502_vm11 = vmmov %vm9501_vm3  ;;  %v7104_v6 = vld [vmem:[#allocation2 + $0x40] sm:$0xff] }
 0x188   : > { %v3812_v26 = vshrl.u32 %v3762_v58, 16  ;;  %v3815_v37 = vshll.u32 %v3762_v58, 16  ;;  %v1022_v46 = vand.u32 15, %v824_v4  ;;  %v3792_v60 = vsel %vm9500_vm15, %v3783_v48, %v3791_v27 }
 0x189   : > { %vm8385_vm8 = vcmp.ne.s32.totalorder %v9497_v38, 15  ;;  %v8395_v1 = vsel %vm9494_vm6, %v2667_v32, %v2676_v44  ;;  %v8398_v53 = vsel %vm9501_vm3, %v2676_v44, %v2685_v36  ;;  %v3763_v18 = vsel %vm2604_vm9, %v7102_v9, 0  ;;  %6577 = vmatmul.mubr.msk.bf16.gmra.mrb[24].mxu1 %vm691_vm1, %v9505_v54 }
 0x18a   : > { %v8403_v47 = vsel %vm9502_vm11, %v3791_v27, %v3800_v33  ;;  %v2694_v7 = vor.u32 %v2693_v31, %v2690_v2  ;;  %v2624_v59 = vsel %vm9371_vm0, %v7104_v6, 0  ;;  %vm2369_vm15 = vmpackc.low %vm8385_vm8, %vm8385_vm8  ;;  %vm8410_vm6 = vcmp.ne.s32.totalorder %v1022_v46, 15  ;;  %6580 = vmatprep.mubr.msk.bf16.mxu1 %vm691_vm1, %v8349_v41 }
 0x18b   : > { %v8416_v8 = vsel %vm9501_vm3, %v3800_v33, %v8378_v56  ;;  %v8418_v9 = vor.u32 %v2702_v23, %v2699_v14  ;;  %v2555_v30 = vshrl.u32 %v6021_v12, 16  ;;  %v2558_v22 = vshll.u32 %v6021_v12, 16  ;;  %vm2371_vm11 = vmpackc.low %vm8410_vm6, %vm8410_vm6 }
 0x18c   : > { %v3814_v19 = vrot.slane %v3812_v26, 4  ;;  %v3817_v20 = vrot.slane %v3815_v37, 5  ;;  %v3821_v24 = vshrl.u32 %v3763_v18, 16  ;;  %v3824_v48 = vshll.u32 %v3763_v18, 16  ;;  %6485 = vmatmul.mubr.msk.bf16.vlgmr.msra.gmra.mrb[32].mxu0 %vm691_vm1, %v2659_v52  ;;  %vm9506_vm6 = vmmov %vm9501_vm3  ;;  %v7105_v26 = vld [vmem:[#allocation2 + $0x38] sm:$0xff] }
 0x18d   : > { %v2706_v27 = vshrl.u32 %v2624_v59, 16  ;;  %v2709_v0 = vshll.u32 %v2624_v59, 16  ;;  %v8430_v44 = vsel %vm1914_vm5, %v8250_v49, %v8304_v15  ;;  %v2401_v10 = vsel %vm2369_vm15, 65537, %v9459_v25  ;;  %6488 = vmatprep.mubr.msk.bf16.mxu0 %vm691_vm1, %v2668_v3 }
 0x18e   : > { %v8440_v58 = vsel %vm9506_vm6, %v2685_v36, %v2694_v7  ;;  %v2403_v41 = vsel %vm2371_vm11, 65537, %v9459_v25  ;;  %v826_v4 = vadd.s32 232, %v7371_v35  ;;  %v828_v33 = vadd.s32 248, %v7371_v35 }
 0x18f   : > { %v8448_v49 = vsel %vm9501_vm3, %v2694_v7, %v8418_v9  ;;  %v2552_v2 = vor.u32 %v8306_v50, %v8294_v43  ;;  %v2557_v31 = vrot.slane %v2555_v30, 3  ;;  %v2560_v52 = vrot.slane %v2558_v22, 4  ;;  %v7106_v50 = vld [vmem:[#allocation2 + $0x48] sm:$0xff] }
 0x190   : > { %v3823_v14 = vrot.slane %v3821_v24, 4  ;;  %vm9370_vm8 = vcmp.ne.s16.totalorder %v8430_v44, 0  ;;  %v6022_v36 = vcombine.low %v7380_v45, %v2401_v10  ;;  %v1036_v23 = vand.u32 15, %v826_v4 }
 0x191   : > { %v3818_v12 = vor.u32 %v3817_v20, %v3814_v19  ;;  %v3826_v38 = vrot.slane %v3824_v48, 5  ;;  %v2708_v35 = vrot.slane %v2706_v27, 4  ;;  %v6023_v3 = vcombine.low %v7380_v45, %v2403_v41  ;;  %6581 = vmatmul.mubr.msk.bf16.gmra.mrb[28].mxu1 %vm691_vm1, %v8366_v51 }
 0x192   : > { %v2711_v5 = vrot.slane %v2709_v0, 5  ;;  %v3764_v37 = vsel %vm2605_vm12, %v7105_v26, 0  ;;  %vm1274_vm15 = vcmp.ne.s32.totalorder %v1036_v23, 15  ;;  %v1050_v43 = vand.u32 15, %v828_v33  ;;  %6586 = vmatprep.mubr.msk.bf16.mxu1 %vm691_vm1, %v3792_v60 }
 0x193   : > { %v2625_v46 = vsel %vm9370_vm8, %v7106_v50, 0  ;;  %v3765_v18 = vsel %vm9373_vm10, %v7104_v6, 0  ;;  %v8463_v7 = vsel %vm1914_vm5, %v8304_v15, %v2552_v2  ;;  %v8465_v59 = vor.u32 %v2560_v52, %v2557_v31  ;;  %vm2373_vm11 = vmpackc.low %vm1274_vm15, %vm1274_vm15  ;;  %v7107_v31 = vld [vmem:[#allocation2 + $0x50] sm:$0xff] }
 0x194   : > { %v2564_v32 = vshrl.u32 %v6022_v36, 16  ;;  %v2567_v30 = vshll.u32 %v6022_v36, 16  ;;  %v2405_v22 = vsel %vm2373_vm11, 65537, %v9459_v25  ;;  %vm8470_vm6 = vcmp.ne.s32.totalorder %v1050_v43, 15  ;;  %6489 = vmatmul.mubr.msk.bf16.gmra.mrb[36].mxu0 %vm691_vm1, %v8395_v1 }
 0x195   : > { %v8477_v15 = vsel %vm9501_vm3, %v8378_v56, %v3818_v12  ;;  %v8479_v6 = vor.u32 %v3826_v38, %v3823_v14  ;;  %v2573_v19 = vshrl.u32 %v6023_v3, 16  ;;  %v2576_v20 = vshll.u32 %v6023_v3, 16  ;;  %vm2375_vm15 = vmpackc.low %vm8470_vm6, %vm8470_vm6  ;;  %6492 = vmatprep.mubr.msk.bf16.mxu0 %vm691_vm1, %v8398_v53 }
 0x196   : > { %v8486_v51 = vor.u32 %v2711_v5, %v2708_v35  ;;  %v2715_v24 = vshrl.u32 %v2625_v46, 16  ;;  %v2718_v48 = vshll.u32 %v2625_v46, 16  ;;  %vm9372_vm11 = vcmp.ne.s16.totalorder %v8463_v7, 0  ;;  %vm9509_vm6 = vmmov %vm9501_vm3  ;;  %v8508_v5 = vld [vmem:[%s9307_s2 + $0x1c] sm:$0xf] }
 0x197   : > { %v3830_v56 = vshrl.u32 %v3764_v37, 16  ;;  %v3833_v60 = vshll.u32 %v3764_v37, 16  ;;  %v3839_v27 = vshrl.u32 %v3765_v18, 16  ;;  %v6024_v0 = vcombine.low %v7380_v45, %v2405_v22 }
 0x198   : > { %v8494_v10 = vsel %vm1914_vm5, %v2552_v2, %v8465_v59  ;;  %v2566_v41 = vrot.slane %v2564_v32, 3  ;;  %v2569_v1 = vrot.slane %v2567_v30, 4  ;;  %v2407_v4 = vsel %vm2375_vm15, 65537, %v9459_v25  ;;  %v7108_v30 = vld [vmem:[#allocation2 + $0x58] sm:$0xff] }
 0x199   : > { %v3842_v33 = vshll.u32 %v3765_v18, 16  ;;  %v2626_v52 = vsel %vm9372_vm11, %v7107_v31, 0  ;;  %v2575_v14 = vrot.slane %v2573_v19, 3  ;;  %v2578_v53 = vrot.slane %v2576_v20, 4  ;;  %6587 = vmatmul.mubr.msk.bf16.vlgmr.msra.gmra.mrb[0].mxu1 %vm691_vm1, %v8403_v47 }
 0x19a   : > { %v3828_v36 = vsel %vm9509_vm6, %v3818_v12, %v8479_v6  ;;  %v2717_v23 = vrot.slane %v2715_v24, 4  ;;  %v2720_v38 = vrot.slane %v2718_v48, 5  ;;  %v3766_v2 = vsel %vm9371_vm0, %v7106_v50, 0  ;;  %6619 = vmatpush3.bf16.msra.mxu1 %v8391_v13  ;;  %6590 = vmatprep.mubr.msk.bf16.mxu1 %vm691_vm1, %v8416_v8 }
 0x19b   : > { %vm2610_vm3 = vcmp.ne.s16.totalorder %v8494_v10, 0  ;;  %v2582_v35 = vshrl.u32 %v6024_v0, 16  ;;  %v2585_v3 = vshll.u32 %v6024_v0, 16  ;;  %v6025_v25 = vcombine.low %v7380_v45, %v2407_v4  ;;  %7083 = vmatprep.subr.msk.bf16.mxu1 %vm730_vm4, %v8508_v5 }
 0x19c   : > { %v3832_v12 = vrot.slane %v3830_v56, 4  ;;  %v2724_v26 = vshrl.u32 %v2626_v52, 16  ;;  %v2727_v37 = vshll.u32 %v2626_v52, 16  ;;  %v2570_v43 = vor.u32 %v2569_v1, %v2566_v41  ;;  %6493 = vmatmul.mubr.msk.bf16.gmra.mrb[40].mxu0 %vm691_vm1, %v8440_v58 }
 0x19d   : > { %v3835_v50 = vrot.slane %v3833_v60, 5  ;;  %v3841_v46 = vrot.slane %v3839_v27, 4  ;;  %v3844_v45 = vrot.slane %v3842_v33, 5  ;;  %v2579_v18 = vor.u32 %v2578_v53, %v2575_v14  ;;  %6496 = vmatprep.mubr.msk.bf16.mxu0 %vm691_vm1, %v8448_v49 }
 0x19e   : > { %v2721_v32 = vor.u32 %v2720_v38, %v2717_v23  ;;  %v2627_v47 = vsel %vm2610_vm3, %v7108_v30, 0  ;;  %v3848_v22 = vshrl.u32 %v3766_v2, 16  ;;  %v3767_v54 = vsel %vm9370_vm8, %v7107_v31, 0 }
 0x19f   : > { %v2584_v13 = vrot.slane %v2582_v35, 3  ;;  %v2587_v8 = vrot.slane %v2585_v3, 4  ;;  %v2591_v19 = vshrl.u32 %v6025_v25, 16  ;;  %v2594_v20 = vshll.u32 %v6025_v25, 16 }
 0x1a0   : > { %v2726_v58 = vrot.slane %v2724_v26, 4  ;;  %v2729_v24 = vrot.slane %v2727_v37, 5  ;;  %v3851_v48 = vshll.u32 %v3766_v2, 16  ;;  %v8527_v56 = vsel %vm1914_vm5, %v8465_v59, %v2570_v43 }
 0x1a1   : > { %v3836_v60 = vor.u32 %v3835_v50, %v3832_v12  ;;  %v8529_v27 = vor.u32 %v3844_v45, %v3841_v46  ;;  %v3857_v0 = vshrl.u32 %v3767_v54, 16  ;;  %v8532_v41 = vsel %vm1914_vm5, %v2570_v43, %v2579_v18  ;;  %6591 = vmatmul.mubr.msk.bf16.gmra.mrb[4].mxu1 %vm691_vm1, %v8477_v15  ;;  %v7109_v12 = vld [vmem:[#allocation2 + $0x60] sm:$0xff] }
 0x1a2   : > { %v2733_v1 = vshrl.u32 %v2627_v47, 16  ;;  %v2736_v49 = vshll.u32 %v2627_v47, 16  ;;  %v3850_v4 = vrot.slane %v3848_v22, 4  ;;  %v3860_v33 = vshll.u32 %v3767_v54, 16  ;;  %6594 = vmatprep.mubr.msk.bf16.mxu1 %vm691_vm1, %v3828_v36  ;;  %v7110_v36 = vld [vmem:[#allocation2 + $0x68] sm:$0xff] }
 0x1a3   : > { %vm9375_vm15 = vcmp.ne.s16.totalorder %v8527_v56, 0  ;;  %v2588_v31 = vor.u32 %v2587_v8, %v2584_v13  ;;  %v2593_v52 = vrot.slane %v2591_v19, 3  ;;  %v2596_v14 = vrot.slane %v2594_v20, 4 }
 0x1a4   : > { %v2730_v59 = vor.u32 %v2729_v24, %v2726_v58  ;;  %v3853_v53 = vrot.slane %v3851_v48, 5  ;;  %vm9374_vm6 = vcmp.ne.s16.totalorder %v8532_v41, 0  ;;  %v3768_v23 = vsel %vm9372_vm11, %v7108_v30, 0 }
 0x1a5   : > { %vm9510_vm8 = vsmask.f32 3328  ;;  %v3859_v35 = vrot.slane %v3857_v0, 4  ;;  %v2735_v15 = vrot.slane %v2733_v1, 4  ;;  %v2738_v3 = vrot.slane %v2736_v49, 5  ;;  %v7111_v0 = vld [vmem:[#allocation2 + $0x70] sm:$0xff] }
 0x1a6   : > { %v2713_v38 = vsel %vm9510_vm8, %v8418_v9, %v8486_v51  ;;  %vm9511_vm0 = vmmov %vm9510_vm8  ;;  %v3862_v25 = vrot.slane %v3860_v33, 5  ;;  %v2628_v26 = vsel %vm9375_vm15, %v7109_v12, 0  ;;  %v2629_v37 = vsel %vm9374_vm6, %v7110_v36, 0 }
 0x1a7   : > { %v2722_v2 = vsel %vm9511_vm0, %v8486_v51, %v2721_v32  ;;  %6497 = vmatmul.mubr.msk.bf16.gmra.mrb[44].mxu0 %vm691_vm1, %v2713_v38  ;;  %v3866_v9 = vshrl.u32 %v3768_v23, 16  ;;  %v8553_v43 = vsel %vm1914_vm5, %v2579_v18, %v2588_v31  ;;  %v8555_v51 = vor.u32 %v2596_v14, %v2593_v52  ;;  %vm9513_vm8 = vmmov %vm9511_vm0  ;;  %v7112_v38 = vld [vmem:[#allocation2 + $0x78] sm:$0xff] }
 0x1a8   : > { %6500 = vmatprep.mubr.msk.bf16.mxu0 %vm691_vm1, %v2722_v2  ;;  %v3837_v50 = vsel %vm9511_vm0, %v8479_v6, %v3836_v60  ;;  %v3846_v46 = vsel %vm9513_vm8, %v3836_v60, %v8529_v27  ;;  %vm9514_vm11 = vmmov %vm9511_vm0  ;;  %v3854_v30 = vor.u32 %v3853_v53, %v3850_v4  ;;  %v2742_v47 = vshrl.u32 %v2628_v26, 16 }
 0x1a9   : > { %9512 = vst [vmem:[#allocation19_spill] sm:$0xff] %v8555_v51  ;;  %v2731_v45 = vsel %vm9514_vm11, %v2721_v32, %v2730_v59  ;;  %v2745_v22 = vshll.u32 %v2628_v26, 16  ;;  %v3769_v54 = vsel %vm2610_vm3, %v7109_v12, 0  ;;  %v3770_v18 = vsel %vm9375_vm15, %v7110_v36, 0  ;;  %6595 = vmatmul.mubr.msk.bf16.gmra.mrb[8].mxu1 %vm691_vm1, %v3837_v50  ;;  %vm9515_vm11 = vmmov %vm9511_vm0  ;;  %v2279_v50 = vld [vmem:[#allocation2 + $0x80] sm:$0x1f] }
 0x1aa   : > { %v2739_v13 = vor.u32 %v2738_v3, %v2735_v15  ;;  %v2751_v8 = vshrl.u32 %v2629_v37, 16  ;;  %v2754_v19 = vshll.u32 %v2629_v37, 16  ;;  %vm9377_vm10 = vcmp.ne.s16.totalorder %v8553_v43, 0  ;;  %6598 = vmatprep.mubr.msk.bf16.mxu1 %vm691_vm1, %v3846_v46 }
 0x1ab   : > { %v8567_v6 = vor.u32 %v3862_v25, %v3859_v35  ;;  %v3868_v20 = vrot.slane %v3866_v9, 4  ;;  %v3869_v58 = vshll.u32 %v3768_v23, 16  ;;  %v8571_v32 = vsel %vm1914_vm5, %v2588_v31, %v8555_v51 }
 0x1ac   : > { %v3875_v24 = vshrl.u32 %v3769_v54, 16  ;;  %v3878_v48 = vshll.u32 %v3769_v54, 16  ;;  %v3884_v60 = vshrl.u32 %v3770_v18, 16  ;;  %v3771_v1 = vsel %vm9374_vm6, %v7111_v0, 0 }
 0x1ad   : > { %v2744_v49 = vrot.slane %v2742_v47, 4  ;;  %v2747_v4 = vrot.slane %v2745_v22, 5  ;;  %v2630_v33 = vsel %vm9377_vm10, %v7111_v0, 0  ;;  %v3887_v52 = vshll.u32 %v3770_v18, 16  ;;  %v7113_v0 = vld [vmem:[#allocation2 + $0x80] sm:$0xff] }
 0x1ae   : > { %v2740_v31 = vsel %vm9515_vm11, %v2730_v59, %v2739_v13  ;;  %v2753_v14 = vrot.slane %v2751_v8, 4  ;;  %v2756_v53 = vrot.slane %v2754_v19, 5  ;;  %vm9376_vm0 = vcmp.ne.s16.totalorder %v8571_v32, 0  ;;  %vm9516_vm11 = vmmov %vm9513_vm8 }
 0x1af   : > { %6501 = vmatmul.mubr.msk.bf16.gmra.mrb[48].mxu0 %vm691_vm1, %v2731_v45  ;;  %v3871_v23 = vrot.slane %v3869_v58, 5  ;;  %v2631_v2 = vsel %vm9376_vm0, %v7112_v38, 0  ;;  %v3893_v35 = vshrl.u32 %v3771_v1, 16  ;;  %v3896_v15 = vshll.u32 %v3771_v1, 16 }
 0x1b0   : > { %6504 = vmatprep.mubr.msk.bf16.mxu0 %vm691_vm1, %v2740_v31  ;;  %v3855_v3 = vsel %vm9513_vm8, %v8529_v27, %v3854_v30  ;;  %v3877_v25 = vrot.slane %v3875_v24, 4  ;;  %v2760_v12 = vshrl.u32 %v2630_v33, 16  ;;  %v2763_v26 = vshll.u32 %v2630_v33, 16  ;;  %v4172_v27 = vld [vmem:[#allocation2 + $0x10] sm:$0xf8]  ;;  %v9518_v31 = vld [vmem:[#allocation5_spill] sm:$0xff] }
 0x1b1   : > { %v2748_v59 = vor.u32 %v2747_v4, %v2744_v49  ;;  %v3880_v36 = vrot.slane %v3878_v48, 5  ;;  %v3886_v37 = vrot.slane %v3884_v60, 4  ;;  %v3889_v9 = vrot.slane %v3887_v52, 5  ;;  %6599 = vmatmul.mubr.msk.bf16.gmra.mrb[12].mxu1 %vm691_vm1, %v3855_v3  ;;  %v3757_v52 = vld [vmem:[#allocation2 + $0x88] sm:$0x1f] }
 0x1b2   : > { %v3864_v46 = vsel %vm9516_vm11, %v3854_v30, %v8567_v6  ;;  %v2757_v45 = vor.u32 %v2756_v53, %v2753_v14  ;;  %v2769_v47 = vshrl.u32 %v2631_v2, 16  ;;  %v2772_v22 = vshll.u32 %v2631_v2, 16  ;;  %vm9517_vm11 = vmmov %vm9513_vm8  ;;  %v8606_v2 = vld [vmem:[#allocation2 + $0x18] sm:$0xff] }
 0x1b3   : > { %v3872_v54 = vor.u32 %v3871_v23, %v3868_v20  ;;  %v3895_v18 = vrot.slane %v3893_v35, 4  ;;  %v3898_v8 = vrot.slane %v3896_v15, 5  ;;  %vm2615_vm6 = vcmp.ne.s16.totalorder %v8555_v51, 0  ;;  %6602 = vmatprep.mubr.msk.bf16.mxu1 %vm691_vm1, %v3864_v46  ;;  %v9520_v35 = vld [vmem:[#allocation8_spill] sm:$0xff]  ;;  %v9524_v46 = vld [vmem:[#allocation7_spill] sm:$0xff] }
 0x1b4   : > { %v2762_v19 = vrot.slane %v2760_v12, 4  ;;  %v2765_v58 = vrot.slane %v2763_v26, 5  ;;  %v2632_v24 = vsel %vm2615_vm6, %v2279_v50, 0  ;;  %v3772_v48 = vsel %vm9377_vm10, %v7112_v38, 0 }
 0x1b5   : > { %v2749_v30 = vsel %vm9513_vm8, %v2739_v13, %v2748_v59  ;;  %v3881_v20 = vor.u32 %v3880_v36, %v3877_v25  ;;  %v3890_v60 = vor.u32 %v3889_v9, %v3886_v37  ;;  %v3773_v1 = vsel %vm9376_vm0, %v7113_v0, 0  ;;  %vm9523_vm0 = vmmov %vm9517_vm11 }
 0x1b6   : > { %v2758_v49 = vsel %vm9517_vm11, %v2748_v59, %v2757_v45  ;;  %v2771_v4 = vrot.slane %v2769_v47, 4  ;;  %v2774_v33 = vrot.slane %v2772_v22, 5  ;;  %vm9519_vm15 = vcmp.ne.s16.totalorder %v9518_v31, 0  ;;  %v8620_v22 = vld [vmem:[#allocation2 + $0x28] sm:$0xff] }
 0x1b7   : > { %6505 = vmatmul.mubr.msk.bf16.gmra.mrb[52].mxu0 %vm691_vm1, %v2749_v30  ;;  %v4189_v14 = vsel %vm9519_vm15, %v4172_v27, 0  ;;  %v8604_v53 = vor.u32 %v3898_v8, %v3895_v18  ;;  %v2778_v13 = vshrl.u32 %v2632_v24, 16  ;;  %v2781_v23 = vshll.u32 %v2632_v24, 16  ;;  %vm9522_vm15 = vmmov %vm9517_vm11  ;;  %v8622_v18 = vld [vmem:[#allocation2 + $0x30] sm:$0xff]  ;;  %v8628_v30 = vld [vmem:[#allocation2 + $0x38] sm:$0xff] }
 0x1b8   : > { %6508 = vmatprep.mubr.msk.bf16.mxu0 %vm691_vm1, %v2758_v49  ;;  %v3902_v38 = vshrl.u32 %v3772_v48, 16  ;;  %vm9521_vm8 = vcmp.ne.s16.totalorder %v9520_v35, 0  ;;  %v2766_v3 = vor.u32 %v2765_v58, %v2762_v19  ;;  %v3905_v25 = vshll.u32 %v3772_v48, 16 }
 0x1b9   : > { %v4191_v15 = vsel %vm9521_vm8, %v8334_v34, 0  ;;  %v3911_v12 = vshrl.u32 %v3773_v1, 16  ;;  %v3873_v26 = vsel %vm9517_vm11, %v8567_v6, %v3872_v54  ;;  %v3882_v59 = vsel %vm9522_vm15, %v3872_v54, %v3881_v20  ;;  %vm9526_vm8 = vmmov %vm9523_vm0 }
 0x1ba   : > { %v3914_v36 = vshll.u32 %v3773_v1, 16  ;;  %v3774_v37 = vsel %vm2615_vm6, %v3757_v52, 0  ;;  %v2775_v9 = vor.u32 %v2774_v33, %v2771_v4  ;;  %v3891_v50 = vsel %vm9523_vm0, %v3881_v20, %v3890_v60  ;;  %6603 = vmatmul.mubr.msk.bf16.gmra.mrb[16].mxu1 %vm691_vm1, %v3873_v26  ;;  %vm9527_vm11 = vmmov %vm9523_vm0  ;;  %v9528_v1 = vld [vmem:[#allocation10_spill] sm:$0xff] }
 0x1bb   : > { %vm9525_vm10 = vcmp.ne.s16.totalorder %v9524_v46, 0  ;;  %v4208_v34 = vshrl.u32 %v4189_v14, 16  ;;  %v3900_v6 = vsel %vm9526_vm8, %v3890_v60, %v8604_v53  ;;  %v2780_v54 = vrot.slane %v2778_v13, 4  ;;  %6606 = vmatprep.mubr.msk.bf16.mxu1 %vm691_vm1, %v3882_v59  ;;  %vm9531_vm15 = vmmov %vm9526_vm8 }
 0x1bc   : > { %v4190_v47 = vsel %vm9525_vm10, %v8606_v2, 0  ;;  %v2783_v8 = vrot.slane %v2781_v23, 5  ;;  %v3904_v27 = vrot.slane %v3902_v38, 4  ;;  %v2767_v19 = vsel %vm9527_vm11, %v2757_v45, %v2766_v3  ;;  %vm9533_vm11 = vmmov %vm9526_vm8 }
 0x1bd   : > { %v3907_v58 = vrot.slane %v3905_v25, 5  ;;  %v3913_v24 = vrot.slane %v3911_v12, 4  ;;  %v3920_v48 = vshrl.u32 %v3774_v37, 16  ;;  %v3916_v20 = vrot.slane %v3914_v36, 5 }
 0x1be   : > { %v3923_v0 = vshll.u32 %v3774_v37, 16  ;;  %vm9529_vm10 = vcmp.ne.s16.totalorder %v9528_v1, 0  ;;  %vm9530_vm0 = vcmp.ne.s16.totalorder %v7586_v39, 0  ;;  %v2776_v45 = vsel %vm9531_vm15, %v2766_v3, %v2775_v9 }
 0x1bf   : > { %v4192_v60 = vsel %vm9529_vm10, %v8620_v22, 0  ;;  %v4193_v49 = vsel %vm9530_vm0, %v8622_v18, 0  ;;  %6509 = vmatmul.mubr.msk.bf16.gmra.mrb[56].mxu0 %vm691_vm1, %v2767_v19  ;;  %v4211_v4 = vshll.u32 %v4189_v14, 16  ;;  %v4216_v33 = vshrl.u32 %v4190_v47, 16  ;;  %v8653_v19 = vld [vmem:[#allocation2 + $0x40] sm:$0xff] }
 0x1c0   : > { %v4219_v52 = vshll.u32 %v4190_v47, 16  ;;  %6512 = vmatprep.mubr.msk.bf16.mxu0 %vm691_vm1, %v2776_v45  ;;  %v2784_v31 = vor.u32 %v2783_v8, %v2780_v54  ;;  %v4225_v13 = vshrl.u32 %v4191_v15, 16  ;;  %v4228_v23 = vshll.u32 %v4191_v15, 16 }
 0x1c1   : > { %v4194_v38 = vsel %vm1619_vm13, %v8628_v30, 0  ;;  %v4234_v35 = vshrl.u32 %v4192_v60, 16  ;;  %v4237_v25 = vshll.u32 %v4192_v60, 16  ;;  %v4243_v39 = vshrl.u32 %v4193_v49, 16  ;;  %vm9532_vm13 = vmmov %vm9526_vm8  ;;  %v8664_v60 = vld [vmem:[#allocation2 + $0x50] sm:$0xff] }
 0x1c2   : > { %v4246_v12 = vshll.u32 %v4193_v49, 16  ;;  %v3908_v26 = vor.u32 %v3907_v58, %v3904_v27  ;;  %v8643_v59 = vor.u32 %v3916_v20, %v3913_v24  ;;  %v8645_v3 = vrot.slane %v3920_v48, 4  ;;  %6607 = vmatmul.mubr.msk.bf16.gmra.mrb[20].mxu1 %vm691_vm1, %v3891_v50 }
 0x1c3   : > { %v8647_v14 = vrot.slane %v4208_v34, 3  ;;  %v8649_v36 = vrot.slane %v3923_v0, 5  ;;  %v8651_v37 = vrot.slane %v4211_v4, 4  ;;  %v4218_v15 = vrot.slane %v4216_v33, 3  ;;  %v8656_v34 = vld [vmem:[#allocation2 + $0x48] sm:$0xff]  ;;  %6610 = vmatprep.mubr.msk.bf16.mxu1 %vm691_vm1, %v3900_v6 }
 0x1c4   : > { %v4221_v46 = vrot.slane %v4219_v52, 4  ;;  %v4227_v47 = vrot.slane %v4225_v13, 3  ;;  %v4230_v42 = vrot.slane %v4228_v23, 4  ;;  %v4252_v54 = vshrl.u32 %v4194_v38, 16  ;;  %v8682_v23 = vld [vmem:[#allocation2 + $0x58] sm:$0xff] }
 0x1c5   : > { %v4255_v8 = vshll.u32 %v4194_v38, 16  ;;  %v4236_v27 = vrot.slane %v4234_v35, 3  ;;  %v4239_v58 = vrot.slane %v4237_v25, 4  ;;  %v4245_v24 = vrot.slane %v4243_v39, 3  ;;  %v8684_v38 = vld [vmem:[#allocation2 + $0x60] sm:$0xff]  ;;  %v8687_v25 = vld [vmem:[#allocation2 + $0x68] sm:$0xff] }
 0x1c6   : > { %v4248_v48 = vrot.slane %v4246_v12, 4  ;;  %v2785_v20 = vsel %vm9532_vm13, %v2775_v9, %v2784_v31  ;;  %v3909_v0 = vsel %vm9526_vm8, %v8604_v53, %v3908_v26  ;;  %v3918_v1 = vsel %vm9533_vm11, %v3908_v26, %v8643_v59  ;;  %v8689_v39 = vld [vmem:[#allocation2 + $0x70] sm:$0xff] }
 0x1c7   : > { %6513 = vmatmul.mubr.msk.bf16.gmra.mrb[60].mxu0 %vm691_vm1, %v2785_v20  ;;  %v3926_v50 = vor.u32 %v8649_v36, %v8645_v3  ;;  %v4214_v49 = vor.u32 %v8651_v37, %v8647_v14  ;;  %v4222_v45 = vor.u32 %v4221_v46, %v4218_v15  ;;  %v4195_v9 = vsel %vm1620_vm2, %v8653_v19, 0  ;;  %v8694_v36 = vld [vmem:[#allocation2 + $0x78] sm:$0xff]  ;;  %v8696_v37 = vld [vmem:[#allocation2 + $0x80] sm:$0xff]  ;;  %v8699_v46 = vld [vmem:[#allocation2 + $0x88] sm:$0xff] }
 0x1c8   : > { %v4231_v6 = vor.u32 %v4230_v42, %v4227_v47  ;;  %v4254_v53 = vrot.slane %v4252_v54, 3  ;;  %v4257_v4 = vrot.slane %v4255_v8, 4  ;;  %v4196_v33 = vsel %vm1621_vm7, %v8656_v34, 0  ;;  %vm9541_vm7 = vmmov %vm9526_vm8 }
 0x1c9   : > { %v4240_v52 = vor.u32 %v4239_v58, %v4236_v27  ;;  %v4249_v31 = vor.u32 %v4248_v48, %v4245_v24  ;;  %vm9534_vm10 = vcmp.ne.s16.totalorder %v7622_v17, 0  ;;  %v9378_v55 = vrot.slane %v8620_v22, 4  ;;  %v8714_v27 = vld [vmem:[#allocation2 + $0x90] sm:$0xf]  ;;  %vm9548_vm13 = vmmov %vm9541_vm7 }
 0x1ca   : > { %v8680_v13 = vsel %vm9534_vm10, %v8664_v60, 0  ;;  %v4261_v35 = vshrl.u32 %v4195_v9, 16  ;;  %v4629_v62 = vrot.slane %v8622_v18, 4  ;;  %v4631_v12 = vrot.slane %v8628_v30, 4  ;;  %6611 = vmatmul.mubr.msk.bf16.gmra.mrb[24].mxu1 %vm691_vm1, %v3909_v0  ;;  %vm9550_vm11 = vmmov %vm9541_vm7 }
 0x1cb   : > { %v4633_v26 = vrot.slane %v8653_v19, 4  ;;  %v4264_v17 = vshll.u32 %v4195_v9, 16  ;;  %v4270_v3 = vshrl.u32 %v4196_v33, 16  ;;  %v4273_v14 = vshll.u32 %v4196_v33, 16  ;;  %6614 = vmatprep.mubr.msk.bf16.mxu1 %vm691_vm1, %v3918_v1  ;;  %vm9551_vm10 = vmmov %vm9541_vm7 }
 0x1cc   : > { %v4635_v15 = vrot.slane %v8656_v34, 4  ;;  %v8704_v47 = vsel %vm730_vm4, %v9378_v55, %v4629_v62  ;;  %v8707_v42 = vsel %vm730_vm4, %v4629_v62, %v4631_v12  ;;  %v4637_v8 = vrot.slane %v8664_v60, 4 }
 0x1cd   : > { %v8710_v54 = vsel %vm730_vm4, %v4631_v12, %v4633_v26  ;;  %v4639_v24 = vrot.slane %v8682_v23, 4  ;;  %v4641_v48 = vrot.slane %v8684_v38, 4  ;;  %v4643_v20 = vrot.slane %v8687_v25, 4 }
 0x1ce   : > { %v8717_v58 = vsel %vm730_vm4, %v4633_v26, %v4635_v15  ;;  %v8724_v9 = vsel %vm730_vm4, %v4635_v15, %v4637_v8  ;;  %v4645_v33 = vrot.slane %v8689_v39, 4  ;;  %v4647_v0 = vrot.slane %v8694_v36, 4 }
 0x1cf   : > { %9535 = vst [vmem:[#allocation20_spill] sm:$0xff] %v8724_v9  ;;  %v4649_v62 = vrot.slane %v8696_v37, 4  ;;  %v8730_v12 = vsel %vm730_vm4, %v4637_v8, %v4639_v24  ;;  %v8733_v26 = vsel %vm730_vm4, %v4639_v24, %v4641_v48  ;;  %v8736_v55 = vsel %vm730_vm4, %v4641_v48, %v4643_v20 }
 0x1d0   : > { %9536 = vst [vmem:[#allocation21_spill] sm:$0xff] %v8733_v26  ;;  %9537 = vst [vmem:[#allocation30_spill] sm:$0xff] %v8736_v55  ;;  %v4651_v1 = vrot.slane %v8699_v46, 4  ;;  %v8740_v15 = vsel %vm730_vm4, %v4643_v20, %v4645_v33  ;;  %v8743_v51 = vsel %vm730_vm4, %v4645_v33, %v4647_v0  ;;  %v4653_v8 = vrot.slane %v8714_v27, 4 }
 0x1d1   : > { %9538 = vst [vmem:[#allocation22_spill] sm:$0xff] %v8740_v15  ;;  %9539 = vst [vmem:[#allocation23_spill] sm:$0xff] %v8743_v51  ;;  %v8746_v9 = vsel %vm730_vm4, %v4647_v0, %v4649_v62  ;;  %v4704_v24 = vsel %vm730_vm4, %v8508_v5, 0  ;;  %v8751_v26 = vor.u32 %v4257_v4, %v4254_v53  ;;  %v4279_v48 = vshrl.u32 %v8680_v13, 16 }
 0x1d2   : > { %9540 = vst [vmem:[#allocation24_spill] sm:$0xff] %v8746_v9  ;;  %v8755_v55 = vsel %vm730_vm4, %v4649_v62, %v4651_v1  ;;  %v3927_v20 = vsel %vm9541_vm7, %v8643_v59, %v3926_v50  ;;  %v4223_v33 = vsel %vm1914_vm5, %v4214_v49, %v4222_v45  ;;  %v4232_v0 = vsel %vm1914_vm5, %v4222_v45, %v4231_v6 }
 0x1d3   : > { %v8762_v9 = vsel %vm730_vm4, %v4651_v1, %v4653_v8  ;;  %v4241_v51 = vsel %vm1914_vm5, %v4231_v6, %v4240_v52  ;;  %v8766_v5 = vsel %vm1914_vm5, %v4240_v52, %v4249_v31  ;;  %v4263_v53 = vrot.slane %v4261_v35, 3  ;;  %6615 = vmatmul.mubr.msk.bf16.gmra.mrb[28].mxu1 %vm691_vm1, %v3927_v20 }
 0x1d4   : > { %v4266_v4 = vrot.slane %v4264_v17, 4  ;;  %v4272_v15 = vrot.slane %v4270_v3, 3  ;;  %v4275_v62 = vrot.slane %v4273_v14, 4  ;;  %v4903_v59 = vsel %vm2602_vm14, %v8620_v22, 0  ;;  %6620 = vmatprep.mubr.msk.bf16.mxu1 %vm691_vm1, %v4223_v33 }
 0x1d5   : > { %vm9542_vm2 = vcmp.ne.s16.totalorder %v8226_v61, 0  ;;  %v8777_v49 = vsel %vm1914_vm5, %v4249_v31, %v8751_v26  ;;  %v8779_v45 = vrot.slane %v4279_v48, 3  ;;  %v4282_v6 = vshll.u32 %v8680_v13, 16 }
 0x1d6   : > { %v4904_v50 = vsel %vm9542_vm2, %v8622_v18, 0  ;;  %v4945_v52 = vshrl.u32 %v4903_v59, 16  ;;  %vm9543_vm14 = vcmp.ne.s16.totalorder %v7636_v21, 0  ;;  %v4948_v61 = vshll.u32 %v4903_v59, 16  ;;  %vm9553_vm2 = vmmov %vm9551_vm10 }
 0x1d7   : > { %v8786_v63 = vsel %vm9543_vm14, %v8682_v23, 0  ;;  %v4954_v18 = vshrl.u32 %v4904_v50, 16  ;;  %v4957_v35 = vshll.u32 %v4904_v50, 16  ;;  %v8788_v17 = vor.u32 %v4266_v4, %v4263_v53  ;;  %vm9554_vm14 = vmmov %vm9553_vm2 }
 0x1d8   : > { %v4947_v3 = vrot.slane %v4945_v52, 4  ;;  %v4905_v31 = vsel %vm2604_vm9, %v8628_v30, 0  ;;  %v4906_v14 = vsel %vm2605_vm12, %v8653_v19, 0  ;;  %v8796_v1 = vor.u32 %v4275_v62, %v4272_v15  ;;  %vm9545_vm12 = vmmov %vm9541_vm7 }
 0x1d9   : > { %v4950_v8 = vrot.slane %v4948_v61, 5  ;;  %v4956_v21 = vrot.slane %v4954_v18, 4  ;;  %v4959_v48 = vrot.slane %v4957_v35, 5  ;;  %v4288_v20 = vshrl.u32 %v8786_v63, 16  ;;  %v8808_v61 = vld [vmem:[%s9307_s2 + $0x20] sm:$0xf] }
 0x1da   : > { %v4963_v33 = vshrl.u32 %v4905_v31, 16  ;;  %v4966_v59 = vshll.u32 %v4905_v31, 16  ;;  %v4972_v53 = vshrl.u32 %v4906_v14, 16  ;;  %v4975_v52 = vshll.u32 %v4906_v14, 16 }
 0x1db   : > { %v8799_v4 = vor.u32 %v4950_v8, %v4947_v3  ;;  %v4960_v50 = vor.u32 %v4959_v48, %v4956_v21  ;;  %vm9544_vm9 = vcmp.ne.s16.totalorder %v8286_v11, 0  ;;  %v4291_v62 = vshll.u32 %v8786_v63, 16  ;;  %6621 = vmatmul.mubr.msk.bf16.vlgmr.msra.gmra.mrb[0].mxu1 %vm691_vm1, %v4232_v0 }
 0x1dc   : > { %v4907_v57 = vsel %vm9544_vm9, %v8656_v34, 0  ;;  %v4965_v16 = vrot.slane %v4963_v33, 4  ;;  %v4968_v30 = vrot.slane %v4966_v59, 5  ;;  %v4974_v19 = vrot.slane %v4972_v53, 4  ;;  %6653 = vmatpush3.bf16.msra.mxu1 %v4704_v24  ;;  %6624 = vmatprep.mubr.msk.bf16.mxu1 %vm691_vm1, %v4241_v51  ;;  %vm9556_vm9 = vmmov %vm9553_vm2 }
 0x1dd   : > { %v4981_v15 = vshrl.u32 %v4907_v57, 16  ;;  %v8812_v18 = vsel %vm9545_vm12, %v8799_v4, %v4960_v50  ;;  %v4977_v35 = vrot.slane %v4975_v52, 5  ;;  %v4984_v3 = vshll.u32 %v4907_v57, 16  ;;  %7084 = vmatprep.subr.msk.bf16.mxu1 %vm730_vm4, %v8808_v61 }
 0x1de   : > { %v4969_v11 = vor.u32 %v4968_v30, %v4965_v16  ;;  %vm9546_vm0 = vcmp.ne.s16.totalorder %v8290_v28, 0  ;;  %vm9547_vm15 = vcmp.ne.s16.totalorder %v8430_v44, 0  ;;  %vm9549_vm8 = vcmp.ne.s16.totalorder %v8463_v7, 0 }
 0x1df   : > { %v4983_v34 = vrot.slane %v4981_v15, 4  ;;  %v4908_v31 = vsel %vm9546_vm0, %v8664_v60, 0  ;;  %v4909_v14 = vsel %vm9547_vm15, %v8682_v23, 0  ;;  %v4978_v8 = vor.u32 %v4977_v35, %v4974_v19 }
 0x1e0   : > { %v4986_v21 = vrot.slane %v4984_v3, 5  ;;  %v4990_v48 = vshrl.u32 %v4908_v31, 16  ;;  %v4993_v33 = vshll.u32 %v4908_v31, 16  ;;  %v8825_v0 = vsel %vm9548_vm13, %v4960_v50, %v4969_v11  ;;  %vm9560_vm13 = vmmov %vm9553_vm2 }
 0x1e1   : > { %v4999_v59 = vshrl.u32 %v4909_v14, 16  ;;  %v5002_v28 = vshll.u32 %v4909_v14, 16  ;;  %v4910_v44 = vsel %vm9549_vm8, %v8684_v38, 0  ;;  %v8831_v60 = vsel %vm9550_vm11, %v4969_v11, %v4978_v8  ;;  %vm9561_vm8 = vmmov %vm9553_vm2 }
 0x1e2   : > { %v4987_v51 = vor.u32 %v4986_v21, %v4983_v34  ;;  %v4992_v23 = vrot.slane %v4990_v48, 4  ;;  %v4995_v24 = vrot.slane %v4993_v33, 5  ;;  %v5008_v57 = vshrl.u32 %v4910_v44, 16  ;;  %vm9562_vm11 = vmmov %vm9553_vm2 }
 0x1e3   : > { %v5001_v53 = vrot.slane %v4999_v59, 4  ;;  %v5004_v52 = vrot.slane %v5002_v28, 5  ;;  %v5011_v16 = vshll.u32 %v4910_v44, 16  ;;  %v4911_v19 = vsel %vm2610_vm3, %v8687_v25, 0  ;;  %6625 = vmatmul.mubr.msk.bf16.gmra.mrb[4].mxu1 %vm691_vm1, %v8766_v5 }
 0x1e4   : > { %v8834_v30 = vsel %vm9551_vm10, %v4978_v8, %v4987_v51  ;;  %v4996_v50 = vor.u32 %v4995_v24, %v4992_v23  ;;  %vm9552_vm7 = vcmp.ne.s16.totalorder %v8527_v56, 0  ;;  %v5010_v35 = vrot.slane %v5008_v57, 4  ;;  %6628 = vmatprep.mubr.msk.bf16.mxu1 %vm691_vm1, %v8777_v49 }
 0x1e5   : > { %v4912_v7 = vsel %vm9552_vm7, %v8689_v39, 0  ;;  %v5005_v15 = vor.u32 %v5004_v52, %v5001_v53  ;;  %v5013_v3 = vrot.slane %v5011_v16, 5  ;;  %v5017_v11 = vshrl.u32 %v4911_v19, 16  ;;  %vm9564_vm7 = vmmov %vm9553_vm2 }
 0x1e6   : > { %v8843_v34 = vsel %vm9553_vm2, %v4987_v51, %v4996_v50  ;;  %v5020_v31 = vshll.u32 %v4911_v19, 16  ;;  %v5026_v14 = vshrl.u32 %v4912_v7, 16  ;;  %v5029_v8 = vshll.u32 %v4912_v7, 16 }
 0x1e7   : > { %v8848_v10 = vsel %vm9554_vm14, %v4996_v50, %v5005_v15  ;;  %v5014_v21 = vor.u32 %v5013_v3, %v5010_v35  ;;  %v5019_v48 = vrot.slane %v5017_v11, 4  ;;  %vm9555_vm3 = vcmp.ne.s16.totalorder %v8532_v41, 0 }
 0x1e8   : > { %v4913_v56 = vsel %vm9555_vm3, %v8694_v36, 0  ;;  %v5022_v33 = vrot.slane %v5020_v31, 5  ;;  %v5028_v59 = vrot.slane %v5026_v14, 4  ;;  %v5031_v28 = vrot.slane %v5029_v8, 5 }
 0x1e9   : > { %v5035_v44 = vshrl.u32 %v4913_v56, 16  ;;  %v8856_v51 = vsel %vm9556_vm9, %v5005_v15, %v5014_v21  ;;  %v5038_v5 = vshll.u32 %v4913_v56, 16  ;;  %vm9557_vm12 = vcmp.ne.s16.totalorder %v8553_v43, 0 }
 0x1ea   : > { %v4914_v23 = vsel %vm9557_vm12, %v8696_v37, 0  ;;  %vm9558_vm0 = vcmp.ne.s16.totalorder %v8571_v32, 0  ;;  %v5023_v24 = vor.u32 %v5022_v33, %v5019_v48  ;;  %v5032_v53 = vor.u32 %v5031_v28, %v5028_v59 }
 0x1eb   : > { %v4915_v41 = vsel %vm9558_vm0, %v8699_v46, 0  ;;  %v5037_v52 = vrot.slane %v5035_v44, 4  ;;  %v5044_v49 = vshrl.u32 %v4914_v23, 16  ;;  %v5040_v57 = vrot.slane %v5038_v5, 5 }
 0x1ec   : > { %v5047_v16 = vshll.u32 %v4914_v23, 16  ;;  %v5053_v50 = vshrl.u32 %v4915_v41, 16  ;;  %v5056_v19 = vshll.u32 %v4915_v41, 16  ;;  %vm9559_vm15 = vcmp.ne.s16.totalorder %v7645_v29, 0 }
 0x1ed   : > { %v4199_v7 = vsel %vm9559_vm15, %v8684_v38, 0  ;;  %v8868_v15 = vsel %vm9560_vm13, %v5014_v21, %v5023_v24  ;;  %v8871_v43 = vsel %vm9561_vm8, %v5023_v24, %v5032_v53  ;;  %v5046_v32 = vrot.slane %v5044_v49, 4  ;;  %v9565_v24 = vld [vmem:[#allocation11_spill] sm:$0xff] }
 0x1ee   : > { %v5041_v35 = vor.u32 %v5040_v57, %v5037_v52  ;;  %v5049_v3 = vrot.slane %v5047_v16, 5  ;;  %v5055_v11 = vrot.slane %v5053_v50, 4  ;;  %v5058_v31 = vrot.slane %v5056_v19, 5 }
 0x1ef   : > { %v4268_v14 = vsel %vm1914_vm5, %v8751_v26, %v8788_v17  ;;  %v4277_v29 = vsel %vm1914_vm5, %v8788_v17, %v8796_v1  ;;  %v4284_v38 = vrot.slane %v4282_v6, 4  ;;  %v4290_v8 = vrot.slane %v4288_v20, 3 }
 0x1f0   : > { %6629 = vmatmul.mubr.msk.bf16.gmra.mrb[8].mxu1 %vm691_vm1, %v4268_v14  ;;  %v4293_v21 = vrot.slane %v4291_v62, 4  ;;  %v8887_v48 = vsel %vm9562_vm11, %v5032_v53, %v5041_v35  ;;  %v5050_v56 = vor.u32 %v5049_v3, %v5046_v32  ;;  %v8889_v26 = vor.u32 %v5058_v31, %v5055_v11  ;;  %v9567_v53 = vld [vmem:[#allocation13_spill] sm:$0xff]  ;;  %v9569_v31 = vld [vmem:[#allocation15_spill] sm:$0xff] }
 0x1f1   : > { %6632 = vmatprep.mubr.msk.bf16.mxu1 %vm691_vm1, %v4277_v29  ;;  %vm9563_vm10 = vcmp.ne.s16.totalorder %v7652_v40, 0  ;;  %v4285_v63 = vor.u32 %v4284_v38, %v8779_v45  ;;  %v4297_v20 = vshrl.u32 %v4199_v7, 16  ;;  %v4300_v62 = vshll.u32 %v4199_v7, 16 }
 0x1f2   : > { %v4200_v13 = vsel %vm9563_vm10, %v8687_v25, 0  ;;  %v8896_v6 = vsel %vm9564_vm7, %v5041_v35, %v5050_v56  ;;  %v8900_v17 = vsel %vm9553_vm2, %v5050_v56, %v8889_v26  ;;  %v4294_v33 = vor.u32 %v4293_v21, %v4290_v8  ;;  %v9571_v8 = vld [vmem:[#allocation16_spill] sm:$0xff] }
 0x1f3   : > { %v4306_v59 = vshrl.u32 %v4200_v13, 16  ;;  %v4309_v28 = vshll.u32 %v4200_v13, 16  ;;  %v4286_v44 = vsel %vm1914_vm5, %v8796_v1, %v4285_v63  ;;  %v4299_v5 = vrot.slane %v4297_v20, 3 }
 0x1f4   : > { %v4302_v40 = vrot.slane %v4300_v62, 4  ;;  %v4295_v25 = vsel %vm1914_vm5, %v4285_v63, %v4294_v33  ;;  %vm9566_vm14 = vcmp.ne.s16.totalorder %v9565_v24, 0  ;;  %vm9568_vm3 = vcmp.ne.s16.totalorder %v9567_v53, 0 }
 0x1f5   : > { %v4308_v23 = vrot.slane %v4306_v59, 3  ;;  %v4311_v41 = vrot.slane %v4309_v28, 4  ;;  %v4201_v45 = vsel %vm9566_vm14, %v8689_v39, 0  ;;  %v4202_v52 = vsel %vm9568_vm3, %v8694_v36, 0  ;;  %v9573_v59 = vld [vmem:[#allocation12_spill] sm:$0xff] }
 0x1f6   : > { %v4303_v49 = vor.u32 %v4302_v40, %v4299_v5  ;;  %v4315_v1 = vshrl.u32 %v4201_v45, 16  ;;  %v4318_v57 = vshll.u32 %v4201_v45, 16  ;;  %v4324_v50 = vshrl.u32 %v4202_v52, 16 }
 0x1f7   : > { %v4312_v16 = vor.u32 %v4311_v41, %v4308_v23  ;;  %v4327_v19 = vshll.u32 %v4202_v52, 16  ;;  %vm9570_vm9 = vcmp.ne.s16.totalorder %v9569_v31, 0  ;;  %vm9572_vm12 = vcmp.ne.s16.totalorder %v9571_v8, 0  ;;  %v8935_v52 = vld [vmem:[#allocation2 + $0x10] sm:$0xf0]  ;;  %v7116_v31 = vld [vmem:[%s7219_s10 + $0x8] sm:$0xff] }
 0x1f8   : > { %6633 = vmatmul.mubr.msk.bf16.gmra.mrb[12].mxu1 %vm691_vm1, %v4286_v44  ;;  %v4304_v7 = vsel %vm1914_vm5, %v4294_v33, %v4303_v49  ;;  %v4317_v32 = vrot.slane %v4315_v1, 3  ;;  %v4320_v35 = vrot.slane %v4318_v57, 4  ;;  %v4326_v3 = vrot.slane %v4324_v50, 3  ;;  %v8943_v50 = vld [vmem:[#allocation2 + $0x20] sm:$0xff] }
 0x1f9   : > { %6636 = vmatprep.mubr.msk.bf16.mxu1 %vm691_vm1, %v4295_v25  ;;  %v4313_v39 = vsel %vm1914_vm5, %v4303_v49, %v4312_v16  ;;  %v4329_v11 = vrot.slane %v4327_v19, 4  ;;  %v4203_v36 = vsel %vm9570_vm9, %v8696_v37, 0  ;;  %v4204_v21 = vsel %vm9572_vm12, %v8699_v46, 0  ;;  %v9577_v8 = vld [vmem:[#allocation4_spill] sm:$0xff] }
 0x1fa   : > { %v4321_v14 = vor.u32 %v4320_v35, %v4317_v32  ;;  %v4333_v29 = vshrl.u32 %v4203_v36, 16  ;;  %v4336_v38 = vshll.u32 %v4203_v36, 16  ;;  %v4342_v13 = vshrl.u32 %v4204_v21, 16 }
 0x1fb   : > { %v4330_v56 = vor.u32 %v4329_v11, %v4326_v3  ;;  %v4345_v63 = vshll.u32 %v4204_v21, 16  ;;  %vm9574_vm0 = vcmp.ne.s16.totalorder %v9573_v59, 0  ;;  %v4623_v49 = vrot.slane %v8606_v2, 4  ;;  %v7097_v3 = vld [vmem:[%s9309_s4] sm:$0xff]   ;;  %v9578_v21 = vld [vmem:[#allocation3_spill] sm:$0xff] }
 0x1fc   : > { %v4322_v20 = vsel %vm1914_vm5, %v4312_v16, %v4321_v14  ;;  %v4335_v62 = vrot.slane %v4333_v29, 3  ;;  %v4338_v33 = vrot.slane %v4336_v38, 4  ;;  %v4205_v28 = vsel %vm9574_vm0, %v8714_v27, 0  ;;  %v7115_v11 = vld [vmem:[%s7219_s10] sm:$0xff]  ;;  %6720 = vmatprep.subr.bf16.mxu0 %v7097_v3 }
 0x1fd   : > { %v4331_v37 = vsel %vm1914_vm5, %v4321_v14, %v4330_v56  ;;  %v4344_v44 = vrot.slane %v4342_v13, 3  ;;  %v4347_v5 = vrot.slane %v4345_v63, 4  ;;  %v4351_v40 = vshrl.u32 %v4205_v28, 16  ;;  %6721 = vmatpush3.bf16.msra.mxu0 %v7097_v3  ;;  %v7118_v14 = vld [vmem:[%s7219_s10 + $0x28] sm:$0xff]  ;;  %v7119_v13 = vld [vmem:[%s7219_s10 + $0x30] sm:$0xff]  ;;  %v7120_v63 = vld [vmem:[%s7219_s10 + $0x38] sm:$0xff] }
 0x1fe   : > { %v4339_v46 = vor.u32 %v4338_v33, %v4335_v62  ;;  %v4354_v25 = vshll.u32 %v4205_v28, 16  ;;  %v4622_v1 = vrot.slane %v8935_v52, 4  ;;  %v4625_v19 = vrot.slane %v8943_v50, 4  ;;  %v7121_v62 = vld [vmem:[%s7219_s10 + $0x40] sm:$0xff]  ;;  %v7122_v33 = vld [vmem:[%s7219_s10 + $0x48] sm:$0xff] }
 0x1ff   : > { %v4348_v23 = vor.u32 %v4347_v5, %v4344_v44  ;;  %v4353_v24 = vrot.slane %v4351_v40, 3  ;;  %v9575_v35 = vrot.slane %v8620_v22, 4  ;;  %v5400_v36 = vpack.c.bf16 %v7116_v31, %v7115_v11  ;;  %v7117_v22 = vld [vmem:[%s7219_s10 + $0x20] sm:$0xff]  ;;  %v7126_v44 = vld [vmem:[%s7219_s10 + $0x68] sm:$0xff]  ;;  %v9597_v11 = vld [vmem:[#allocation6_spill] sm:$0xff] }
 0x200   : > { %6637 = vmatmul.mubr.msk.bf16.gmra.mrb[16].mxu1 %vm691_vm1, %v4304_v7  ;;  %v4340_v41 = vsel %vm1914_vm5, %v4330_v56, %v4339_v46  ;;  %v4356_v45 = vrot.slane %v4354_v25, 4  ;;  %v4624_v16 = vsel %vm730_vm4, %v4622_v1, %v4623_v49  ;;  %v5119_v7 = vsel %vm730_vm4, %v8808_v61, 0  ;;  %v5399_v61 = vld [vmem:[%s9308_s3] sm:$0xf]  ;;  %v7134_v1 = vld [vmem:[%s7219_s10 + $0xa8] sm:$0xff] }
 0x201   : > { %6640 = vmatprep.mubr.msk.bf16.mxu1 %vm691_vm1, %v4313_v39  ;;  %v4349_v53 = vsel %vm1914_vm5, %v4339_v46, %v4348_v23  ;;  %v4626_v32 = vsel %vm730_vm4, %v4623_v49, %v4625_v19  ;;  %v4628_v39 = vsel %vm730_vm4, %v4625_v19, %v9575_v35  ;;  %v5402_v29 = vpack.c.bf16 %v7118_v14, %v7117_v22  ;;  %v7125_v28 = vld [vmem:[%s7219_s10 + $0x60] sm:$0xff]  ;;  %v9594_v19 = vld [vmem:[#allocation23_spill] sm:$0xff]  ;;  %v7135_v35 = vld [vmem:[%s7219_s10 + $0xb0] sm:$0xff] }
 0x202   : > { %v4357_v27 = vor.u32 %v4356_v45, %v4353_v24  ;;  %7085 = vmatprep.subr.msk.bf16.mxu0 %vm730_vm4, %v5399_v61  ;;  %v5682_v38 = vsel %vm730_vm4, %v5399_v61, 0  ;;  %v9579_v56 = vpack.c.bf16 %v9577_v8, %v9578_v21  ;;  %v5406_v5 = vpack.c.bf16 %v7126_v44, %v7125_v28  ;;  %v9586_v46 = vld [vmem:[#allocation20_spill] sm:$0xff]  ;;  %v9589_v24 = vld [vmem:[#allocation21_spill] sm:$0xff]  ;;  %v9590_v45 = vld [vmem:[#allocation30_spill] sm:$0xff] }
 0x203   : > { %v7129_v25 = vld [vmem:[%s7219_s10 + $0x80] sm:$0xff]  ;;  %vm9598_vm12 = vcmp.ne.s16.totalorder %v9597_v11, 0  ;;  %v7138_v61 = vld [vmem:[%s7219_s10 + $0xc8] sm:$0xff] }
 0x204   : > { %v4358_v57 = vsel %vm1914_vm5, %v4348_v23, %v4357_v27  ;;  %vm9576_vm5 = vcmask 130048   ;;  %v7130_v23 = vld [vmem:[%s7219_s10 + $0x88] sm:$0xff]  ;;  %v7133_v49 = vld [vmem:[%s7219_s10 + $0xa0] sm:$0xff]  ;;  %v4900_v31 = vsel %vm9598_vm12, %v8935_v52, 0 }
 0x205   : > { %6722 = vmatprep.mubr.msk.bf16.mxu0 %vm9576_vm5, %v5400_v36  ;;  %vm9580_vm15 = vmmov %vm9576_vm5  ;;  %v7137_v36 = vld [vmem:[%s7219_s10 + $0xc0] sm:$0xff]  ;;  %v4922_v8 = vshll.u32 %v4900_v31, 16  ;;  %v9602_v52 = vld [vmem:[#allocation9_spill] sm:$0xff] }
 0x206   : > { %6723 = vmatmul.mubr.msk.bf16.vlgmr.msra.gmra.mrb[64].mxu0 %vm9580_vm15, %v9579_v56  ;;  %vm9581_vm13 = vmmov %vm9576_vm5  ;;  %v5412_v22 = vpack.c.bf16 %v7138_v61, %v7137_v36  ;;  %vm9603_vm15 = vcmp.ne.s16.totalorder %v9602_v52, 0 }
 0x207   : > { %6755 = vmatpush3.bf16.msra.mxu0 %v5682_v38  ;;  %6726 = vmatprep.mubr.msk.bf16.mxu0 %vm9581_vm13, %v5402_v29  ;;  %vm9582_vm4 = vmmov %vm9576_vm5  ;;  %v4919_v38 = vshrl.u32 %v4900_v31, 16 }
 0x208   : > { %6641 = vmatmul.mubr.msk.bf16.gmra.mrb[20].mxu1 %vm691_vm1, %v4322_v20  ;;  %v5403_v20 = vpack.c.bf16 %v7120_v63, %v7119_v13  ;;  %vm9583_vm8 = vmmov %vm9582_vm4  ;;  %v4902_v13 = vsel %vm9603_vm15, %v8943_v50, 0 }
 0x209   : > { %6644 = vmatprep.mubr.msk.bf16.mxu1 %vm691_vm1, %v4331_v37  ;;  %v5404_v37 = vpack.c.bf16 %v7122_v33, %v7121_v62  ;;  %vm9584_vm11 = vmmov %vm9582_vm4  ;;  %v4921_v63 = vrot.slane %v4919_v38, 4  ;;  %v7139_v62 = vld [vmem:[%s7219_s10 + $0xd0] sm:$0xff]  ;;  %v7140_v33 = vld [vmem:[%s7219_s10 + $0xd8] sm:$0xff] }
 0x20a   : > { %vm9585_vm10 = vmmov %vm9582_vm4  ;;  %v7141_v38 = vld [vmem:[%s7219_s10 + $0xe0] sm:$0xff] }
 0x20b   : > { %vm9587_vm7 = vmmov %vm9582_vm4 }
 0x20c   : > { %vm9588_vm2 = vmmov %vm9582_vm4 }
 0x20d   : > { %vm9591_vm14 = vmmov %vm9588_vm2 }
 0x20e   : > { %6727 = vmatmul.mubr.msk.bf16.gmra.mrb[68].mxu0 %vm9582_vm4, %v5403_v20  ;;  %vm9592_vm3 = vmmov %vm9588_vm2  ;;  %v4924_v20 = vrot.slane %v4922_v8, 5  ;;  %vm9605_vm4 = vsmask.f32 3328  ;;  %v7142_v8 = vld [vmem:[%s7219_s10 + $0xe8] sm:$0xff] }
 0x20f   : > { %6730 = vmatprep.mubr.msk.bf16.mxu0 %vm9583_vm8, %v5404_v37  ;;  %vm9599_vm0 = vmmov %vm9588_vm2  ;;  %v5413_v37 = vpack.c.bf16 %v7140_v33, %v7139_v62 }
 0x210   : > { %6645 = vmatmul.mubr.msk.bf16.gmra.mrb[24].mxu1 %vm691_vm1, %v4340_v41  ;;  %v5408_v41 = vpack.c.bf16 %v7130_v23, %v7129_v25  ;;  %vm9600_vm5 = vmmov %vm9599_vm0  ;;  %v4925_v28 = vor.u32 %v4924_v20, %v4921_v63 }
 0x211   : > { %6648 = vmatprep.mubr.msk.bf16.mxu1 %vm691_vm1, %v4349_v53  ;;  %v7132_v53 = vld [vmem:[%s7219_s10 + $0x98] sm:$0xff]  ;;  %vm9604_vm13 = vmmov %vm9599_vm0 }
 0x212   : > { %vm9606_vm8 = vmmov %vm9605_vm4 }
 0x218   : > { %6649 = vmatmul.mubr.msk.bf16.gmra.mrb[28].mxu1 %vm691_vm1, %v4358_v57  ;;  %v5410_v57 = vpack.c.bf16 %v7134_v1, %v7133_v49  ;;  %v4899_v49 = vld [vmem:[#allocation2 + $0x90] sm:$0x1f] }
 0x219   : > { %6654 = vmatprep.mubr.msk.bf16.mxu1 %vm691_vm1, %v4624_v16  ;;  %v9593_v16 = vld [vmem:[#allocation22_spill] sm:$0xff] }
 0x220   : > { %6655 = vmatmul.mubr.msk.bf16.vlgmr.msra.gmra.mrb[0].mxu1 %vm691_vm1, %v4626_v32 }
 0x221   : > { %6687 = vmatpush3.bf16.msra.mxu1 %v5119_v7  ;;  %6658 = vmatprep.mubr.msk.bf16.mxu1 %vm691_vm1, %v4628_v39  ;;  %v9595_v7 = vld [vmem:[#allocation14_spill] sm:$0xff]  ;;  %v7136_v39 = vld [vmem:[%s7219_s10 + $0xb8] sm:$0xff] }
 0x222   : > { %vm9596_vm9 = vcmp.ne.s16.totalorder %v9595_v7, 0  ;;  %v5411_v3 = vpack.c.bf16 %v7136_v39, %v7135_v35 }
 0x223   : > { %v4901_v32 = vsel %vm9596_vm9, %v8606_v2, 0  ;;  %v9601_v2 = vld [vmem:[#allocation24_spill] sm:$0xff] }
 0x224   : > { %v4927_v14 = vshrl.u32 %v4901_v32, 16  ;;  %v4930_v29 = vshll.u32 %v4901_v32, 16 }
 0x226   : > { %v4929_v21 = vrot.slane %v4927_v14, 4  ;;  %v4932_v56 = vrot.slane %v4930_v29, 5 }
 0x228   : > { %6659 = vmatmul.mubr.msk.bf16.gmra.mrb[4].mxu1 %vm691_vm1, %v8704_v47  ;;  %v7123_v47 = vld [vmem:[%s7219_s10 + $0x50] sm:$0xff] }
 0x229   : > { %6662 = vmatprep.mubr.msk.bf16.mxu1 %vm691_vm1, %v8707_v42  ;;  %v7124_v42 = vld [vmem:[%s7219_s10 + $0x58] sm:$0xff] }
 0x22a   : > { %v5405_v59 = vpack.c.bf16 %v7124_v42, %v7123_v47  ;;  %v4936_v47 = vshrl.u32 %v4902_v13, 16  ;;  %v4939_v42 = vshll.u32 %v4902_v13, 16  ;;  %v9149_v13 = vld [vmem:[%s9311_s6 + $0x1] ss:$0 sm:$0xff] }
 0x22c   : > { %6731 = vmatmul.mubr.msk.bf16.gmra.mrb[72].mxu0 %vm9584_vm11, %v5405_v59  ;;  %v4933_v59 = vor.u32 %v4932_v56, %v4929_v21  ;;  %v4938_v44 = vrot.slane %v4936_v47, 4  ;;  %vm9607_vm11 = vmmov %vm9605_vm4  ;;  %v7143_v21 = vld [vmem:[%s7219_s10 + $0xf0] sm:$0xff]  ;;  %v7144_v56 = vld [vmem:[%s7219_s10 + $0xf8] sm:$0xff] }
 0x22d   : > { %6734 = vmatprep.mubr.msk.bf16.mxu0 %vm9585_vm10, %v5406_v5  ;;  %v4941_v5 = vrot.slane %v4939_v42, 5  ;;  %vm9610_vm10 = vmmov %vm9599_vm0 }
 0x22e   : > { %v4934_v50 = vsel %vm9605_vm4, %v4925_v28, %v4933_v59 }
 0x230   : > { %6663 = vmatmul.mubr.msk.bf16.gmra.mrb[8].mxu1 %vm691_vm1, %v8710_v54  ;;  %v7127_v54 = vld [vmem:[%s7219_s10 + $0x70] sm:$0xff] }
 0x231   : > { %6666 = vmatprep.mubr.msk.bf16.mxu1 %vm691_vm1, %v8717_v58  ;;  %v7128_v58 = vld [vmem:[%s7219_s10 + $0x78] sm:$0xff] }
 0x232   : > { %v5407_v40 = vpack.c.bf16 %v7128_v58, %v7127_v54 }
 0x234   : > { %6735 = vmatmul.mubr.msk.bf16.gmra.mrb[76].mxu0 %vm9587_vm7, %v5407_v40  ;;  %vm9611_vm7 = vmmov %vm9599_vm0 }
 0x235   : > { %6738 = vmatprep.mubr.msk.bf16.mxu0 %vm9588_vm2, %v5408_v41  ;;  %vm5845_vm2 = vcmask 261120  }
 0x238   : > { %6667 = vmatmul.mubr.msk.bf16.gmra.mrb[12].mxu1 %vm691_vm1, %v9586_v46 }
 0x239   : > { %6670 = vmatprep.mubr.msk.bf16.mxu1 %vm691_vm1, %v8730_v12  ;;  %v7131_v12 = vld [vmem:[%s7219_s10 + $0x90] sm:$0xff] }
 0x23a   : > { %v5409_v27 = vpack.c.bf16 %v7132_v53, %v7131_v12 }
 0x23c   : > { %6739 = vmatmul.mubr.msk.bf16.gmra.mrb[80].mxu0 %vm9591_vm14, %v5409_v27 }
 0x23d   : > { %6742 = vmatprep.mubr.msk.bf16.mxu0 %vm9592_vm3, %v5410_v57 }
 0x240   : > { %6671 = vmatmul.mubr.msk.bf16.gmra.mrb[16].mxu1 %vm691_vm1, %v9589_v24 }
 0x241   : > { %6674 = vmatprep.mubr.msk.bf16.mxu1 %vm691_vm1, %v9590_v45 }
 0x244   : > { %6743 = vmatmul.mubr.msk.bf16.gmra.mrb[84].mxu0 %vm9599_vm0, %v5411_v3 }
 0x245   : > { %6746 = vmatprep.mubr.msk.bf16.mxu0 %vm9600_vm5, %v5412_v22 }
 0x248   : > { %6675 = vmatmul.mubr.msk.bf16.gmra.mrb[20].mxu1 %vm691_vm1, %v9593_v16 }
 0x249   : > { %6678 = vmatprep.mubr.msk.bf16.mxu1 %vm691_vm1, %v9594_v19 }
 0x24c   : > { %6747 = vmatmul.mubr.msk.bf16.gmra.mrb[88].mxu0 %vm9604_vm13, %v5413_v37 }
 0x250   : > { %6679 = vmatmul.mubr.msk.bf16.gmra.mrb[24].mxu1 %vm691_vm1, %v9601_v2  ;;  %v5414_v2 = vpack.c.bf16 %v7142_v8, %v7141_v38 }
 0x251   : > { %6682 = vmatprep.mubr.msk.bf16.mxu1 %vm691_vm1, %v8755_v55  ;;  %v4942_v55 = vor.u32 %v4941_v5, %v4938_v44 }
 0x252   : > { %6750 = vmatprep.mubr.msk.bf16.mxu0 %vm9610_vm10, %v5414_v2 }
 0x253   : > { %v4943_v46 = vsel %vm9606_vm8, %v4933_v59, %v4942_v55  ;;  %v4952_v54 = vsel %vm9607_vm11, %v4942_v55, %v8799_v4 }
 0x258   : > { %6683 = vmatmul.mubr.msk.bf16.gmra.mrb[28].mxu1 %vm691_vm1, %v8762_v9 }
 0x259   : > { %6688 = vmatprep.mubr.msk.bf16.mxu1 %vm691_vm1, %v4934_v50 }
 0x25f   : > { %v9047_v58 = vpop.f32.mrb[32].mxu0 }
 0x260   : > { %6689 = vmatmul.mubr.msk.bf16.vlgmr.msra.gmra.mrb[0].mxu1 %vm691_vm1, %v4943_v46  ;;  %v9049_v40 = vpop.f32.mrb[33].mxu0 }
 0x261   : > { %6692 = vmatprep.mubr.msk.bf16.mxu1 %vm691_vm1, %v4952_v54  ;;  %v9051_v25 = vpop.f32.mrb[34].mxu0 }
 0x262   : > { %v9055_v9 = vpop.f32.mrb[35].mxu0 }
 0x267   : > { %v9059_v23 = vpop.f32.mrb[36].mxu0 }
 0x268   : > { %6693 = vmatmul.mubr.msk.bf16.gmra.mrb[4].mxu1 %vm691_vm1, %v8812_v18  ;;  %v9061_v41 = vpop.f32.mrb[37].mxu0 }
 0x269   : > { %6696 = vmatprep.mubr.msk.bf16.mxu1 %vm691_vm1, %v8825_v0  ;;  %v9063_v4 = vpop.f32.mrb[38].mxu0 }
 0x26a   : > { %v9067_v24 = vpop.f32.mrb[39].mxu0 }
 0x26f   : > { %v9071_v18 = vpop.f32.mrb[40].mxu0 }
 0x270   : > { %6697 = vmatmul.mubr.msk.bf16.gmra.mrb[8].mxu1 %vm691_vm1, %v8831_v60  ;;  %v9073_v45 = vpop.f32.mrb[41].mxu0 }
 0x271   : > { %6700 = vmatprep.mubr.msk.bf16.mxu1 %vm691_vm1, %v8834_v30  ;;  %v9075_v12 = vpop.f32.mrb[42].mxu0 }
 0x272   : > { %v9079_v0 = vpop.f32.mrb[43].mxu0 }
 0x278   : > { %6701 = vmatmul.mubr.msk.bf16.gmra.mrb[12].mxu1 %vm691_vm1, %v8843_v34 }
 0x279   : > { %6704 = vmatprep.mubr.msk.bf16.mxu1 %vm691_vm1, %v8848_v10 }
 0x27a   : > { %v9083_v60 = vpop.f32.mrb[44].mxu0 }
 0x27b   : > { %v9085_v53 = vpop.f32.mrb[45].mxu0 }
 0x27c   : > { %v9087_v27 = vpop.f32.mrb[46].mxu0 }
 0x27d   : > { %v9091_v30 = vpop.f32.mrb[47].mxu0 }
 0x280   : > { %6705 = vmatmul.mubr.msk.bf16.gmra.mrb[16].mxu1 %vm691_vm1, %v8856_v51  ;;  %v4916_v51 = vsel %vm2615_vm6, %v4899_v49, 0  ;;  %vm9609_vm6 = vmmov %vm9605_vm4 }
 0x281   : > { %6708 = vmatprep.mubr.msk.bf16.mxu1 %vm691_vm1, %v8868_v15  ;;  %v5062_v19 = vshrl.u32 %v4916_v51, 16  ;;  %v5065_v15 = vshll.u32 %v4916_v51, 16 }
 0x282   : > { %v9095_v34 = vpop.f32.mrb[48].mxu0 }
 0x283   : > { %v9097_v1 = vpop.f32.mrb[49].mxu0  ;;  %v5064_v39 = vrot.slane %v5062_v19, 4  ;;  %v5067_v3 = vrot.slane %v5065_v15, 5 }
 0x284   : > { %v9099_v10 = vpop.f32.mrb[50].mxu0 }
 0x285   : > { %v9103_v57 = vpop.f32.mrb[51].mxu0 }
 0x288   : > { %6709 = vmatmul.mubr.msk.bf16.gmra.mrb[20].mxu1 %vm691_vm1, %v8871_v43 }
 0x289   : > { %6712 = vmatprep.mubr.msk.bf16.mxu1 %vm691_vm1, %v8887_v48  ;;  %v5068_v48 = vor.u32 %v5067_v3, %v5064_v39 }
 0x28a   : > { %v9109_v7 = vpop.f32.mrb[52].mxu0 }
 0x28b   : > { %v9111_v32 = vpop.f32.mrb[53].mxu0  ;;  %v5069_v36 = vsel %vm9609_vm6, %v8889_v26, %v5068_v48  ;;  %v5415_v26 = vpack.c.bf16 %v7144_v56, %v7143_v21 }
 0x28c   : > { %v9113_v35 = vpop.f32.mrb[54].mxu0 }
 0x28d   : > { %v9117_v43 = vpop.f32.mrb[55].mxu0  ;;  %6751 = vmatmul.mubr.msk.bf16.gmra.mrb[92].mxu0 %vm9611_vm7, %v5415_v26 }
 0x290   : > { %6713 = vmatmul.mubr.msk.bf16.gmra.mrb[24].mxu1 %vm691_vm1, %v8896_v6 }
 0x291   : > { %6716 = vmatprep.mubr.msk.bf16.mxu1 %vm691_vm1, %v8900_v17 }
 0x292   : > { %v9121_v11 = vpop.f32.mrb[56].mxu0 }
 0x293   : > { %v9123_v31 = vpop.f32.mrb[57].mxu0 }
 0x294   : > { %v9127_v61 = vpop.f32.mrb[58].mxu0 }
 0x295   : > { %v9130_v6 = vpop.f32.mrb[59].mxu0 }
 0x298   : > { %6717 = vmatmul.mubr.msk.bf16.gmra.mrb[28].mxu1 %vm691_vm1, %v5069_v36 }
 0x29a   : > { %v9132_v22 = vpop.f32.mrb[60].mxu0 }
 0x29b   : > { %v9134_v14 = vpop.f32.mrb[61].mxu0 }
 0x29c   : > { %v9136_v17 = vpop.f32.mrb[62].mxu0 }
 0x29d   : > { %v9138_v29 = vpop.f32.mrb[63].mxu0 }
 0x333   : > { %v6690_v52 = vpop.f32.mrb[0].mxu1 }
 0x334   : > { %v6788_v63 = vadd.f32 %v6690_v52, %v9047_v58  ;;  %v5155_v20 = vpop.f32.mrb[1].mxu1 }
 0x335   : > { %v6789_v62 = vadd.f32 %v5155_v20, %v9049_v40  ;;  %v6691_v33 = vpop.f32.mrb[2].mxu1 }
 0x336   : > { %v5321_v37 = vadd.f32 %v6788_v63, %v9149_v13  ;;  %v6790_v47 = vadd.f32 %v6691_v33, %v9051_v25  ;;  %v5158_v42 = vpop.f32.mrb[3].mxu1 }
 0x337   : > { %v5319_v59 = vadd.f32 %v6789_v62, %v9149_v13  ;;  %v6791_v28 = vadd.f32 %v5158_v42, %v9055_v9 }
 0x338   : > { %v5322_v44 = vadd.f32 %v6790_v47, %v9149_v13  ;;  %v5353_v50 = vmax.f32 %v5321_v37, 0.0 }
 0x339   : > { %v5320_v5 = vadd.f32 %v6791_v28, %v9149_v13  ;;  %v5351_v46 = vmax.f32 %v5319_v59, 0.0 }
 0x33a   : > { %v5354_v55 = vmax.f32 %v5322_v44, 0.0 }
 0x33b   : > { %v5352_v54 = vmax.f32 %v5320_v5, 0.0  ;;  %v6694_v58 = vpop.f32.mrb[4].mxu1 }
 0x33c   : > { %v5384_v40 = vpack.c.bf16 %v5354_v55, %v5353_v50  ;;  %v6792_v49 = vadd.f32 %v6694_v58, %v9059_v23  ;;  %v5171_v16 = vpop.f32.mrb[5].mxu1 }
 0x33d   : > { %v5383_v51 = vpack.c.bf16 %v5352_v54, %v5351_v46  ;;  %v6793_v25 = vadd.f32 %v5171_v16, %v9061_v41  ;;  %v6695_v19 = vpop.f32.mrb[6].mxu1 }
 0x33e   : > { %v5325_v15 = vadd.f32 %v6792_v49, %v9149_v13  ;;  %v6794_v9 = vadd.f32 %v6695_v19, %v9063_v4  ;;  %v5174_v39 = vpop.f32.mrb[7].mxu1 }
 0x33f   : > { %v5323_v3 = vadd.f32 %v6793_v25, %v9149_v13  ;;  %v6795_v48 = vadd.f32 %v5174_v39, %v9067_v24  ;;  %6756 = vmatprep.mubr.msk.bf16.mxu0 %vm691_vm1, %v5383_v51 }
 0x340   : > { %v5326_v36 = vadd.f32 %v6794_v9, %v9149_v13  ;;  %6757 = vmatmul.mubr.msk.bf16.vlgmr.msra.gmra.mrb[64].mxu0 %vm691_vm1, %v5384_v40  ;;  %v5357_v38 = vmax.f32 %v5325_v15, 0.0 }
 0x341   : > { %v5324_v23 = vadd.f32 %v6795_v48, %v9149_v13  ;;  %v5355_v8 = vmax.f32 %v5323_v3, 0.0 }
 0x342   : > { %v5358_v41 = vmax.f32 %v5326_v36, 0.0 }
 0x343   : > { %v5356_v2 = vmax.f32 %v5324_v23, 0.0  ;;  %v6698_v21 = vpop.f32.mrb[8].mxu1 }
 0x344   : > { %v5386_v56 = vpack.c.bf16 %v5358_v41, %v5357_v38  ;;  %v6796_v4 = vadd.f32 %v6698_v21, %v9071_v18  ;;  %v5187_v26 = vpop.f32.mrb[9].mxu1 }
 0x345   : > { %v5385_v52 = vpack.c.bf16 %v5356_v2, %v5355_v8  ;;  %v6797_v24 = vadd.f32 %v5187_v26, %v9073_v45  ;;  %v6699_v63 = vpop.f32.mrb[10].mxu1 }
 0x346   : > { %v5329_v20 = vadd.f32 %v6796_v4, %v9149_v13  ;;  %v6798_v62 = vadd.f32 %v6699_v63, %v9075_v12  ;;  %v5190_v33 = vpop.f32.mrb[11].mxu1 }
 0x347   : > { %v5327_v37 = vadd.f32 %v6797_v24, %v9149_v13  ;;  %v6799_v47 = vadd.f32 %v5190_v33, %v9079_v0  ;;  %6760 = vmatprep.mubr.msk.bf16.mxu0 %vm691_vm1, %v5385_v52 }
 0x348   : > { %v5330_v42 = vadd.f32 %v6798_v62, %v9149_v13  ;;  %6761 = vmatmul.mubr.msk.bf16.gmra.mrb[68].mxu0 %vm691_vm1, %v5386_v56  ;;  %v5361_v59 = vmax.f32 %v5329_v20, 0.0 }
 0x349   : > { %v5328_v18 = vadd.f32 %v6799_v47, %v9149_v13  ;;  %v5359_v28 = vmax.f32 %v5327_v37, 0.0 }
 0x34a   : > { %v5362_v45 = vmax.f32 %v5330_v42, 0.0 }
 0x34b   : > { %v5360_v44 = vmax.f32 %v5328_v18, 0.0  ;;  %v6702_v5 = vpop.f32.mrb[12].mxu1 }
 0x34c   : > { %v5388_v50 = vpack.c.bf16 %v5362_v45, %v5361_v59  ;;  %v6800_v12 = vadd.f32 %v6702_v5, %v9083_v60  ;;  %v5203_v55 = vpop.f32.mrb[13].mxu1 }
 0x34d   : > { %v5387_v46 = vpack.c.bf16 %v5360_v44, %v5359_v28  ;;  %v6801_v0 = vadd.f32 %v5203_v55, %v9085_v53  ;;  %v6703_v54 = vpop.f32.mrb[14].mxu1 }
 0x34e   : > { %v5333_v58 = vadd.f32 %v6800_v12, %v9149_v13  ;;  %v6802_v40 = vadd.f32 %v6703_v54, %v9087_v27  ;;  %v5206_v49 = vpop.f32.mrb[15].mxu1 }
 0x34f   : > { %v5331_v16 = vadd.f32 %v6801_v0, %v9149_v13  ;;  %v6803_v51 = vadd.f32 %v5206_v49, %v9091_v30  ;;  %6764 = vmatprep.mubr.msk.bf16.mxu0 %vm691_vm1, %v5387_v46 }
 0x350   : > { %v5334_v25 = vadd.f32 %v6802_v40, %v9149_v13  ;;  %6765 = vmatmul.mubr.msk.bf16.gmra.mrb[72].mxu0 %vm691_vm1, %v5388_v50  ;;  %v5365_v19 = vmax.f32 %v5333_v58, 0.0 }
 0x351   : > { %v5332_v60 = vadd.f32 %v6803_v51, %v9149_v13  ;;  %v5363_v15 = vmax.f32 %v5331_v16, 0.0 }
 0x352   : > { %v5366_v53 = vmax.f32 %v5334_v25, 0.0 }
 0x353   : > { %v5364_v9 = vmax.f32 %v5332_v60, 0.0  ;;  %v6706_v39 = vpop.f32.mrb[16].mxu1 }
 0x354   : > { %v5390_v3 = vpack.c.bf16 %v5366_v53, %v5365_v19  ;;  %v6804_v27 = vadd.f32 %v6706_v39, %v9095_v34  ;;  %v5219_v48 = vpop.f32.mrb[17].mxu1 }
 0x355   : > { %v5389_v36 = vpack.c.bf16 %v5364_v9, %v5363_v15  ;;  %v6805_v30 = vadd.f32 %v5219_v48, %v9097_v1  ;;  %v6707_v23 = vpop.f32.mrb[18].mxu1 }
 0x356   : > { %v5337_v38 = vadd.f32 %v6804_v27, %v9149_v13  ;;  %v6806_v41 = vadd.f32 %v6707_v23, %v9099_v10  ;;  %v5222_v8 = vpop.f32.mrb[19].mxu1 }
 0x357   : > { %v5335_v2 = vadd.f32 %v6805_v30, %v9149_v13  ;;  %v6807_v21 = vadd.f32 %v5222_v8, %v9103_v57  ;;  %6768 = vmatprep.mubr.msk.bf16.mxu0 %vm691_vm1, %v5389_v36 }
 0x358   : > { %v5338_v56 = vadd.f32 %v6806_v41, %v9149_v13  ;;  %6769 = vmatmul.mubr.msk.bf16.gmra.mrb[76].mxu0 %vm691_vm1, %v5390_v3  ;;  %v5369_v4 = vmax.f32 %v5337_v38, 0.0 }
 0x359   : > { %v5336_v34 = vadd.f32 %v6807_v21, %v9149_v13  ;;  %v5367_v26 = vmax.f32 %v5335_v2, 0.0 }
 0x35a   : > { %v5370_v1 = vmax.f32 %v5338_v56, 0.0 }
 0x35b   : > { %v5368_v52 = vmax.f32 %v5336_v34, 0.0  ;;  %v6710_v24 = vpop.f32.mrb[20].mxu1 }
 0x35c   : > { %v5392_v63 = vpack.c.bf16 %v5370_v1, %v5369_v4  ;;  %v6808_v10 = vadd.f32 %v6710_v24, %v9109_v7  ;;  %v5235_v20 = vpop.f32.mrb[21].mxu1 }
 0x35d   : > { %v5391_v62 = vpack.c.bf16 %v5368_v52, %v5367_v26  ;;  %v6809_v57 = vadd.f32 %v5235_v20, %v9111_v32  ;;  %v6711_v33 = vpop.f32.mrb[22].mxu1 }
 0x35e   : > { %v5341_v37 = vadd.f32 %v6808_v10, %v9149_v13  ;;  %v6810_v47 = vadd.f32 %v6711_v33, %v9113_v35  ;;  %v5238_v42 = vpop.f32.mrb[23].mxu1 }
 0x35f   : > { %v5339_v18 = vadd.f32 %v6809_v57, %v9149_v13  ;;  %v6811_v59 = vadd.f32 %v5238_v42, %v9117_v43  ;;  %6772 = vmatprep.mubr.msk.bf16.mxu0 %vm691_vm1, %v5391_v62 }
 0x360   : > { %v5342_v45 = vadd.f32 %v6810_v47, %v9149_v13  ;;  %6773 = vmatmul.mubr.msk.bf16.gmra.mrb[80].mxu0 %vm691_vm1, %v5392_v63  ;;  %v5373_v28 = vmax.f32 %v5341_v37, 0.0 }
 0x361   : > { %v5340_v7 = vadd.f32 %v6811_v59, %v9149_v13  ;;  %v5371_v44 = vmax.f32 %v5339_v18, 0.0 }
 0x362   : > { %v5374_v32 = vmax.f32 %v5342_v45, 0.0 }
 0x363   : > { %v5372_v5 = vmax.f32 %v5340_v7, 0.0  ;;  %v6714_v50 = vpop.f32.mrb[24].mxu1 }
 0x364   : > { %v5394_v12 = vpack.c.bf16 %v5374_v32, %v5373_v28  ;;  %v6812_v35 = vadd.f32 %v6714_v50, %v9121_v11  ;;  %v5251_v55 = vpop.f32.mrb[25].mxu1 }
 0x365   : > { %v5393_v46 = vpack.c.bf16 %v5372_v5, %v5371_v44  ;;  %v6813_v43 = vadd.f32 %v5251_v55, %v9123_v31  ;;  %v6715_v0 = vpop.f32.mrb[26].mxu1 }
 0x366   : > { %v5345_v54 = vadd.f32 %v6812_v35, %v9149_v13  ;;  %v6814_v58 = vadd.f32 %v6715_v0, %v9127_v61  ;;  %v5254_v40 = vpop.f32.mrb[27].mxu1 }
 0x367   : > { %v5343_v49 = vadd.f32 %v6813_v43, %v9149_v13  ;;  %v6815_v16 = vadd.f32 %v5254_v40, %v9130_v6  ;;  %6776 = vmatprep.mubr.msk.bf16.mxu0 %vm691_vm1, %v5393_v46 }
 0x368   : > { %v5346_v51 = vadd.f32 %v6814_v58, %v9149_v13  ;;  %6777 = vmatmul.mubr.msk.bf16.gmra.mrb[84].mxu0 %vm691_vm1, %v5394_v12  ;;  %v5377_v25 = vmax.f32 %v5345_v54, 0.0 }
 0x369   : > { %v5344_v11 = vadd.f32 %v6815_v16, %v9149_v13  ;;  %v5375_v60 = vmax.f32 %v5343_v49, 0.0 }
 0x36a   : > { %v5378_v31 = vmax.f32 %v5346_v51, 0.0 }
 0x36b   : > { %v5376_v19 = vmax.f32 %v5344_v11, 0.0  ;;  %v6718_v53 = vpop.f32.mrb[28].mxu1 }
 0x36c   : > { %v5396_v15 = vpack.c.bf16 %v5378_v31, %v5377_v25  ;;  %v6816_v61 = vadd.f32 %v6718_v53, %v9132_v22  ;;  %v5267_v9 = vpop.f32.mrb[29].mxu1 }
 0x36d   : > { %v5395_v39 = vpack.c.bf16 %v5376_v19, %v5375_v60  ;;  %v6817_v6 = vadd.f32 %v5267_v9, %v9134_v14  ;;  %v6719_v3 = vpop.f32.mrb[30].mxu1 }
 0x36e   : > { %v5349_v27 = vadd.f32 %v6816_v61, %v9149_v13  ;;  %v6818_v48 = vadd.f32 %v6719_v3, %v9136_v17  ;;  %v5270_v36 = vpop.f32.mrb[31].mxu1 }
 0x36f   : > { %v5347_v30 = vadd.f32 %v6817_v6, %v9149_v13  ;;  %v6819_v23 = vadd.f32 %v5270_v36, %v9138_v29  ;;  %6780 = vmatprep.mubr.msk.bf16.mxu0 %vm691_vm1, %v5395_v39 }
 0x370   : > { %v5350_v38 = vadd.f32 %v6818_v48, %v9149_v13  ;;  %6781 = vmatmul.mubr.msk.bf16.gmra.mrb[88].mxu0 %vm691_vm1, %v5396_v15  ;;  %v5381_v14 = vmax.f32 %v5349_v27, 0.0 }
 0x371   : > { %v5348_v22 = vadd.f32 %v6819_v23, %v9149_v13  ;;  %v5379_v8 = vmax.f32 %v5347_v30, 0.0 }
 0x372   : > { %v5382_v41 = vmax.f32 %v5350_v38, 0.0 }
 0x373   : > { %v5380_v2 = vmax.f32 %v5348_v22, 0.0 }
 0x374   : > { %v5398_v21 = vpack.c.bf16 %v5382_v41, %v5381_v14 }
 0x375   : > { %v5397_v17 = vpack.c.bf16 %v5380_v2, %v5379_v8 }
 0x377   : > { %6784 = vmatprep.mubr.msk.bf16.mxu0 %vm691_vm1, %v5397_v17 }
 0x378   : > { %6785 = vmatmul.mubr.msk.bf16.gmra.mrb[92].mxu0 %vm691_vm1, %v5398_v21 }
 0x413   : > { %v6758_v29 = vpop.f32.mrb[64].mxu0 }
 0x414   : > { %5848 = vst.msk [vmem:[%s9236_s21 + $0x10] sm:$0xff] %vm5845_vm2, %v6758_v29  ;;  %v5718_v13 = vpop.f32.mrb[65].mxu0 }
 0x415   : > { %5846 = vst.msk [vmem:[%s9236_s21] sm:$0xff] %vm5845_vm2, %v5718_v13  ;;  %v6759_v56 = vpop.f32.mrb[66].mxu0 }
 0x416   : > { %5849 = vst.msk [vmem:[%s9236_s21 + $0x18] sm:$0xff] %vm5845_vm2, %v6759_v56  ;;  %v5721_v34 = vpop.f32.mrb[67].mxu0 }
 0x417   : > { %5847 = vst.msk [vmem:[%s9236_s21 + $0x8] sm:$0xff] %vm5845_vm2, %v5721_v34 }
 0x41b   : > { %v6762_v4 = vpop.f32.mrb[68].mxu0 }
 0x41c   : > { %5852 = vst.msk [vmem:[%s9236_s21 + $0x30] sm:$0xff] %vm5845_vm2, %v6762_v4  ;;  %v5734_v1 = vpop.f32.mrb[69].mxu0 }
 0x41d   : > { %5850 = vst.msk [vmem:[%s9236_s21 + $0x20] sm:$0xff] %vm5845_vm2, %v5734_v1  ;;  %v6763_v26 = vpop.f32.mrb[70].mxu0 }
 0x41e   : > { %5853 = vst.msk [vmem:[%s9236_s21 + $0x38] sm:$0xff] %vm5845_vm2, %v6763_v26  ;;  %v5737_v52 = vpop.f32.mrb[71].mxu0 }
 0x41f   : > { %5851 = vst.msk [vmem:[%s9236_s21 + $0x28] sm:$0xff] %vm5845_vm2, %v5737_v52 }
 0x423   : > { %v6766_v24 = vpop.f32.mrb[72].mxu0 }
 0x424   : > { %5856 = vst.msk [vmem:[%s9236_s21 + $0x50] sm:$0xff] %vm5845_vm2, %v6766_v24  ;;  %v5750_v63 = vpop.f32.mrb[73].mxu0 }
 0x425   : > { %5854 = vst.msk [vmem:[%s9236_s21 + $0x40] sm:$0xff] %vm5845_vm2, %v5750_v63  ;;  %v6767_v10 = vpop.f32.mrb[74].mxu0 }
 0x426   : > { %5857 = vst.msk [vmem:[%s9236_s21 + $0x58] sm:$0xff] %vm5845_vm2, %v6767_v10  ;;  %v5753_v20 = vpop.f32.mrb[75].mxu0 }
 0x427   : > { %5855 = vst.msk [vmem:[%s9236_s21 + $0x48] sm:$0xff] %vm5845_vm2, %v5753_v20 }
 0x42b   : > { %v6770_v62 = vpop.f32.mrb[76].mxu0 }
 0x42c   : > { %5860 = vst.msk [vmem:[%s9236_s21 + $0x70] sm:$0xff] %vm5845_vm2, %v6770_v62  ;;  %v5766_v57 = vpop.f32.mrb[77].mxu0 }
 0x42d   : > { %5858 = vst.msk [vmem:[%s9236_s21 + $0x60] sm:$0xff] %vm5845_vm2, %v5766_v57  ;;  %v6771_v33 = vpop.f32.mrb[78].mxu0 }
 0x42e   : > { %5861 = vst.msk [vmem:[%s9236_s21 + $0x78] sm:$0xff] %vm5845_vm2, %v6771_v33  ;;  %v5769_v37 = vpop.f32.mrb[79].mxu0 }
 0x42f   : > { %5859 = vst.msk [vmem:[%s9236_s21 + $0x68] sm:$0xff] %vm5845_vm2, %v5769_v37 }
 0x433   : > { %v6774_v47 = vpop.f32.mrb[80].mxu0 }
 0x434   : > { %5864 = vst.msk [vmem:[%s9236_s21 + $0x90] sm:$0xff] %vm5845_vm2, %v6774_v47  ;;  %v5782_v42 = vpop.f32.mrb[81].mxu0 }
 0x435   : > { %5862 = vst.msk [vmem:[%s9236_s21 + $0x80] sm:$0xff] %vm5845_vm2, %v5782_v42  ;;  %v6775_v18 = vpop.f32.mrb[82].mxu0 }
 0x436   : > { %5865 = vst.msk [vmem:[%s9236_s21 + $0x98] sm:$0xff] %vm5845_vm2, %v6775_v18  ;;  %v5785_v59 = vpop.f32.mrb[83].mxu0 }
 0x437   : > { %5863 = vst.msk [vmem:[%s9236_s21 + $0x88] sm:$0xff] %vm5845_vm2, %v5785_v59 }
 0x43b   : > { %v6778_v45 = vpop.f32.mrb[84].mxu0 }
 0x43c   : > { %5868 = vst.msk [vmem:[%s9236_s21 + $0xb0] sm:$0xff] %vm5845_vm2, %v6778_v45  ;;  %v5798_v7 = vpop.f32.mrb[85].mxu0 }
 0x43d   : > { %5866 = vst.msk [vmem:[%s9236_s21 + $0xa0] sm:$0xff] %vm5845_vm2, %v5798_v7  ;;  %v6779_v28 = vpop.f32.mrb[86].mxu0 }
 0x43e   : > { %5869 = vst.msk [vmem:[%s9236_s21 + $0xb8] sm:$0xff] %vm5845_vm2, %v6779_v28  ;;  %v5801_v32 = vpop.f32.mrb[87].mxu0 }
 0x43f   : > { %5867 = vst.msk [vmem:[%s9236_s21 + $0xa8] sm:$0xff] %vm5845_vm2, %v5801_v32 }
 0x443   : > { %v6782_v44 = vpop.f32.mrb[88].mxu0 }
 0x444   : > { %5872 = vst.msk [vmem:[%s9236_s21 + $0xd0] sm:$0xff] %vm5845_vm2, %v6782_v44  ;;  %v5814_v5 = vpop.f32.mrb[89].mxu0 }
 0x445   : > { %5870 = vst.msk [vmem:[%s9236_s21 + $0xc0] sm:$0xff] %vm5845_vm2, %v5814_v5  ;;  %v6783_v50 = vpop.f32.mrb[90].mxu0 }
 0x446   : > { %5873 = vst.msk [vmem:[%s9236_s21 + $0xd8] sm:$0xff] %vm5845_vm2, %v6783_v50  ;;  %v5817_v12 = vpop.f32.mrb[91].mxu0 }
 0x447   : > { %5871 = vst.msk [vmem:[%s9236_s21 + $0xc8] sm:$0xff] %vm5845_vm2, %v5817_v12 }
 0x44b   : > { %v6786_v35 = vpop.f32.mrb[92].mxu0 }
 0x44c   : > { %5876 = vst.msk [vmem:[%s9236_s21 + $0xf0] sm:$0xff] %vm5845_vm2, %v6786_v35  ;;  %v5830_v55 = vpop.f32.mrb[93].mxu0 }
 0x44d   : > { %5874 = vst.msk [vmem:[%s9236_s21 + $0xe0] sm:$0xff] %vm5845_vm2, %v5830_v55  ;;  %v6787_v46 = vpop.f32.mrb[94].mxu0 }
 0x44e   : > { %5877 = vst.msk [vmem:[%s9236_s21 + $0xf8] sm:$0xff] %vm5845_vm2, %v6787_v46  ;;  %v5833_v43 = vpop.f32.mrb[95].mxu0 }
 0x44f   : > { %5875 = vst.msk [vmem:[%s9236_s21 + $0xe8] sm:$0xff] %vm5845_vm2, %v5833_v43 }
 0x450 PF: > { %s17_s24 = sadd.s32 1, %s7151_s24  }
 0x451   : > { %p14_p4 = scmp.ge.s32.totalorder %s17_s24, 4  }
 0x453   :  { %16 = sbr.rel (!%p14_p4) target bundleno = 1 (0x1), region = 78 }

</bundles_post_ra>
